<compile_context>
chip_gen: v7x
topology: tpu7x:2x2x1
jax: 0.10.0
libtpu: 0.0.40
codegen_flags: <defaults>
</compile_context>

<pallas_src>
from functools import partial

import jax
import jax.numpy as jnp
import numpy as np
from jax.experimental import pallas as pl
from jax.experimental.pallas import tpu as pltpu


def resblock_kernel(x_ref, w1_ref, t1_ref, w2_ref, t2_ref, o_ref,
                    xpad_ref, mid_ref, col1_ref, col2_ref, *, identity):
    # x_ref   : (nb, H, W, Cin)          bf16  NHWC input tile
    # w1_ref  : (9*Cin, Cmid)            bf16  conv1 weights * BN1 scale, rows ordered (dy,dx,cin)
    # t1_ref  : (1, Cmid)                f32   BN1 shift (conv1 bias folded in)
    # w2_ref  : (Kaug, Cout_pad)         bf16  [shortcut w*BNs scale ; conv2 w*BN2 scale], cols padded
    # t2_ref  : (1, Cout_pad)            f32   BN2 shift (+ shortcut BN shift), zero in pad columns
    # o_ref   : (nb, Cout, H*W)          f32   lane-dense NCHW-flat output
    # xpad_ref: (nb, H+2, W+2, Cin)      bf16  scratch: padded input
    # mid_ref : (nb, H+2, W+2, Cmid)     bf16  scratch: padded conv1 activation
    # col1_ref: (nb*H*W, 9*Cin)          bf16  scratch: im2col for conv1
    # col2_ref: (nb*H*W, Kaug)           bf16  scratch: [shortcut cols ; im2col for conv2]
    nb, H, W, Cin = x_ref.shape
    Hp, Wp = H + 2, W + 2
    Cmid = w1_ref.shape[1]
    Cout = o_ref.shape[1]
    HW = H * W
    M = nb * HW

    # Zero only the 1-pixel halo ring (interiors are fully overwritten below).  Re-done every
    # grid step so it stays correct under "parallel" batch sharding across TensorCores.
    def zero_halo(buf):
        n_, hp, wp, c = buf.shape
        buf[:, 0:1, :, :] = jnp.zeros((n_, 1, wp, c), buf.dtype)
        buf[:, hp - 1:hp, :, :] = jnp.zeros((n_, 1, wp, c), buf.dtype)
        buf[:, :, 0:1, :] = jnp.zeros((n_, hp, 1, c), buf.dtype)
        buf[:, :, wp - 1:wp, :] = jnp.zeros((n_, hp, 1, c), buf.dtype)

    zero_halo(xpad_ref)
    zero_halo(mid_ref)

    # In-kernel halo: bf16 input tile straight into the interior (no cast).
    xpad_ref[:, 1:1 + H, 1:1 + W, :] = x_ref[...]

    # ---- conv1: im2col (K = 9*Cin) + one MXU matmul ------------------------------------------
    xp = xpad_ref[...]                                    # (nb, Hp, Wp, Cin) bf16
    for k in range(9):
        dy, dx = k // 3, k % 3
        col1_ref[:, k * Cin:(k + 1) * Cin] = xp[:, dy:dy + H, dx:dx + W, :].reshape(M, Cin)

    acc1 = jnp.dot(col1_ref[...], w1_ref[...], preferred_element_type=jnp.float32)
    h = jnp.maximum(acc1 + t1_ref[...], 0.0)              # BN1 (scale folded into w1) + ReLU

    # ---- re-pad conv1 activation (single f32->bf16 cast) and build conv2 im2col --------------
    mid_ref[:, 1:1 + H, 1:1 + W, :] = h.astype(jnp.bfloat16).reshape(nb, H, W, Cmid)

    off = 0 if identity else Cin
    if not identity:
        # Projection shortcut columns at lane offset 0, written directly from x_ref.
        col2_ref[:, 0:Cin] = x_ref[...].reshape(M, Cin)
    m = mid_ref[...]                                      # (nb, Hp, Wp, Cmid) bf16
    for k in range(9):
        dy, dx = k // 3, k % 3
        col2_ref[:, off + k * Cmid:off + (k + 1) * Cmid] = (
            m[:, dy:dy + H, dx:dx + W, :].reshape(M, Cmid))

    # ---- conv2 + BN2 (+ projection shortcut + its BN) fused into ONE matmul ------------------
    acc2 = jnp.dot(col2_ref[...], w2_ref[...], preferred_element_type=jnp.float32)
    y = acc2 + t2_ref[...]                                # (M, Cout_pad) f32
    if identity:
        # Identity shortcut added on the VPU (no eye-matrix MXU columns).  Cin == Cout here;
        # values in the padded columns are irrelevant (sliced away below).
        x_f32 = x_ref[...].reshape(M, Cin).astype(jnp.float32)
        pad = y.shape[1] - Cin
        y = y + jnp.concatenate([x_f32, jnp.zeros((M, pad), jnp.float32)], axis=-1)
    y = jnp.maximum(y, 0.0)

    # ---- lane-dense store: (Cout, H*W) per batch element --------------------------------------
    # (HW, Cout_pad) -> (Cout_pad, HW) is a tile-aligned transpose (both dims multiples of 8/128);
    # then a sublane slice picks the real Cout rows.  HW is a multiple of 128 -> unmasked stores.
    for n in range(nb):
        yt = y[n * HW:(n + 1) * HW, :].T                  # (Cout_pad, HW)
        o_ref[n] = yt[0:Cout, :]


def fold_bn(gamma, beta, mean, var, conv_bias, eps=1e-5):
    scale = gamma / jnp.sqrt(var + eps)                   # (C,)
    shift = scale * (conv_bias - mean) + beta             # (C,)
    return scale.astype(jnp.float32), shift.astype(jnp.float32)


def residual_block_pallas(x_nchw, params, nb=None):
    """x_nchw: (N, Cin, H, W) float32.  Returns (N, Cout, H, W) float32."""
    N, Cin, H, W = x_nchw.shape
    HW = H * W
    assert HW % 128 == 0, "lane-dense output path requires H*W to be a multiple of 128"
    Cmid = params["w1"].shape[-1]
    Cout = params["w2"].shape[-1]
    Hp, Wp = H + 2, W + 2
    Cout_pad = ((Cout + 127) // 128) * 128                # pad matmul-N / output lanes to 128

    if nb is None:
        # Grow the matmul M dimension while keeping >= 2 "parallel" grid steps (v7x megacore).
        nb = N // 2 if (N >= 2 and N % 2 == 0) else 1
    assert N % nb == 0

    # NCHW -> NHWC, bf16 for the MXU operands / halved HBM DMA bytes.
    x = jnp.transpose(x_nchw, (0, 2, 3, 1)).astype(jnp.bfloat16)

    s1, t1 = fold_bn(params["g1"], params["b1"], params["m1"], params["v1"], params["cb1"])
    s2, t2 = fold_bn(params["g2"], params["b2"], params["m2"], params["v2"], params["cb2"])

    # Fold BN scales into the conv weights (f32 math, then bf16 for the MXU).
    w1 = (params["w1"].reshape(9 * Cin, Cmid) * s1[None, :]).astype(jnp.bfloat16)
    w2c = params["w2"].reshape(9 * Cmid, Cout) * s2[None, :]

    identity = (Cin == Cout)
    if identity:
        # Identity shortcut (PyTorch uses nn.Sequential()); added on the VPU inside the kernel.
        w2aug_f32 = w2c
        t2a = t2
    else:
        # Projection shortcut: 1x1 conv + BN fused into the conv2 matmul (rows 0:Cin of w2aug).
        ss, ts = fold_bn(params["gs"], params["bs"], params["ms"], params["vs"], params["cbs"])
        w2aug_f32 = jnp.concatenate([params["ws"] * ss[None, :], w2c], axis=0)
        t2a = t2 + ts

    Kaug = w2aug_f32.shape[0]
    w2aug = jnp.pad(w2aug_f32, ((0, 0), (0, Cout_pad - Cout))).astype(jnp.bfloat16)
    t2a = jnp.pad(t2a, (0, Cout_pad - Cout)).reshape(1, Cout_pad).astype(jnp.float32)
    t1 = t1.reshape(1, Cmid)

    out = pl.pallas_call(
        partial(resblock_kernel, identity=identity),
        out_shape=jax.ShapeDtypeStruct((N, Cout, HW), jnp.float32),
        grid_spec=pltpu.PrefetchScalarGridSpec(
            num_scalar_prefetch=0,
            grid=(N // nb,),
            in_specs=[
                pl.BlockSpec((nb, H, W, Cin), lambda b: (b, 0, 0, 0)),
                pl.BlockSpec((9 * Cin, Cmid), lambda b: (0, 0)),
                pl.BlockSpec((1, Cmid), lambda b: (0, 0)),
                pl.BlockSpec((Kaug, Cout_pad), lambda b: (0, 0)),
                pl.BlockSpec((1, Cout_pad), lambda b: (0, 0)),
            ],
            out_specs=pl.BlockSpec((nb, Cout, HW), lambda b: (b, 0, 0)),
            scratch_shapes=[
                pltpu.VMEM((nb, Hp, Wp, Cin), jnp.bfloat16),    # padded input (bf16)
                pltpu.VMEM((nb, Hp, Wp, Cmid), jnp.bfloat16),   # padded conv1 activation (bf16)
                pltpu.VMEM((nb * HW, 9 * Cin), jnp.bfloat16),   # im2col conv1
                pltpu.VMEM((nb * HW, Kaug), jnp.bfloat16),      # [shortcut ; im2col conv2]
            ],
        ),
        compiler_params=pltpu.CompilerParams(
            dimension_semantics=("parallel",),     # batch blocks independent -> 2 TCs on v7x
            vmem_limit_bytes=32 * 1024 * 1024,     # raise on v5e/v6e (128 MiB physical) for big tiles
        ),
    )(x, w1, t1, w2aug, t2a)

    # Output is already channels-first: just a free reshape, no HBM transpose pass.
    return out.reshape(N, Cout, H, W)


# ----------------------------- pure-JAX reference (f32) -----------------------------
def _conv_nhwc(x, w_hwio, b):
    y = jax.lax.conv_general_dilated(x, w_hwio, (1, 1), "SAME",
                                     dimension_numbers=("NHWC", "HWIO", "NHWC"))
    return y + b


def _bn(x, g, b, m, v, eps=1e-5):
    return (x - m) * (g / jnp.sqrt(v + eps)) + b


def residual_block_ref(x_nchw, p):
    x = jnp.transpose(x_nchw, (0, 2, 3, 1))
    h = _conv_nhwc(x, p["w1"], p["cb1"])
    h = jnp.maximum(_bn(h, p["g1"], p["b1"], p["m1"], p["v1"]), 0.0)
    h = _conv_nhwc(h, p["w2"], p["cb2"])
    h = _bn(h, p["g2"], p["b2"], p["m2"], p["v2"])
    if x.shape[-1] != p["w2"].shape[-1]:
        sc = _conv_nhwc(x, p["ws"][None, None], p["cbs"])
        sc = _bn(sc, p["gs"], p["bs"], p["ms"], p["vs"])
    else:
        sc = x
    out = jnp.maximum(h + sc, 0.0)
    return jnp.transpose(out, (0, 3, 1, 2))


# ----------------------------------- main -------------------------------------
if __name__ == "__main__":
    N, Cin, Cout, H, W = 2, 4, 8, 16, 16
    key = jax.random.PRNGKey(0)
    ks = jax.random.split(key, 16)

    def u(k, shape, lo=-0.5, hi=0.5):
        return jax.random.uniform(k, shape, jnp.float32, lo, hi)

    params = {
        "w1": u(ks[0], (3, 3, Cin, Cout)), "cb1": u(ks[1], (Cout,)),
        "g1": u(ks[2], (Cout,), 0.5, 1.5), "b1": u(ks[3], (Cout,)),
        "m1": u(ks[4], (Cout,)), "v1": u(ks[5], (Cout,), 0.5, 1.5),
        "w2": u(ks[6], (3, 3, Cout, Cout)), "cb2": u(ks[7], (Cout,)),
        "g2": u(ks[8], (Cout,), 0.5, 1.5), "b2": u(ks[9], (Cout,)),
        "m2": u(ks[10], (Cout,)), "v2": u(ks[11], (Cout,), 0.5, 1.5),
        "ws": u(ks[12], (Cin, Cout)), "cbs": u(ks[13], (Cout,)),
        "gs": jnp.ones((Cout,), jnp.float32), "bs": jnp.zeros((Cout,), jnp.float32),
        "ms": jnp.zeros((Cout,), jnp.float32), "vs": jnp.ones((Cout,), jnp.float32),
    }

    x = jax.random.normal(ks[14], (N, Cin, H, W), jnp.float32)

    out = jax.block_until_ready(residual_block_pallas(x, params))
    ref = jax.block_until_ready(residual_block_ref(x, params))

    assert out.shape == (N, Cout, H, W)
    # bf16 MXU operands vs. the f32 reference -> bf16-appropriate tolerances.
    np.testing.assert_allclose(np.asarray(out), np.asarray(ref), rtol=5e-2, atol=5e-2)
    print("KERNEL_OK")
</pallas_src>

<mosaic_0001>
module attributes {stable_mosaic.version = 11 : i64} {
  func.func @resblock_kernel(%arg0: i32, %arg1: memref<1x16x16x4xbf16, #tpu.memory_space<vmem>>, %arg2: memref<36x8xbf16, #tpu.memory_space<vmem>>, %arg3: memref<1x8xf32, #tpu.memory_space<vmem>>, %arg4: memref<76x128xbf16, #tpu.memory_space<vmem>>, %arg5: memref<1x128xf32, #tpu.memory_space<vmem>>, %arg6: memref<1x8x256xf32, #tpu.memory_space<vmem>>, %arg7: memref<1x18x18x4xbf16, #tpu.memory_space<vmem>>, %arg8: memref<1x18x18x8xbf16, #tpu.memory_space<vmem>>, %arg9: memref<256x36xbf16, #tpu.memory_space<vmem>>, %arg10: memref<256x76xbf16, #tpu.memory_space<vmem>>) attributes {dimension_semantics = [#tpu.dimension_semantics<parallel>], iteration_bounds = array<i64: 2>, scalar_prefetch = 0 : i64, scratch_operands = 4 : i64, tpu.core_type = #tpu.core_type<tc>, window_params = [{transform_indices = @transform_0, window_bounds = array<i64: 1, 16, 16, 4>}, {pipeline_mode = #tpu.pipeline_mode<synchronous>, transform_indices = @transform_1, window_bounds = array<i64: 36, 8>}, {pipeline_mode = #tpu.pipeline_mode<synchronous>, transform_indices = @transform_2, window_bounds = array<i64: 1, 8>}, {pipeline_mode = #tpu.pipeline_mode<synchronous>, transform_indices = @transform_3, window_bounds = array<i64: 76, 128>}, {pipeline_mode = #tpu.pipeline_mode<synchronous>, transform_indices = @transform_4, window_bounds = array<i64: 1, 128>}, {transform_indices = @transform_5, window_bounds = array<i64: 1, 8, 256>}]} {
    %cst = arith.constant 0.000000e+00 : bf16
    %0 = vector.broadcast %cst : bf16 to vector<1x1x18x4xbf16>
    %c0 = arith.constant 0 : index
    %c0_0 = arith.constant 0 : index
    %c0_1 = arith.constant 0 : index
    %c0_2 = arith.constant 0 : index
    %1 = vector.load %arg7[%c0, %c0_0, %c0_1, %c0_2] : memref<1x18x18x4xbf16, #tpu.memory_space<vmem>>, vector<1x1x18x4xbf16>
    tpu.vector_store %arg7[%c0, %c0_0, %c0_1, %c0_2], %0 {strides = array<i32>} : memref<1x18x18x4xbf16, #tpu.memory_space<vmem>>, vector<1x1x18x4xbf16>,
    %cst_3 = arith.constant 0.000000e+00 : bf16
    %2 = vector.broadcast %cst_3 : bf16 to vector<1x1x18x4xbf16>
    %c0_4 = arith.constant 0 : index
    %c17 = arith.constant 17 : index
    %c0_5 = arith.constant 0 : index
    %c0_6 = arith.constant 0 : index
    %3 = vector.load %arg7[%c0_4, %c17, %c0_5, %c0_6] : memref<1x18x18x4xbf16, #tpu.memory_space<vmem>>, vector<1x1x18x4xbf16>
    tpu.vector_store %arg7[%c0_4, %c17, %c0_5, %c0_6], %2 {strides = array<i32>} : memref<1x18x18x4xbf16, #tpu.memory_space<vmem>>, vector<1x1x18x4xbf16>,
    %cst_7 = arith.constant 0.000000e+00 : bf16
    %4 = vector.broadcast %cst_7 : bf16 to vector<1x18x1x4xbf16>
    %c0_8 = arith.constant 0 : index
    %c0_9 = arith.constant 0 : index
    %c0_10 = arith.constant 0 : index
    %c0_11 = arith.constant 0 : index
    %5 = vector.load %arg7[%c0_8, %c0_9, %c0_10, %c0_11] : memref<1x18x18x4xbf16, #tpu.memory_space<vmem>>, vector<1x18x1x4xbf16>
    tpu.vector_store %arg7[%c0_8, %c0_9, %c0_10, %c0_11], %4 {strides = array<i32>} : memref<1x18x18x4xbf16, #tpu.memory_space<vmem>>, vector<1x18x1x4xbf16>,
    %cst_12 = arith.constant 0.000000e+00 : bf16
    %6 = vector.broadcast %cst_12 : bf16 to vector<1x18x1x4xbf16>
    %c0_13 = arith.constant 0 : index
    %c0_14 = arith.constant 0 : index
    %c17_15 = arith.constant 17 : index
    %c0_16 = arith.constant 0 : index
    %7 = vector.load %arg7[%c0_13, %c0_14, %c17_15, %c0_16] : memref<1x18x18x4xbf16, #tpu.memory_space<vmem>>, vector<1x18x1x4xbf16>
    tpu.vector_store %arg7[%c0_13, %c0_14, %c17_15, %c0_16], %6 {strides = array<i32>} : memref<1x18x18x4xbf16, #tpu.memory_space<vmem>>, vector<1x18x1x4xbf16>,
    %cst_17 = arith.constant 0.000000e+00 : bf16
    %8 = vector.broadcast %cst_17 : bf16 to vector<1x1x18x8xbf16>
    %c0_18 = arith.constant 0 : index
    %c0_19 = arith.constant 0 : index
    %c0_20 = arith.constant 0 : index
    %c0_21 = arith.constant 0 : index
    %9 = vector.load %arg8[%c0_18, %c0_19, %c0_20, %c0_21] : memref<1x18x18x8xbf16, #tpu.memory_space<vmem>>, vector<1x1x18x8xbf16>
    tpu.vector_store %arg8[%c0_18, %c0_19, %c0_20, %c0_21], %8 {strides = array<i32>} : memref<1x18x18x8xbf16, #tpu.memory_space<vmem>>, vector<1x1x18x8xbf16>,
    %cst_22 = arith.constant 0.000000e+00 : bf16
    %10 = vector.broadcast %cst_22 : bf16 to vector<1x1x18x8xbf16>
    %c0_23 = arith.constant 0 : index
    %c17_24 = arith.constant 17 : index
    %c0_25 = arith.constant 0 : index
    %c0_26 = arith.constant 0 : index
    %11 = vector.load %arg8[%c0_23, %c17_24, %c0_25, %c0_26] : memref<1x18x18x8xbf16, #tpu.memory_space<vmem>>, vector<1x1x18x8xbf16>
    tpu.vector_store %arg8[%c0_23, %c17_24, %c0_25, %c0_26], %10 {strides = array<i32>} : memref<1x18x18x8xbf16, #tpu.memory_space<vmem>>, vector<1x1x18x8xbf16>,
    %cst_27 = arith.constant 0.000000e+00 : bf16
    %12 = vector.broadcast %cst_27 : bf16 to vector<1x18x1x8xbf16>
    %c0_28 = arith.constant 0 : index
    %c0_29 = arith.constant 0 : index
    %c0_30 = arith.constant 0 : index
    %c0_31 = arith.constant 0 : index
    %13 = vector.load %arg8[%c0_28, %c0_29, %c0_30, %c0_31] : memref<1x18x18x8xbf16, #tpu.memory_space<vmem>>, vector<1x18x1x8xbf16>
    tpu.vector_store %arg8[%c0_28, %c0_29, %c0_30, %c0_31], %12 {strides = array<i32>} : memref<1x18x18x8xbf16, #tpu.memory_space<vmem>>, vector<1x18x1x8xbf16>,
    %cst_32 = arith.constant 0.000000e+00 : bf16
    %14 = vector.broadcast %cst_32 : bf16 to vector<1x18x1x8xbf16>
    %c0_33 = arith.constant 0 : index
    %c0_34 = arith.constant 0 : index
    %c17_35 = arith.constant 17 : index
    %c0_36 = arith.constant 0 : index
    %15 = vector.load %arg8[%c0_33, %c0_34, %c17_35, %c0_36] : memref<1x18x18x8xbf16, #tpu.memory_space<vmem>>, vector<1x18x1x8xbf16>
    tpu.vector_store %arg8[%c0_33, %c0_34, %c17_35, %c0_36], %14 {strides = array<i32>} : memref<1x18x18x8xbf16, #tpu.memory_space<vmem>>, vector<1x18x1x8xbf16>,
    %c0_37 = arith.constant 0 : index
    %c0_38 = arith.constant 0 : index
    %c0_39 = arith.constant 0 : index
    %c0_40 = arith.constant 0 : index
    %16 = vector.load %arg1[%c0_37, %c0_38, %c0_39, %c0_40] : memref<1x16x16x4xbf16, #tpu.memory_space<vmem>>, vector<1x16x16x4xbf16>
    %c0_41 = arith.constant 0 : index
    %c1 = arith.constant 1 : index
    %c1_42 = arith.constant 1 : index
    %c0_43 = arith.constant 0 : index
    %17 = vector.load %arg7[%c0_41, %c1, %c1_42, %c0_43] : memref<1x18x18x4xbf16, #tpu.memory_space<vmem>>, vector<1x16x16x4xbf16>
    tpu.vector_store %arg7[%c0_41, %c1, %c1_42, %c0_43], %16 {strides = array<i32>} : memref<1x18x18x4xbf16, #tpu.memory_space<vmem>>, vector<1x16x16x4xbf16>,
    %c0_44 = arith.constant 0 : index
    %c0_45 = arith.constant 0 : index
    %c0_46 = arith.constant 0 : index
    %c0_47 = arith.constant 0 : index
    %18 = vector.load %arg7[%c0_44, %c0_45, %c0_46, %c0_47] : memref<1x18x18x4xbf16, #tpu.memory_space<vmem>>, vector<1x18x18x4xbf16>
    %19 = vector.extract_strided_slice %18 {offsets = [0, 0, 0, 0], sizes = [1, 16, 16, 4], strides = [1, 1, 1, 1]} : vector<1x18x18x4xbf16> to vector<1x16x16x4xbf16>
    %20 = vector.shape_cast %19 : vector<1x16x16x4xbf16> to vector<256x4xbf16>
    %c0_48 = arith.constant 0 : index
    %c0_49 = arith.constant 0 : index
    %21 = vector.load %arg9[%c0_48, %c0_49] : memref<256x36xbf16, #tpu.memory_space<vmem>>, vector<256x4xbf16>
    tpu.vector_store %arg9[%c0_48, %c0_49], %20 {strides = array<i32>} : memref<256x36xbf16, #tpu.memory_space<vmem>>, vector<256x4xbf16>,
    %22 = vector.extract_strided_slice %18 {offsets = [0, 0, 1, 0], sizes = [1, 16, 16, 4], strides = [1, 1, 1, 1]} : vector<1x18x18x4xbf16> to vector<1x16x16x4xbf16>
    %23 = vector.shape_cast %22 : vector<1x16x16x4xbf16> to vector<256x4xbf16>
    %c0_50 = arith.constant 0 : index
    %c4 = arith.constant 4 : index
    %24 = vector.load %arg9[%c0_50, %c4] : memref<256x36xbf16, #tpu.memory_space<vmem>>, vector<256x4xbf16>
    tpu.vector_store %arg9[%c0_50, %c4], %23 {strides = array<i32>} : memref<256x36xbf16, #tpu.memory_space<vmem>>, vector<256x4xbf16>,
    %25 = vector.extract_strided_slice %18 {offsets = [0, 0, 2, 0], sizes = [1, 16, 16, 4], strides = [1, 1, 1, 1]} : vector<1x18x18x4xbf16> to vector<1x16x16x4xbf16>
    %26 = vector.shape_cast %25 : vector<1x16x16x4xbf16> to vector<256x4xbf16>
    %c0_51 = arith.constant 0 : index
    %c8 = arith.constant 8 : index
    %27 = vector.load %arg9[%c0_51, %c8] : memref<256x36xbf16, #tpu.memory_space<vmem>>, vector<256x4xbf16>
    tpu.vector_store %arg9[%c0_51, %c8], %26 {strides = array<i32>} : memref<256x36xbf16, #tpu.memory_space<vmem>>, vector<256x4xbf16>,
    %28 = vector.extract_strided_slice %18 {offsets = [0, 1, 0, 0], sizes = [1, 16, 16, 4], strides = [1, 1, 1, 1]} : vector<1x18x18x4xbf16> to vector<1x16x16x4xbf16>
    %29 = vector.shape_cast %28 : vector<1x16x16x4xbf16> to vector<256x4xbf16>
    %c0_52 = arith.constant 0 : index
    %c12 = arith.constant 12 : index
    %30 = vector.load %arg9[%c0_52, %c12] : memref<256x36xbf16, #tpu.memory_space<vmem>>, vector<256x4xbf16>
    tpu.vector_store %arg9[%c0_52, %c12], %29 {strides = array<i32>} : memref<256x36xbf16, #tpu.memory_space<vmem>>, vector<256x4xbf16>,
    %31 = vector.extract_strided_slice %18 {offsets = [0, 1, 1, 0], sizes = [1, 16, 16, 4], strides = [1, 1, 1, 1]} : vector<1x18x18x4xbf16> to vector<1x16x16x4xbf16>
    %32 = vector.shape_cast %31 : vector<1x16x16x4xbf16> to vector<256x4xbf16>
    %c0_53 = arith.constant 0 : index
    %c16 = arith.constant 16 : index
    %33 = vector.load %arg9[%c0_53, %c16] : memref<256x36xbf16, #tpu.memory_space<vmem>>, vector<256x4xbf16>
    tpu.vector_store %arg9[%c0_53, %c16], %32 {strides = array<i32>} : memref<256x36xbf16, #tpu.memory_space<vmem>>, vector<256x4xbf16>,
    %34 = vector.extract_strided_slice %18 {offsets = [0, 1, 2, 0], sizes = [1, 16, 16, 4], strides = [1, 1, 1, 1]} : vector<1x18x18x4xbf16> to vector<1x16x16x4xbf16>
    %35 = vector.shape_cast %34 : vector<1x16x16x4xbf16> to vector<256x4xbf16>
    %c0_54 = arith.constant 0 : index
    %c20 = arith.constant 20 : index
    %36 = vector.load %arg9[%c0_54, %c20] : memref<256x36xbf16, #tpu.memory_space<vmem>>, vector<256x4xbf16>
    tpu.vector_store %arg9[%c0_54, %c20], %35 {strides = array<i32>} : memref<256x36xbf16, #tpu.memory_space<vmem>>, vector<256x4xbf16>,
    %37 = vector.extract_strided_slice %18 {offsets = [0, 2, 0, 0], sizes = [1, 16, 16, 4], strides = [1, 1, 1, 1]} : vector<1x18x18x4xbf16> to vector<1x16x16x4xbf16>
    %38 = vector.shape_cast %37 : vector<1x16x16x4xbf16> to vector<256x4xbf16>
    %c0_55 = arith.constant 0 : index
    %c24 = arith.constant 24 : index
    %39 = vector.load %arg9[%c0_55, %c24] : memref<256x36xbf16, #tpu.memory_space<vmem>>, vector<256x4xbf16>
    tpu.vector_store %arg9[%c0_55, %c24], %38 {strides = array<i32>} : memref<256x36xbf16, #tpu.memory_space<vmem>>, vector<256x4xbf16>,
    %40 = vector.extract_strided_slice %18 {offsets = [0, 2, 1, 0], sizes = [1, 16, 16, 4], strides = [1, 1, 1, 1]} : vector<1x18x18x4xbf16> to vector<1x16x16x4xbf16>
    %41 = vector.shape_cast %40 : vector<1x16x16x4xbf16> to vector<256x4xbf16>
    %c0_56 = arith.constant 0 : index
    %c28 = arith.constant 28 : index
    %42 = vector.load %arg9[%c0_56, %c28] : memref<256x36xbf16, #tpu.memory_space<vmem>>, vector<256x4xbf16>
    tpu.vector_store %arg9[%c0_56, %c28], %41 {strides = array<i32>} : memref<256x36xbf16, #tpu.memory_space<vmem>>, vector<256x4xbf16>,
    %43 = vector.extract_strided_slice %18 {offsets = [0, 2, 2, 0], sizes = [1, 16, 16, 4], strides = [1, 1, 1, 1]} : vector<1x18x18x4xbf16> to vector<1x16x16x4xbf16>
    %44 = vector.shape_cast %43 : vector<1x16x16x4xbf16> to vector<256x4xbf16>
    %c0_57 = arith.constant 0 : index
    %c32 = arith.constant 32 : index
    %45 = vector.load %arg9[%c0_57, %c32] : memref<256x36xbf16, #tpu.memory_space<vmem>>, vector<256x4xbf16>
    tpu.vector_store %arg9[%c0_57, %c32], %44 {strides = array<i32>} : memref<256x36xbf16, #tpu.memory_space<vmem>>, vector<256x4xbf16>,
    %c0_58 = arith.constant 0 : index
    %c0_59 = arith.constant 0 : index
    %46 = vector.load %arg9[%c0_58, %c0_59] : memref<256x36xbf16, #tpu.memory_space<vmem>>, vector<256x36xbf16>
    %c0_60 = arith.constant 0 : index
    %c0_61 = arith.constant 0 : index
    %47 = vector.load %arg2[%c0_60, %c0_61] : memref<36x8xbf16, #tpu.memory_space<vmem>>, vector<36x8xbf16>
    %cst_62 = arith.constant dense<0.000000e+00> : vector<256x8xf32>
    %48 = tpu.matmul %46, %47, %cst_62 {dimension_numbers = #tpu.dot_dimension_numbers<[1], [0], [0], [1], [0, 0, 1, 1], [], []>} : vector<256x36xbf16>, vector<36x8xbf16>, vector<256x8xf32> -> vector<256x8xf32>
    %c0_63 = arith.constant 0 : index
    %c0_64 = arith.constant 0 : index
    %49 = vector.load %arg3[%c0_63, %c0_64] : memref<1x8xf32, #tpu.memory_space<vmem>>, vector<1x8xf32>
    %50 = vector.broadcast %49 : vector<1x8xf32> to vector<256x8xf32>
    %51 = arith.addf %48, %50 : vector<256x8xf32>
    %cst_65 = arith.constant 0.000000e+00 : f32
    %52 = vector.broadcast %cst_65 : f32 to vector<256x8xf32>
    %53 = arith.maximumf %51, %52 : vector<256x8xf32>
    %54 = arith.truncf %53 : vector<256x8xf32> to vector<256x8xbf16>
    %55 = vector.shape_cast %54 : vector<256x8xbf16> to vector<1x16x16x8xbf16>
    %c0_66 = arith.constant 0 : index
    %c1_67 = arith.constant 1 : index
    %c1_68 = arith.constant 1 : index
    %c0_69 = arith.constant 0 : index
    %56 = vector.load %arg8[%c0_66, %c1_67, %c1_68, %c0_69] : memref<1x18x18x8xbf16, #tpu.memory_space<vmem>>, vector<1x16x16x8xbf16>
    tpu.vector_store %arg8[%c0_66, %c1_67, %c1_68, %c0_69], %55 {strides = array<i32>} : memref<1x18x18x8xbf16, #tpu.memory_space<vmem>>, vector<1x16x16x8xbf16>,
    %c0_70 = arith.constant 0 : index
    %c0_71 = arith.constant 0 : index
    %c0_72 = arith.constant 0 : index
    %c0_73 = arith.constant 0 : index
    %57 = vector.load %arg1[%c0_70, %c0_71, %c0_72, %c0_73] : memref<1x16x16x4xbf16, #tpu.memory_space<vmem>>, vector<1x16x16x4xbf16>
    %58 = vector.shape_cast %57 : vector<1x16x16x4xbf16> to vector<256x4xbf16>
    %c0_74 = arith.constant 0 : index
    %c0_75 = arith.constant 0 : index
    %59 = vector.load %arg10[%c0_74, %c0_75] : memref<256x76xbf16, #tpu.memory_space<vmem>>, vector<256x4xbf16>
    tpu.vector_store %arg10[%c0_74, %c0_75], %58 {strides = array<i32>} : memref<256x76xbf16, #tpu.memory_space<vmem>>, vector<256x4xbf16>,
    %c0_76 = arith.constant 0 : index
    %c0_77 = arith.constant 0 : index
    %c0_78 = arith.constant 0 : index
    %c0_79 = arith.constant 0 : index
    %60 = vector.load %arg8[%c0_76, %c0_77, %c0_78, %c0_79] : memref<1x18x18x8xbf16, #tpu.memory_space<vmem>>, vector<1x18x18x8xbf16>
    %61 = vector.extract_strided_slice %60 {offsets = [0, 0, 0, 0], sizes = [1, 16, 16, 8], strides = [1, 1, 1, 1]} : vector<1x18x18x8xbf16> to vector<1x16x16x8xbf16>
    %62 = vector.shape_cast %61 : vector<1x16x16x8xbf16> to vector<256x8xbf16>
    %c0_80 = arith.constant 0 : index
    %c4_81 = arith.constant 4 : index
    %63 = vector.load %arg10[%c0_80, %c4_81] : memref<256x76xbf16, #tpu.memory_space<vmem>>, vector<256x8xbf16>
    tpu.vector_store %arg10[%c0_80, %c4_81], %62 {strides = array<i32>} : memref<256x76xbf16, #tpu.memory_space<vmem>>, vector<256x8xbf16>,
    %64 = vector.extract_strided_slice %60 {offsets = [0, 0, 1, 0], sizes = [1, 16, 16, 8], strides = [1, 1, 1, 1]} : vector<1x18x18x8xbf16> to vector<1x16x16x8xbf16>
    %65 = vector.shape_cast %64 : vector<1x16x16x8xbf16> to vector<256x8xbf16>
    %c0_82 = arith.constant 0 : index
    %c12_83 = arith.constant 12 : index
    %66 = vector.load %arg10[%c0_82, %c12_83] : memref<256x76xbf16, #tpu.memory_space<vmem>>, vector<256x8xbf16>
    tpu.vector_store %arg10[%c0_82, %c12_83], %65 {strides = array<i32>} : memref<256x76xbf16, #tpu.memory_space<vmem>>, vector<256x8xbf16>,
    %67 = vector.extract_strided_slice %60 {offsets = [0, 0, 2, 0], sizes = [1, 16, 16, 8], strides = [1, 1, 1, 1]} : vector<1x18x18x8xbf16> to vector<1x16x16x8xbf16>
    %68 = vector.shape_cast %67 : vector<1x16x16x8xbf16> to vector<256x8xbf16>
    %c0_84 = arith.constant 0 : index
    %c20_85 = arith.constant 20 : index
    %69 = vector.load %arg10[%c0_84, %c20_85] : memref<256x76xbf16, #tpu.memory_space<vmem>>, vector<256x8xbf16>
    tpu.vector_store %arg10[%c0_84, %c20_85], %68 {strides = array<i32>} : memref<256x76xbf16, #tpu.memory_space<vmem>>, vector<256x8xbf16>,
    %70 = vector.extract_strided_slice %60 {offsets = [0, 1, 0, 0], sizes = [1, 16, 16, 8], strides = [1, 1, 1, 1]} : vector<1x18x18x8xbf16> to vector<1x16x16x8xbf16>
    %71 = vector.shape_cast %70 : vector<1x16x16x8xbf16> to vector<256x8xbf16>
    %c0_86 = arith.constant 0 : index
    %c28_87 = arith.constant 28 : index
    %72 = vector.load %arg10[%c0_86, %c28_87] : memref<256x76xbf16, #tpu.memory_space<vmem>>, vector<256x8xbf16>
    tpu.vector_store %arg10[%c0_86, %c28_87], %71 {strides = array<i32>} : memref<256x76xbf16, #tpu.memory_space<vmem>>, vector<256x8xbf16>,
    %73 = vector.extract_strided_slice %60 {offsets = [0, 1, 1, 0], sizes = [1, 16, 16, 8], strides = [1, 1, 1, 1]} : vector<1x18x18x8xbf16> to vector<1x16x16x8xbf16>
    %74 = vector.shape_cast %73 : vector<1x16x16x8xbf16> to vector<256x8xbf16>
    %c0_88 = arith.constant 0 : index
    %c36 = arith.constant 36 : index
    %75 = vector.load %arg10[%c0_88, %c36] : memref<256x76xbf16, #tpu.memory_space<vmem>>, vector<256x8xbf16>
    tpu.vector_store %arg10[%c0_88, %c36], %74 {strides = array<i32>} : memref<256x76xbf16, #tpu.memory_space<vmem>>, vector<256x8xbf16>,
    %76 = vector.extract_strided_slice %60 {offsets = [0, 1, 2, 0], sizes = [1, 16, 16, 8], strides = [1, 1, 1, 1]} : vector<1x18x18x8xbf16> to vector<1x16x16x8xbf16>
    %77 = vector.shape_cast %76 : vector<1x16x16x8xbf16> to vector<256x8xbf16>
    %c0_89 = arith.constant 0 : index
    %c44 = arith.constant 44 : index
    %78 = vector.load %arg10[%c0_89, %c44] : memref<256x76xbf16, #tpu.memory_space<vmem>>, vector<256x8xbf16>
    tpu.vector_store %arg10[%c0_89, %c44], %77 {strides = array<i32>} : memref<256x76xbf16, #tpu.memory_space<vmem>>, vector<256x8xbf16>,
    %79 = vector.extract_strided_slice %60 {offsets = [0, 2, 0, 0], sizes = [1, 16, 16, 8], strides = [1, 1, 1, 1]} : vector<1x18x18x8xbf16> to vector<1x16x16x8xbf16>
    %80 = vector.shape_cast %79 : vector<1x16x16x8xbf16> to vector<256x8xbf16>
    %c0_90 = arith.constant 0 : index
    %c52 = arith.constant 52 : index
    %81 = vector.load %arg10[%c0_90, %c52] : memref<256x76xbf16, #tpu.memory_space<vmem>>, vector<256x8xbf16>
    tpu.vector_store %arg10[%c0_90, %c52], %80 {strides = array<i32>} : memref<256x76xbf16, #tpu.memory_space<vmem>>, vector<256x8xbf16>,
    %82 = vector.extract_strided_slice %60 {offsets = [0, 2, 1, 0], sizes = [1, 16, 16, 8], strides = [1, 1, 1, 1]} : vector<1x18x18x8xbf16> to vector<1x16x16x8xbf16>
    %83 = vector.shape_cast %82 : vector<1x16x16x8xbf16> to vector<256x8xbf16>
    %c0_91 = arith.constant 0 : index
    %c60 = arith.constant 60 : index
    %84 = vector.load %arg10[%c0_91, %c60] : memref<256x76xbf16, #tpu.memory_space<vmem>>, vector<256x8xbf16>
    tpu.vector_store %arg10[%c0_91, %c60], %83 {strides = array<i32>} : memref<256x76xbf16, #tpu.memory_space<vmem>>, vector<256x8xbf16>,
    %85 = vector.extract_strided_slice %60 {offsets = [0, 2, 2, 0], sizes = [1, 16, 16, 8], strides = [1, 1, 1, 1]} : vector<1x18x18x8xbf16> to vector<1x16x16x8xbf16>
    %86 = vector.shape_cast %85 : vector<1x16x16x8xbf16> to vector<256x8xbf16>
    %c0_92 = arith.constant 0 : index
    %c68 = arith.constant 68 : index
    %87 = vector.load %arg10[%c0_92, %c68] : memref<256x76xbf16, #tpu.memory_space<vmem>>, vector<256x8xbf16>
    tpu.vector_store %arg10[%c0_92, %c68], %86 {strides = array<i32>} : memref<256x76xbf16, #tpu.memory_space<vmem>>, vector<256x8xbf16>,
    %c0_93 = arith.constant 0 : index
    %c0_94 = arith.constant 0 : index
    %88 = vector.load %arg10[%c0_93, %c0_94] : memref<256x76xbf16, #tpu.memory_space<vmem>>, vector<256x76xbf16>
    %c0_95 = arith.constant 0 : index
    %c0_96 = arith.constant 0 : index
    %89 = vector.load %arg4[%c0_95, %c0_96] : memref<76x128xbf16, #tpu.memory_space<vmem>>, vector<76x128xbf16>
    %cst_97 = arith.constant dense<0.000000e+00> : vector<256x128xf32>
    %90 = tpu.matmul %88, %89, %cst_97 {dimension_numbers = #tpu.dot_dimension_numbers<[1], [0], [0], [1], [0, 0, 1, 1], [], []>} : vector<256x76xbf16>, vector<76x128xbf16>, vector<256x128xf32> -> vector<256x128xf32>
    %c0_98 = arith.constant 0 : index
    %c0_99 = arith.constant 0 : index
    %91 = vector.load %arg5[%c0_98, %c0_99] : memref<1x128xf32, #tpu.memory_space<vmem>>, vector<1x128xf32>
    %92 = vector.broadcast %91 : vector<1x128xf32> to vector<256x128xf32>
    %93 = arith.addf %90, %92 : vector<256x128xf32>
    %cst_100 = arith.constant 0.000000e+00 : f32
    %94 = vector.broadcast %cst_100 : f32 to vector<256x128xf32>
    %95 = arith.maximumf %93, %94 : vector<256x128xf32>
    %96 = tpu.transpose %95, [1, 0] : vector<256x128xf32> -> vector<128x256xf32>
    %97 = vector.extract_strided_slice %96 {offsets = [0, 0], sizes = [8, 256], strides = [1, 1]} : vector<128x256xf32> to vector<8x256xf32>
    %c0_101 = arith.constant 0 : index
    %c0_102 = arith.constant 0 : index
    %c0_103 = arith.constant 0 : index
    %98 = vector.load %arg6[%c0_101, %c0_102, %c0_103] : memref<1x8x256xf32, #tpu.memory_space<vmem>>, vector<1x8x256xf32>
    %99 = vector.shape_cast %98 : vector<1x8x256xf32> to vector<8x256xf32>
    %100 = vector.shape_cast %97 : vector<8x256xf32> to vector<1x8x256xf32>
    tpu.vector_store %arg6[%c0_101, %c0_102, %c0_103], %100 {strides = array<i32>} : memref<1x8x256xf32, #tpu.memory_space<vmem>>, vector<1x8x256xf32>,
    return
  }
  func.func @transform_0(%arg0: i32) -> (i32, i32, i32, i32) {
    %c0_i32 = arith.constant 0 : i32
    %c0_i32_0 = arith.constant 0 : i32
    %c0_i32_1 = arith.constant 0 : i32
    %c0_i32_2 = arith.constant 0 : i32
    return %arg0, %c0_i32, %c0_i32_0, %c0_i32_1 : i32, i32, i32, i32
  }
  func.func @transform_1(%arg0: i32) -> (i32, i32) {
    %c0_i32 = arith.constant 0 : i32
    %c0_i32_0 = arith.constant 0 : i32
    %c0_i32_1 = arith.constant 0 : i32
    return %c0_i32, %c0_i32_0 : i32, i32
  }
  func.func @transform_2(%arg0: i32) -> (i32, i32) {
    %c0_i32 = arith.constant 0 : i32
    %c0_i32_0 = arith.constant 0 : i32
    %c0_i32_1 = arith.constant 0 : i32
    return %c0_i32, %c0_i32_0 : i32, i32
  }
  func.func @transform_3(%arg0: i32) -> (i32, i32) {
    %c0_i32 = arith.constant 0 : i32
    %c0_i32_0 = arith.constant 0 : i32
    %c0_i32_1 = arith.constant 0 : i32
    return %c0_i32, %c0_i32_0 : i32, i32
  }
  func.func @transform_4(%arg0: i32) -> (i32, i32) {
    %c0_i32 = arith.constant 0 : i32
    %c0_i32_0 = arith.constant 0 : i32
    %c0_i32_1 = arith.constant 0 : i32
    return %c0_i32, %c0_i32_0 : i32, i32
  }
  func.func @transform_5(%arg0: i32) -> (i32, i32, i32) {
    %c0_i32 = arith.constant 0 : i32
    %c0_i32_0 = arith.constant 0 : i32
    %c0_i32_1 = arith.constant 0 : i32
    return %arg0, %c0_i32, %c0_i32_0 : i32, i32, i32
  }
}

</mosaic_0001>

<bundles_post_ra>
// kernel: tpu_custom_call.1
= control target key start
LH: loop header
LB: loop body
LE: loop exit
PB: predicated region body
PF: predicated region fallthrough
CT: control target
= control target key end

     0   :  { %10 = vsyncpa [#allocation7], 0  ;;  %s8540_s0 = inlined_call_operand.vmem [shape: bf16[2,16,16,4], index: 0, kind: input, shape index: {}]   ;;  %s8541_s1 = inlined_call_operand.vmem [shape: bf16[36,8], index: 1, kind: input, shape index: {}]   ;;  %s8542_s2 = inlined_call_operand.vmem [shape: f32[1,8], index: 2, kind: input, shape index: {}]   ;;  %s8543_s3 = inlined_call_operand.vmem [shape: bf16[76,128], index: 3, kind: input, shape index: {}]   ;;  %s8544_s4 = inlined_call_operand.vmem [shape: f32[1,128], index: 4, kind: input, shape index: {}]   ;;  %s8545_s5 = inlined_call_operand.hbm [shape: f32[2,8,256], index: 5, kind: output, shape index: {}]  }
   0x1   :  { %12 = vsyncpa [#allocation7 + $0x1], 0  ;;  %s5771_s18 = smov 0   ;;  %s5773_s19 = smov 0  }
   0x2   :  { %s5775_s20 = smov 0   ;;  %s5777_s21 = smov 0  }
   0x3 LB: > { %s5792_s22 = sadd.s32 4294967295, %s5724_s21   ;;  %s5147_s23 = sadd.s32 4294967294, %s5724_s21   ;;  %s5724_s21 = sphi %s5777_s21, %s8635_s21   ;;  %s5720_s20 = sphi %s5775_s20, %s8634_s20   ;;  %s5716_s19 = sphi %s5773_s19, %s8633_s19   ;;  %s5712_s18 = sphi %s5771_s18, %s8632_s18  }
   0x4   : > { %s5796_s24 = sadd.s32 1, %s5724_s21   ;;  %s135_s25 = sadd.s32 1, %s5720_s20 }
   0x5   : > { %s132_s26 = ssub.s32 %s5724_s21, %s5796_s24  ;;  %p145_p0 = scmp.ne.s32.totalorder %s5720_s20, %s5716_s19 }
   0x6   : > { %p133_p1 = scmp.eq.s32.totalorder %s132_s26, 0  ;;  %p146_p2 = scmp.eq.s32.totalorder %s5792_s22, 1 }
   0x7   : > { %p151_p3 = scmp.ne.s32.totalorder %s5716_s19, %s5712_s18  ;;  %p152_p4 = scmp.eq.s32.totalorder %s5147_s23, 1 }
   0x8   : > { %s5807_s27 = scalar_select %p133_p1, %s5720_s20, %s135_s25  }
   0x9   : > { %p5809_p5 = por %p146_p2, %p145_p0  ;;  %p5813_p6 = por %p152_p4, %p151_p3 }
   0xa   : > { %p5150_p7 = scmp.ge.s32.totalorder %s5724_s21, 1  ;;  %p190_p8 = scmp.lt.s32.totalorder %s5724_s21, 3 }
   0xc   : > { %p191_p9 = pnand %p5150_p7, %p190_p8 }
   0xd   : > { %p218_p10 = scmp.lt.s32.totalorder (!%p191_p9), %s5792_s22, 1  ;;  %vm224_vm0 = vcmask (!%p191_p9), 27648   ;;  %vm227_vm1 = vcmask (!%p191_p9), 24576   ;;  %vm234_vm2 = vsmask.f32 (!%p191_p9), 256  ;;  %vm349_vm3 = vcmask (!%p191_p9), 57344  }
   0xe   : > { %194 = sbr.rel (%p191_p9) target bundleno = 1171 (0x493), region = 40  ;;  %vm5822_vm4 = vmand (!%p191_p9), %vm227_vm1, %vm234_vm2  ;;  %v239_v1 = vld [vmem:[#allocation2 + $0xc] sm:$0x1] (!%p191_p9)  ;;  %vm8548_vm5 = vsmask.f32 (!%p191_p9), 7938  ;;  %v8546_v5 = vmov (!%p191_p9), 0  }
   0xf   : > { %v240_v2 = vsel (!%p191_p9), %vm5822_vm4, 0, %v239_v1  ;;  %v242_v3 = vld [vmem:[#allocation2 + $0x18] sm:$0x1] (!%p191_p9)  ;;  %225 = vst.msk [vmem:[#allocation2] sm:$0xf] (!%p191_p9), %vm224_vm0, %v8546_v5  ;;  %vm5854_vm6 = vmand (!%p191_p9), %vm227_vm1, %vm8548_vm5  ;;  %vm1618_vm10 = vcmask (!%p191_p9), 1042432  }
  0x10   : > { %241 = vst [vmem:[#allocation2 + $0xc] sm:$0x1] (!%p191_p9), %v240_v2  ;;  %v243_v4 = vsel (!%p191_p9), %vm5822_vm4, 0, %v242_v3  ;;  %226 = vst.msk [vmem:[#allocation2 + $0x4] sm:$0xf] (!%p191_p9), %vm224_vm0, %v8546_v5  ;;  %vm1619_vm11 = vcmask (!%p191_p9), 1046532  }
  0x11   : > { %228 = vst.msk [vmem:[#allocation2 + $0x8] sm:$0x1] (!%p191_p9), %vm227_vm1, %v8546_v5  ;;  %232 = vst.msk [vmem:[#allocation2 + $0xd4] sm:$0x1] (!%p191_p9), %vm227_vm1, %v8546_v5  ;;  %vm498_vm7 = vsmask.f32 (!%p191_p9), 4368 }
  0x12   : > { %230 = vst.msk [vmem:[#allocation2 + $0xcc] sm:$0xf] (!%p191_p9), %vm224_vm0, %v8546_v5  ;;  %231 = vst.msk [vmem:[#allocation2 + $0xd0] sm:$0xf] (!%p191_p9), %vm224_vm0, %v8546_v5  ;;  %v295_v7 = vld [vmem:[#allocation2 + $0x14] sm:$0x1] (!%p191_p9) }
  0x13   : > { %350 = vst.msk [vmem:[#allocation3 + $0x8] sm:$0x1] (!%p191_p9), %vm349_vm3, %v8546_v5  ;;  %354 = vst.msk [vmem:[#allocation3 + $0xd4] sm:$0x1] (!%p191_p9), %vm349_vm3, %v8546_v5  ;;  %v245_v8 = vld [vmem:[#allocation2 + $0x24] sm:$0x1] (!%p191_p9) }
  0x14   : > { %244 = vst [vmem:[#allocation2 + $0x18] sm:$0x1] (!%p191_p9), %v243_v4  ;;  %vm5864_vm8 = vmor (!%p191_p9), %vm234_vm2, %vm498_vm7  ;;  %v296_v24 = vsel (!%p191_p9), %vm5854_vm6, 0, %v295_v7  ;;  %v246_v25 = vsel (!%p191_p9), %vm5822_vm4, 0, %v245_v8  ;;  %v298_v47 = vld [vmem:[#allocation2 + $0x20] sm:$0x1] (!%p191_p9) }
  0x15   : > { %s219_s30 = scalar_select %p218_p10, %s5792_s22, 1  ;;  %vm5876_vm9 = vmand %vm224_vm0, %vm8548_vm5  ;;  %297 = vst [vmem:[#allocation2 + $0x14] sm:$0x1] %v296_v24  ;;  %v301_v52 = vld [vmem:[#allocation2 + $0x2c] sm:$0x1]  ;;  %vm8549_vm12 = vcmask 31744  }
  0x16   : > { %v236_v30 = vld [vmem:[#allocation2] sm:$0x1]  ;;  %247 = vst [vmem:[#allocation2 + $0x24] sm:$0x1] %v246_v25  ;;  %v248_v53 = vld [vmem:[#allocation2 + $0x30] sm:$0x1]  ;;  %vm5950_vm15 = vmor %vm1618_vm10, %vm1619_vm11 }
  0x17   : > { %s5393_s6 = sshll.u32 %s219_s30, 7  ;;  %v823_v27 = vld [vmem:[#allocation2 + $0xc] sm:$0xf]  ;;  %v5886_v41 = vld [vmem:[#allocation2 + $0x4] sm:$0xf]  ;;  %v237_v45 = vsel %vm5822_vm4, 0, %v236_v30 }
  0x18   : > { %s5850_s9 = scalar_lea.vmem %s8540_s0, %s5393_s6  ;;  %v292_v36 = vld [vmem:[#allocation2 + $0x8] sm:$0x1]  ;;  %238 = vst [vmem:[#allocation2] sm:$0x1] %v237_v45  ;;  %v1623_v50 = vrot.slane %v5886_v41, 5  ;;  %v1115_v51 = vshll.u32 %v5886_v41, 16 }
  0x19   : > { %v466_v9 = vld [vmem:[%s5850_s9] sm:$0xf]  ;;  %v467_v10 = vld [vmem:[%s5850_s9 + $0x4] sm:$0xf]  ;;  %v468_v11 = vld [vmem:[%s5850_s9 + $0x8] sm:$0xf] }
  0x1a   : > { %v501_v12 = vshrl.u32 %v466_v9, 16  ;;  %v504_v13 = vshll.u32 %v466_v9, 16  ;;  %v509_v14 = vshrl.u32 %v467_v10, 16  ;;  %v512_v15 = vshll.u32 %v467_v10, 16  ;;  %v469_v16 = vld [vmem:[%s5850_s9 + $0xc] sm:$0xf] }
  0x1b   : > { %v518_v17 = vshrl.u32 %v468_v11, 16  ;;  %v521_v18 = vshll.u32 %v468_v11, 16  ;;  %v526_v19 = vshrl.u32 %v469_v16, 16  ;;  %v529_v20 = vshll.u32 %v469_v16, 16  ;;  %v470_v31 = vld [vmem:[%s5850_s9 + $0x10] sm:$0xf] }
  0x1c   : > { %v503_v22 = vrot.slane %v501_v12, 7  ;;  %v5868_v23 = vrot.slane %v509_v14, 7  ;;  %v830_v35 = vld [vmem:[#allocation2 + $0x18] sm:$0xf]  ;;  %v471_v42 = vld [vmem:[%s5850_s9 + $0x14] sm:$0xf] }
  0x1d   : > { %v520_v28 = vrot.slane %v518_v17, 7  ;;  %v5880_v29 = vrot.slane %v526_v19, 7  ;;  %v293_v46 = vsel %vm5854_vm6, 0, %v292_v36  ;;  %vm1102_vm13 = vsmask.f32 3328  ;;  %s5727_s10 = smov 12  }
  0x1e   : > { %v506_v32 = vor.u32 %v504_v13, %v503_v22  ;;  %v507_v33 = vrot.slane %v503_v22, 4  ;;  %v514_v34 = vor.u32 %v512_v15, %v5868_v23  ;;  %v516_v37 = vrot.slane %v5868_v23, 4  ;;  %294 = vst [vmem:[#allocation2 + $0x8] sm:$0x1] %v293_v46  ;;  %v5907_v58 = vld [vmem:[%s5850_s9 + $0x18] sm:$0xf] }
  0x1f   : > { %v523_v38 = vor.u32 %v521_v18, %v520_v28  ;;  %v524_v39 = vrot.slane %v520_v28, 4  ;;  %v531_v40 = vor.u32 %v529_v20, %v5880_v29  ;;  %vm1103_vm14 = vsmask.f32 7440  ;;  %v5915_v63 = vld [vmem:[%s5850_s9 + $0x1c] sm:$0xf]  ;;  %s5728_s11 = smov 24  }
  0x20   : > { %v515_v43 = vsel %vm5864_vm8, %v507_v33, %v514_v34  ;;  %v824_v44 = vsel %vm5876_vm9, %v506_v32, %v823_v27  ;;  %v1119_v54 = vshrl.u32 %v5886_v41, 16  ;;  %v535_v55 = vshrl.u32 %v470_v31, 16  ;;  %v827_v2 = vld [vmem:[#allocation2 + $0x14] sm:$0x1]  ;;  %v837_v10 = vld [vmem:[#allocation2 + $0x24] sm:$0xf]  ;;  %vm5979_vm1 = vmor %vm1102_vm13, %vm1103_vm14 }
  0x21   : > { %825 = vst [vmem:[#allocation2 + $0xc] sm:$0xf] %v824_v44  ;;  %826 = vst.msk [vmem:[#allocation2 + $0x10] sm:$0xf] %vm224_vm0, %v515_v43  ;;  %v532_v48 = vsel %vm5864_vm8, %v524_v39, %v531_v40  ;;  %v831_v49 = vsel %vm5876_vm9, %v523_v38, %v830_v35  ;;  %v538_v56 = vshll.u32 %v470_v31, 16  ;;  %v543_v57 = vshrl.u32 %v471_v42, 16 }
  0x22   : > { %832 = vst [vmem:[#allocation2 + $0x18] sm:$0xf] %v831_v49  ;;  %833 = vst.msk [vmem:[#allocation2 + $0x1c] sm:$0xf] %vm224_vm0, %v532_v48  ;;  %v533_v59 = vrot.slane %v5880_v29, 4  ;;  %v5910_v60 = vrot.slane %v1115_v51, 5  ;;  %v828_v9 = vsel %vm5822_vm4, %v516_v37, %v827_v2 }
  0x23   : > { %v546_v61 = vshll.u32 %v471_v42, 16  ;;  %v299_v62 = vsel %vm5854_vm6, 0, %v298_v47  ;;  %v1121_v1 = vrot.slane %v1119_v54, 4  ;;  %v537_v3 = vrot.slane %v535_v55, 7  ;;  %829 = vst [vmem:[#allocation2 + $0x14] sm:$0x1] %v828_v9 }
  0x24   : > { %v5917_v4 = vrot.slane %v543_v57, 7  ;;  %300 = vst [vmem:[#allocation2 + $0x20] sm:$0x1] %v299_v62  ;;  %v302_v7 = vsel %vm5854_vm6, 0, %v301_v52  ;;  %v1625_v8 = vrot.slane %v1623_v50, 4  ;;  %v249_v11 = vsel %vm5822_vm4, 0, %v248_v53 }
  0x25   : > { %303 = vst [vmem:[#allocation2 + $0x2c] sm:$0x1] %v302_v7  ;;  %v552_v12 = vshrl.u32 %v5907_v58, 16  ;;  %v540_v13 = vor.u32 %v538_v56, %v537_v3  ;;  %v541_v14 = vrot.slane %v537_v3, 4  ;;  %250 = vst [vmem:[#allocation2 + $0x30] sm:$0x1] %v249_v11  ;;  %v1122_v25 = vor.u32 %v1121_v1, %v5910_v60 }
  0x26   : > { %v548_v15 = vor.u32 %v546_v61, %v5917_v4  ;;  %v555_v16 = vshll.u32 %v5907_v58, 16  ;;  %v550_v17 = vrot.slane %v5917_v4, 4  ;;  %v560_v19 = vshrl.u32 %v5915_v63, 16  ;;  %v5937_v24 = vld [vmem:[#allocation2] sm:$0xf]  ;;  %s5729_s12 = smov 8  }
  0x27   : > { %v5931_v18 = vrot.slane %v552_v12, 7  ;;  %v563_v20 = vshll.u32 %v5915_v63, 16  ;;  %v838_v28 = vsel %vm5876_vm9, %v540_v13, %v837_v10  ;;  %v5186_v40 = vrot.slane %v5937_v24, 9  ;;  %v937_v46 = vld [vmem:[#allocation2 + $0x8] sm:$0x1]  ;;  %s5730_s13 = smov 4  }
  0x28   : > { %v938_v22 = vld [vmem:[#allocation2 + $0xc] sm:$0xf]  ;;  %v5935_v23 = vld [vmem:[#allocation2 + $0x10] sm:$0xf]  ;;  %v549_v27 = vsel %vm5864_vm8, %v541_v14, %v548_v15  ;;  %839 = vst [vmem:[#allocation2 + $0x24] sm:$0xf] %v838_v28 }
  0x29   : > { %v5155_v30 = vcombine.low %v938_v22, %v5935_v23  ;;  %v1130_v31 = vshrl.u32 %v938_v22, 16  ;;  %v1133_v32 = vshll.u32 %v938_v22, 16  ;;  %v1139_v33 = vshll.u32 %v5935_v23, 16  ;;  %v5946_v34 = vld [vmem:[#allocation2 + $0x18] sm:$0xf]  ;;  %s5731_s14 = smov 20  }
  0x2a   : > { %840 = vst.msk [vmem:[#allocation2 + $0x28] sm:$0xf] %vm224_vm0, %v549_v27  ;;  %v1143_v36 = vshrl.u32 %v5935_v23, 16  ;;  %v5956_v37 = vld [vmem:[#allocation2 + $0x1c] sm:$0xf]  ;;  %v1154_v38 = vshrl.u32 %v5946_v34, 16  ;;  %v1624_v49 = vsel %vm5950_vm15, %v5186_v40, %v1623_v50 }
  0x2b   : > { %v1157_v39 = vshll.u32 %v5946_v34, 16  ;;  %v5961_v42 = vrot.slane %v1130_v31, 4  ;;  %v5963_v43 = vrot.slane %v1133_v32, 5  ;;  %1851 = vrot.lane.b32.xlu0 %v5155_v30, %s5727_s10  ;;  %1087 = vst.msk [vmem:[#allocation4 + $0x8] sm:$0xff] %vm8549_vm12, %v5155_v30  ;;  %v5156_v44 = vcombine.low %v5946_v34, %v5956_v37  ;;  %v834_v52 = vld [vmem:[#allocation2 + $0x20] sm:$0x1] }
  0x2c   : > { %v1167_v45 = vshrl.u32 %v5956_v37, 16  ;;  %v5970_v47 = vrot.slane %v1143_v36, 4  ;;  %v1125_v48 = vshll.u32 %v937_v46, 16  ;;  %v1626_v51 = vrot.slane %v937_v46, 5  ;;  %v940_v57 = vld [vmem:[#allocation2 + $0x14] sm:$0x1] }
  0x2d   : > { %1088 = vst.msk [vmem:[#allocation4 + $0x10] sm:$0xff] %vm8549_vm12, %v5156_v44  ;;  %v1106_v54 = vshrl.u32 %v5937_v24, 16  ;;  %v1109_v55 = vshll.u32 %v5937_v24, 16  ;;  %v1123_v56 = vrot.slane %v1122_v25, 4  ;;  %v5187_v61 = vrot.slane %v938_v22, 9  ;;  %s5732_s17 = smov 32  }
  0x2e   : > { %v1627_v50 = vsel %vm5950_vm15, %v1625_v8, %v1626_v51  ;;  %v1127_v62 = vrot.slane %v1125_v48, 5  ;;  %v1630_v1 = vrot.slane %v5935_v23, 5  ;;  %v1633_v2 = vrot.slane %v940_v57, 5  ;;  %v841_v11 = vld [vmem:[#allocation2 + $0x2c] sm:$0x1]  ;;  %s5733_s26 = smov 16  }
  0x2f   : > { %2089 = vrot.lane.b32.xlu0 %v5156_v44, %s5728_s11  ;;  %v5202_v3 = vcombine.low %v1624_v49, %v1627_v50  ;;  %v1108_v7 = vrot.slane %v1106_v54, 4  ;;  %v1111_v9 = vrot.slane %v1109_v55, 5  ;;  %v835_v10 = vsel %vm5822_vm4, %v533_v59, %v834_v52  ;;  %v944_v14 = vld [vmem:[#allocation2 + $0x24] sm:$0xf]  ;;  %s5734_s30 = smov 28   ;;  %s5736_s15 = smov 44  }
  0x30   : > { %v1128_v12 = vsel %vm5979_vm1, %v1123_v56, %v1127_v62  ;;  %v1631_v8 = vsel %vm5950_vm15, %v5187_v61, %v1630_v1  ;;  %v1632_v13 = vrot.slane %v1630_v1, 4  ;;  %836 = vst [vmem:[#allocation2 + $0x20] sm:$0x1] %v835_v10  ;;  %v5188_v22 = vrot.slane %v5946_v34, 9  ;;  %s5737_s16 = smov 68   ;;  %s5739_s23 = smov 36  }
  0x31   : > { %v5997_v15 = vld [vmem:[#allocation2 + $0x28] sm:$0xf]  ;;  %1781 = vrot.lane.b32.xlu1 %v5202_v3, %s5729_s12  ;;  %v1112_v29 = vor.u32 %v1111_v9, %v1108_v7  ;;  %v1178_v25 = vshrl.u32 %v944_v14, 16  ;;  %v1181_v27 = vshll.u32 %v944_v14, 16  ;;  %v1637_v31 = vrot.slane %v5956_v37, 5 }
  0x32   : > { %v6002_v59 = vcombine.low %v944_v14, %v5997_v15  ;;  %v1634_v28 = vsel %vm5950_vm15, %v1632_v13, %v1633_v2  ;;  %v1191_v30 = vshrl.u32 %v5997_v15, 16  ;;  %v842_v32 = vsel %vm5822_vm4, %v550_v17, %v841_v11 }
  0x33   : > { %v1113_v36 = vrot.slane %v1112_v29, 4  ;;  %v5203_v40 = vcombine.low %v1631_v8, %v1634_v28  ;;  %843 = vst [vmem:[#allocation2 + $0x2c] sm:$0x1] %v842_v32  ;;  %v5189_v46 = vrot.slane %v944_v14, 9  ;;  %v1644_v48 = vrot.slane %v5997_v15, 5 }
  0x34   : > { %1089 = vst.msk [vmem:[#allocation4 + $0x18] sm:$0xff] %vm8549_vm12, %v6002_v59  ;;  %v1638_v49 = vsel %vm5950_vm15, %v5188_v22, %v1637_v31  ;;  %v1639_v51 = vrot.slane %v1637_v31, 4  ;;  %v1136_v52 = vor.u32 %v5963_v43, %v5961_v42  ;;  %v1141_v4 = vrot.slane %v1139_v33, 5  ;;  %v304_v14 = vld [vmem:[#allocation2 + $0x38] sm:$0x1] }
  0x35   : > { %v1118_v17 = vsel %vm5979_vm1, %v1113_v36, %v5910_v60  ;;  %1853 = vrot.lane.b32.xlu1 %v5156_v44, %s5727_s10  ;;  %v1645_v54 = vsel %vm5950_vm15, %v5189_v46, %v1644_v48  ;;  %v1646_v55 = vrot.slane %v1644_v48, 4  ;;  %v1149_v56 = vshll.u32 %v940_v57, 16  ;;  %v844_v28 = vld [vmem:[#allocation2 + $0x30] sm:$0xf]  ;;  %v251_v31 = vld [vmem:[#allocation2 + $0x3c] sm:$0x1] }
  0x36   : > { %v5170_v61 = vcombine.low %v1118_v17, %v1128_v12  ;;  %v1137_v50 = vrot.slane %v1136_v52, 4  ;;  %v1146_v62 = vor.u32 %v5970_v47, %v1141_v4  ;;  %v1156_v42 = vrot.slane %v1154_v38, 4  ;;  %v474_v48 = vld [vmem:[%s5850_s9 + $0x20] sm:$0xf] }
  0x37   : > { %v943_v23 = vld [vmem:[#allocation2 + $0x20] sm:$0x1]  ;;  %v1151_v33 = vrot.slane %v1149_v56, 5  ;;  %v1159_v43 = vrot.slane %v1157_v39, 5  ;;  %v1163_v60 = vshll.u32 %v5956_v37, 16  ;;  %v1169_v44 = vrot.slane %v1167_v45, 4 }
  0x38   : > { %1537 = vrot.lane.b32.xlu0 %v5170_v61, %s5730_s13  ;;  %v1640_v57 = vrot.slane %v943_v23, 5  ;;  %v1142_v47 = vsel %vm5979_vm1, %v1137_v50, %v1141_v4  ;;  %v1147_v1 = vrot.slane %v1146_v62, 4  ;;  %v1173_v2 = vshll.u32 %v943_v23, 16  ;;  %v475_v4 = vld [vmem:[%s5850_s9 + $0x24] sm:$0xf] }
  0x39   : > { %2091 = vrot.lane.b32.xlu1 %v6002_v59, %s5728_s11  ;;  %v1160_v38 = vor.u32 %v1159_v43, %v1156_v42  ;;  %v1165_v34 = vrot.slane %v1163_v60, 5  ;;  %v1180_v39 = vrot.slane %v1178_v25, 4  ;;  %v1183_v3 = vrot.slane %v1181_v27, 5  ;;  %v476_v62 = vld [vmem:[%s5850_s9 + $0x28] sm:$0xf] }
  0x3a   : > { %v1641_v37 = vsel %vm5950_vm15, %v1639_v51, %v1640_v57  ;;  %v946_v45 = vld [vmem:[#allocation2 + $0x2c] sm:$0x1]  ;;  %v1152_v7 = vsel %vm5979_vm1, %v1147_v1, %v1151_v33  ;;  %v1175_v9 = vrot.slane %v1173_v2, 5  ;;  %v1187_v10 = vshll.u32 %v5997_v15, 16  ;;  %v310_v2 = vld [vmem:[#allocation2 + $0x50] sm:$0x1] }
  0x3b   : > { %v6045_v11 = vcombine.low %v1638_v49, %v1641_v37  ;;  %v1647_v12 = vrot.slane %v946_v45, 5  ;;  %v6047_v8 = vcombine.low %v1142_v47, %v1152_v7  ;;  %v1161_v13 = vrot.slane %v1160_v38, 4  ;;  %v477_v60 = vld [vmem:[%s5850_s9 + $0x2c] sm:$0xf] }
  0x3c   : > { %2019 = vrot.lane.b32.xlu0 %v5203_v40, %s5731_s14  ;;  %v1170_v22 = vor.u32 %v1169_v44, %v1165_v34  ;;  %v1184_v29 = vor.u32 %v1183_v3, %v1180_v39  ;;  %v1189_v25 = vrot.slane %v1187_v10, 5  ;;  %v1193_v27 = vrot.slane %v1191_v30, 4  ;;  %v257_v39 = vld [vmem:[#allocation2 + $0x54] sm:$0x1]  ;;  %v5613_v3 = vld [vmem:[%s8541_s1 + $0x8] sm:$0xff]  }
  0x3d   : > { %1783 = vrot.lane.b32.xlu1 %v5203_v40, %s5729_s12  ;;  %v1648_v15 = vsel %vm5950_vm15, %v1646_v55, %v1647_v12  ;;  %v1166_v32 = vsel %vm5979_vm1, %v1161_v13, %v1165_v34  ;;  %v1197_v36 = vshll.u32 %v946_v45, 16  ;;  %v557_v46 = vor.u32 %v555_v16, %v5931_v18  ;;  %v307_v40 = vld [vmem:[#allocation2 + $0x44] sm:$0x1]  ;;  %v254_v16 = vld [vmem:[#allocation2 + $0x48] sm:$0x1] }
  0x3e   : > { %v6059_v49 = vcombine.low %v1645_v54, %v1648_v15  ;;  %v1171_v51 = vrot.slane %v1170_v22, 4  ;;  %v1185_v30 = vrot.slane %v1184_v29, 4  ;;  %v1194_v52 = vor.u32 %v1193_v27, %v1189_v25  ;;  %v5611_v54 = vld [vmem:[%s8541_s1] sm:$0xff]   ;;  %v478_v10 = vld [vmem:[%s5850_s9 + $0x30] sm:$0xf] }
  0x3f   : > { %v1199_v17 = vrot.slane %v1197_v36, 5  ;;  %v558_v55 = vrot.slane %v5931_v18, 4  ;;  %v6065_v56 = vrot.slane %v560_v19, 7  ;;  %v845_v58 = vsel %vm5876_vm9, %v557_v46, %v844_v28  ;;  %5467 = vmatprep.subr.bf16.mxu0 %v5611_v54 }
  0x40   : > { %2257 = vrot.lane.b32.xlu0 %v6045_v11, %s5732_s17  ;;  %v1176_v18 = vsel %vm5979_vm1, %v1171_v51, %v1175_v9  ;;  %v1190_v19 = vsel %vm5979_vm1, %v1185_v30, %v1189_v25  ;;  %v1195_v61 = vrot.slane %v1194_v52, 4  ;;  %846 = vst [vmem:[#allocation2 + $0x30] sm:$0xf] %v845_v58  ;;  %v305_v50 = vsel %vm5854_vm6, 0, %v304_v14  ;;  %5468 = vmatpush3.bf16.msra.mxu0 %v5611_v54 }
  0x41   : > { %2021 = vrot.lane.b32.xlu1 %v6045_v11, %s5731_s14  ;;  %v6083_v42 = vcombine.low %v1166_v32, %v1176_v18  ;;  %v565_v23 = vor.u32 %v563_v20, %v6065_v56  ;;  %v567_v33 = vrot.slane %v6065_v56, 4  ;;  %306 = vst [vmem:[#allocation2 + $0x38] sm:$0x1] %v305_v50  ;;  %v252_v43 = vsel %vm5822_vm4, 0, %v251_v31  ;;  %5469 = vmatprep.subr.bf16.mxu0 %v5613_v3 }
  0x42   : > { %v1200_v44 = vsel %vm5979_vm1, %v1195_v61, %v1199_v17  ;;  %253 = vst [vmem:[#allocation2 + $0x3c] sm:$0x1] %v252_v43  ;;  %v569_v57 = vshrl.u32 %v474_v48, 16  ;;  %v572_v47 = vshll.u32 %v474_v48, 16  ;;  %v577_v1 = vshrl.u32 %v475_v4, 16 }
  0x43   : > { %v6094_v63 = vcombine.low %v1190_v19, %v1200_v44  ;;  %v566_v20 = vsel %vm5864_vm8, %v558_v55, %v565_v23  ;;  %v580_v38 = vshll.u32 %v475_v4, 16  ;;  %v308_v34 = vsel %vm5854_vm6, 0, %v307_v40 }
  0x44   : > { %2259 = vrot.lane.b32.xlu0 %v6059_v49, %s5732_s17  ;;  %847 = vst.msk [vmem:[#allocation2 + $0x34] sm:$0xf] %vm224_vm0, %v566_v20  ;;  %v571_v37 = vrot.slane %v569_v57, 7  ;;  %v579_v45 = vrot.slane %v577_v1, 7  ;;  %309 = vst [vmem:[#allocation2 + $0x44] sm:$0x1] %v308_v34  ;;  %5470 = vmatpush3.bf16.msra.mxu0 %v5613_v3 }
  0x45   : > { %v255_v7 = vsel %vm5822_vm4, 0, %v254_v16  ;;  %v586_v9 = vshrl.u32 %v476_v62, 16  ;;  %1945 = vrot.lane.b32.xlu1 %v6083_v42, %s5733_s26  ;;  %v589_v12 = vshll.u32 %v476_v62, 16  ;;  %v594_v13 = vshrl.u32 %v477_v60, 16 }
  0x46   : > { %256 = vst [vmem:[#allocation2 + $0x48] sm:$0x1] %v255_v7  ;;  %v597_v14 = vshll.u32 %v477_v60, 16  ;;  %v311_v22 = vsel %vm5854_vm6, 0, %v310_v2  ;;  %v574_v29 = vor.u32 %v572_v47, %v571_v37  ;;  %v575_v25 = vrot.slane %v571_v37, 4 }
  0x47   : > { %v582_v27 = vor.u32 %v580_v38, %v579_v45  ;;  %312 = vst [vmem:[#allocation2 + $0x50] sm:$0x1] %v311_v22  ;;  %v6113_v28 = vld [vmem:[#allocation2 + $0x30] sm:$0xf]  ;;  %v588_v31 = vrot.slane %v586_v9, 7  ;;  %v596_v15 = vrot.slane %v594_v13, 7 }
  0x48   : > { %v258_v32 = vsel %vm5822_vm4, 0, %v257_v39  ;;  %v603_v36 = vshrl.u32 %v478_v10, 16  ;;  %1539 = vrot.lane.b32.xlu0 %v6047_v8, %s5730_s13  ;;  %v1202_v46 = vshrl.u32 %v6113_v28, 16  ;;  %v1205_v48 = vshll.u32 %v6113_v28, 16  ;;  %v848_v51 = vld [vmem:[#allocation2 + $0x38] sm:$0x1] }
  0x49   : > { %v583_v30 = vsel %vm5864_vm8, %v575_v25, %v582_v27  ;;  %v584_v52 = vrot.slane %v579_v45, 4  ;;  %259 = vst [vmem:[#allocation2 + $0x54] sm:$0x1] %v258_v32  ;;  %2183 = vrot.lane.b32.xlu1 %v6094_v63, %s5734_s30  ;;  %v849_v4 = vsel %vm5822_vm4, %v567_v33, %v848_v51  ;;  %v851_v40 = vld [vmem:[#allocation2 + $0x3c] sm:$0xf]  ;;  %v591_v17 = vor.u32 %v589_v12, %v588_v31 }
  0x4a   : > { %854 = vst.msk [vmem:[#allocation2 + $0x40] sm:$0xf] %vm224_vm0, %v583_v30  ;;  %v592_v55 = vrot.slane %v588_v31, 4  ;;  %v599_v56 = vor.u32 %v597_v14, %v596_v15  ;;  %850 = vst [vmem:[#allocation2 + $0x38] sm:$0x1] %v849_v4  ;;  %v1204_v58 = vrot.slane %v1202_v46, 4  ;;  %v852_v54 = vsel %vm5876_vm9, %v574_v29, %v851_v40 }
  0x4b   : > { %v1207_v16 = vrot.slane %v1205_v48, 5  ;;  %v601_v18 = vrot.slane %v596_v15, 4  ;;  %v6130_v19 = vld [vmem:[#allocation2 + $0x34] sm:$0xf]  ;;  %853 = vst [vmem:[#allocation2 + $0x3c] sm:$0xf] %v852_v54  ;;  %v5154_v33 = vcombine.low %v5937_v24, %v5886_v41 }
  0x4c   : > { %v855_v61 = vld [vmem:[#allocation2 + $0x44] sm:$0x1]  ;;  %v600_v50 = vsel %vm5864_vm8, %v592_v55, %v599_v56  ;;  %v6134_v62 = vrot.slane %v603_v36, 7  ;;  %v606_v23 = vshll.u32 %v478_v10, 16  ;;  %1943 = vrot.lane.b32.xlu0 %v6047_v8, %s5733_s26  ;;  %v6142_v43 = vcombine.low %v6113_v28, %v6130_v19  ;;  %v313_v39 = vld [vmem:[#allocation2 + $0x5c] sm:$0x1] }
  0x4d   : > { %v1215_v60 = vshrl.u32 %v6130_v19, 16  ;;  %v1211_v44 = vshll.u32 %v6130_v19, 16  ;;  %v858_v57 = vld [vmem:[#allocation2 + $0x48] sm:$0xf]  ;;  %861 = vst.msk [vmem:[#allocation2 + $0x4c] sm:$0xf] %vm224_vm0, %v600_v50  ;;  %1541 = vrot.lane.b32.xlu1 %v6083_v42, %s5730_s13  ;;  %v856_v41 = vsel %vm5822_vm4, %v584_v52, %v855_v61  ;;  %v1208_v1 = vor.u32 %v1207_v16, %v1204_v58 }
  0x4e   : > { %v859_v24 = vsel %vm5876_vm9, %v591_v17, %v858_v57  ;;  %v862_v8 = vld [vmem:[#allocation2 + $0x50] sm:$0x1]  ;;  %v608_v47 = vor.u32 %v606_v23, %v6134_v62  ;;  %1086 = vst.msk [vmem:[#allocation4] sm:$0xff] %vm8549_vm12, %v5154_v33  ;;  %1090 = vst.msk [vmem:[#allocation4 + $0x20] sm:$0xff] %vm8549_vm12, %v6142_v43  ;;  %v479_v45 = vld [vmem:[%s5850_s9 + $0x34] sm:$0xf] }
  0x4f   : > { %v1213_v2 = vrot.slane %v1211_v44, 5  ;;  %v1217_v20 = vrot.slane %v1215_v60, 4  ;;  %857 = vst [vmem:[#allocation2 + $0x44] sm:$0x1] %v856_v41  ;;  %860 = vst [vmem:[#allocation2 + $0x48] sm:$0xf] %v859_v24  ;;  %v863_v38 = vsel %vm5822_vm4, %v601_v18, %v862_v8 }
  0x50   : > { %864 = vst [vmem:[#allocation2 + $0x50] sm:$0x1] %v863_v38  ;;  %v865_v34 = vld [vmem:[#allocation2 + $0x54] sm:$0xf]  ;;  %2181 = vrot.lane.b32.xlu0 %v6083_v42, %s5734_s30  ;;  %v1651_v10 = vrot.slane %v6130_v19, 5  ;;  %v1209_v14 = vrot.slane %v1208_v1, 4 }
  0x51   : > { %v1218_v3 = vor.u32 %v1217_v20, %v1213_v2  ;;  %v6161_v37 = vld [vmem:[#allocation2 + $0x40] sm:$0xf]  ;;  %v866_v7 = vsel %vm5876_vm9, %v608_v47, %v865_v34  ;;  %1543 = vrot.lane.b32.xlu1 %v6094_v63, %s5730_s13  ;;  %v949_v9 = vld [vmem:[#allocation2 + $0x38] sm:$0x1]  ;;  %v314_v25 = vsel %vm5854_vm6, 0, %v313_v39  ;;  %v5190_v48 = vrot.slane %v6113_v28, 9 }
  0x52   : > { %v1239_v12 = vshrl.u32 %v6161_v37, 16  ;;  %v1235_v13 = vshll.u32 %v6161_v37, 16  ;;  %867 = vst [vmem:[#allocation2 + $0x54] sm:$0xf] %v866_v7  ;;  %v1221_v22 = vshll.u32 %v949_v9, 16  ;;  %v1653_v51 = vrot.slane %v1651_v10, 4 }
  0x53   : > { %v1219_v42 = vrot.slane %v1218_v3, 4  ;;  %v950_v29 = vld [vmem:[#allocation2 + $0x3c] sm:$0xf]  ;;  %315 = vst [vmem:[#allocation2 + $0x5c] sm:$0x1] %v314_v25  ;;  %v1654_v30 = vrot.slane %v949_v9, 5  ;;  %v1652_v50 = vsel %vm5950_vm15, %v5190_v48, %v1651_v10 }
  0x54   : > { %v6174_v27 = vcombine.low %v950_v29, %v6161_v37  ;;  %v1226_v31 = vshrl.u32 %v950_v29, 16  ;;  %v1229_v15 = vshll.u32 %v950_v29, 16  ;;  %1785 = vrot.lane.b32.xlu0 %v6045_v11, %s5729_s12  ;;  %v1223_v32 = vrot.slane %v1221_v22, 5  ;;  %v6193_v58 = vld [vmem:[#allocation2 + $0x4c] sm:$0xf] }
  0x55   : > { %v6178_v36 = vrot.slane %v1235_v13, 5  ;;  %v1241_v46 = vrot.slane %v1239_v12, 4  ;;  %1787 = vrot.lane.b32.xlu1 %v6059_v49, %s5729_s12  ;;  %v611_v4 = vshrl.u32 %v479_v45, 16  ;;  %v1214_v11 = vsel %vm5979_vm1, %v1209_v14, %v1213_v2  ;;  %v260_v1 = vld [vmem:[#allocation2 + $0x60] sm:$0x1] }
  0x56   : > { %1091 = vst.msk [vmem:[#allocation4 + $0x28] sm:$0xff] %vm8549_vm12, %v6174_v27  ;;  %v6185_v52 = vld [vmem:[#allocation2 + $0x44] sm:$0x1]  ;;  %v1224_v40 = vsel %vm5979_vm1, %v1219_v42, %v1223_v32  ;;  %v1228_v17 = vrot.slane %v1226_v31, 4  ;;  %v1231_v55 = vrot.slane %v1229_v15, 5  ;;  %v614_v61 = vshll.u32 %v479_v45, 16 }
  0x57   : > { %v6191_v56 = vld [vmem:[#allocation2 + $0x48] sm:$0xf]  ;;  %v1242_v16 = vor.u32 %v1241_v46, %v6178_v36  ;;  %v1245_v54 = vshll.u32 %v6185_v52, 16  ;;  %v6205_v18 = vcombine.low %v1214_v11, %v1224_v40  ;;  %v613_v19 = vrot.slane %v611_v4, 7  ;;  %v480_v2 = vld [vmem:[%s5850_s9 + $0x38] sm:$0xf] }
  0x58   : > { %v6197_v28 = vcombine.low %v6191_v56, %v6193_v58  ;;  %1855 = vrot.lane.b32.xlu0 %v6002_v59, %s5727_s10  ;;  %v1655_v59 = vsel %vm5950_vm15, %v1653_v51, %v1654_v30  ;;  %v1232_v23 = vor.u32 %v1231_v55, %v1228_v17  ;;  %v609_v33 = vrot.slane %v6134_v62, 4  ;;  %v481_v38 = vld [vmem:[%s5850_s9 + $0x3c] sm:$0xf]  ;;  %v316_v34 = vld [vmem:[#allocation2 + $0x68] sm:$0x1] }
  0x59   : > { %1857 = vrot.lane.b32.xlu1 %v6142_v43, %s5727_s10  ;;  %v1243_v60 = vrot.slane %v1242_v16, 4  ;;  %v1247_v44 = vrot.slane %v1245_v54, 5  ;;  %v5191_v57 = vrot.slane %v950_v29, 9  ;;  %v1658_v41 = vrot.slane %v6161_v37, 5  ;;  %v263_v39 = vld [vmem:[#allocation2 + $0x6c] sm:$0x1] }
  0x5a   : > { %1092 = vst.msk [vmem:[#allocation4 + $0x30] sm:$0xff] %vm8549_vm12, %v6197_v28  ;;  %v6219_v24 = vcombine.low %v1652_v50, %v1655_v59  ;;  %v616_v8 = vor.u32 %v614_v61, %v613_v19  ;;  %v869_v47 = vld [vmem:[#allocation2 + $0x5c] sm:$0x1]  ;;  %v1233_v20 = vrot.slane %v1232_v23, 4  ;;  %v618_v62 = vrot.slane %v613_v19, 4 }
  0x5b   : > { %v1660_v3 = vrot.slane %v1658_v41, 4  ;;  %v482_v45 = vld [vmem:[%s5850_s9 + $0x40] sm:$0xf]  ;;  %v1248_v7 = vsel %vm5979_vm1, %v1243_v60, %v1247_v44  ;;  %v1659_v9 = vsel %vm5950_vm15, %v5191_v57, %v1658_v41  ;;  %v1661_v10 = vrot.slane %v6185_v52, 5  ;;  %v6245_v22 = vld [vmem:[%s5850_s9 + $0x44] sm:$0xf] }
  0x5c   : > { %1947 = vrot.lane.b32.xlu0 %v6094_v63, %s5733_s26  ;;  %v617_v63 = vsel %vm5864_vm8, %v609_v33, %v616_v8  ;;  %v870_v37 = vsel %vm5822_vm4, %v618_v62, %v869_v47  ;;  %v1238_v12 = vsel %vm5979_vm1, %v1233_v20, %v6178_v36  ;;  %v261_v13 = vsel %vm5822_vm4, 0, %v260_v1  ;;  %v319_v29 = vld [vmem:[#allocation2 + $0x74] sm:$0x1]  ;;  %v6260_v52 = vld [vmem:[#allocation2 + $0x50] sm:$0x1] }
  0x5d   : > { %1949 = vrot.lane.b32.xlu1 %v6205_v18, %s5733_s26  ;;  %868 = vst.msk [vmem:[#allocation2 + $0x58] sm:$0xf] %vm224_vm0, %v617_v63  ;;  %871 = vst [vmem:[#allocation2 + $0x5c] sm:$0x1] %v870_v37  ;;  %v620_v14 = vshrl.u32 %v480_v2, 16  ;;  %v623_v42 = vshll.u32 %v480_v2, 16  ;;  %v6258_v30 = vcombine.low %v1238_v12, %v1248_v7  ;;  %v1662_v40 = vsel %vm5950_vm15, %v1660_v3, %v1661_v10 }
  0x5e   : > { %v1253_v25 = vshll.u32 %v6191_v56, 16  ;;  %262 = vst [vmem:[#allocation2 + $0x60] sm:$0x1] %v261_v13  ;;  %v628_v31 = vshrl.u32 %v481_v38, 16  ;;  %v631_v15 = vshll.u32 %v481_v38, 16  ;;  %v317_v32 = vsel %vm5854_vm6, 0, %v316_v34 }
  0x5f   : > { %v1263_v36 = vshrl.u32 %v6193_v58, 16  ;;  %v1259_v46 = vshll.u32 %v6193_v58, 16  ;;  %v622_v48 = vrot.slane %v620_v14, 7  ;;  %318 = vst [vmem:[#allocation2 + $0x68] sm:$0x1] %v317_v32  ;;  %v264_v51 = vsel %vm5822_vm4, 0, %v263_v39 }
  0x60   : > { %2023 = vrot.lane.b32.xlu0 %v6059_v49, %s5731_s14  ;;  %v1250_v49 = vshrl.u32 %v6191_v56, 16  ;;  %v630_v4 = vrot.slane %v628_v31, 7  ;;  %265 = vst [vmem:[#allocation2 + $0x6c] sm:$0x1] %v264_v51  ;;  %v637_v11 = vshrl.u32 %v482_v45, 16  ;;  %v645_v59 = vshrl.u32 %v6245_v22, 16 }
  0x61   : > { %2025 = vrot.lane.b32.xlu1 %v6219_v24, %s5731_s14  ;;  %v6264_v55 = vld [vmem:[#allocation2 + $0x54] sm:$0xf]  ;;  %v625_v16 = vor.u32 %v623_v42, %v622_v48  ;;  %v626_v54 = vrot.slane %v622_v48, 4  ;;  %v320_v23 = vsel %vm5854_vm6, 0, %v319_v29  ;;  %v1255_v33 = vrot.slane %v1253_v25, 5 }
  0x62   : > { %v1252_v17 = vrot.slane %v1250_v49, 4  ;;  %v633_v61 = vor.u32 %v631_v15, %v630_v4  ;;  %v639_v50 = vrot.slane %v637_v11, 7  ;;  %v6273_v60 = vrot.slane %v1259_v46, 5  ;;  %321 = vst [vmem:[#allocation2 + $0x74] sm:$0x1] %v320_v23 }
  0x63   : > { %v635_v57 = vrot.slane %v630_v4, 4  ;;  %v1265_v41 = vrot.slane %v1263_v36, 4  ;;  %v648_v1 = vshll.u32 %v6245_v22, 16  ;;  %v1269_v2 = vshll.u32 %v6260_v52, 16  ;;  %v266_v29 = vld [vmem:[#allocation2 + $0x78] sm:$0x1] }
  0x64   : > { %2093 = vrot.lane.b32.xlu0 %v6142_v43, %s5728_s11  ;;  %v640_v43 = vshll.u32 %v482_v45, 16  ;;  %v6266_v19 = vld [vmem:[#allocation2 + $0x58] sm:$0xf]  ;;  %v634_v8 = vsel %vm5864_vm8, %v626_v54, %v633_v61  ;;  %v1274_v20 = vshrl.u32 %v6264_v55, 16  ;;  %v1277_v62 = vshll.u32 %v6264_v55, 16 }
  0x65   : > { %2095 = vrot.lane.b32.xlu1 %v6174_v27, %s5728_s11  ;;  %v6277_v44 = vcombine.low %v6264_v55, %v6266_v19  ;;  %v1287_v38 = vshrl.u32 %v6266_v19, 16  ;;  %v872_v63 = vld [vmem:[#allocation2 + $0x60] sm:$0xf]  ;;  %875 = vst.msk [vmem:[#allocation2 + $0x64] sm:$0xf] %vm224_vm0, %v634_v8  ;;  %v1283_v34 = vshll.u32 %v6266_v19, 16  ;;  %v6296_v7 = vcombine.low %v1659_v9, %v1662_v40 }
  0x66   : > { %v642_v47 = vor.u32 %v640_v43, %v639_v50  ;;  %v873_v39 = vsel %vm5876_vm9, %v625_v16, %v872_v63  ;;  %v876_v3 = vld [vmem:[#allocation2 + $0x68] sm:$0x1]  ;;  %v643_v37 = vrot.slane %v639_v50, 4  ;;  %v647_v45 = vrot.slane %v645_v59, 7  ;;  %v322_v32 = vld [vmem:[#allocation2 + $0x80] sm:$0x1] }
  0x67   : > { %1093 = vst.msk [vmem:[#allocation4 + $0x38] sm:$0xff] %vm8549_vm12, %v6277_v44  ;;  %v1256_v10 = vor.u32 %v1255_v33, %v1252_v17  ;;  %874 = vst [vmem:[#allocation2 + $0x60] sm:$0xf] %v873_v39  ;;  %v877_v49 = vsel %vm5822_vm4, %v635_v57, %v876_v3  ;;  %v879_v12 = vld [vmem:[#allocation2 + $0x6c] sm:$0xf]  ;;  %v1266_v13 = vor.u32 %v1265_v41, %v6273_v60  ;;  %v1276_v9 = vrot.slane %v1274_v20, 4 }
  0x68   : > { %2185 = vrot.lane.b32.xlu0 %v6205_v18, %s5734_s30  ;;  %878 = vst [vmem:[#allocation2 + $0x68] sm:$0x1] %v877_v49  ;;  %v650_v14 = vor.u32 %v648_v1, %v647_v45  ;;  %v652_v42 = vrot.slane %v647_v45, 4  ;;  %v880_v22 = vsel %vm5876_vm9, %v642_v47, %v879_v12  ;;  %v1279_v25 = vrot.slane %v1277_v62, 5  ;;  %v958_v17 = vld [vmem:[#allocation2 + $0x5c] sm:$0x1] }
  0x69   : > { %2187 = vrot.lane.b32.xlu1 %v6258_v30, %s5734_s30  ;;  %881 = vst [vmem:[#allocation2 + $0x6c] sm:$0xf] %v880_v22  ;;  %v883_v15 = vld [vmem:[#allocation2 + $0x74] sm:$0x1]  ;;  %v1289_v36 = vrot.slane %v1287_v38, 4  ;;  %v267_v48 = vsel %vm5822_vm4, 0, %v266_v29 }
  0x6a   : > { %v651_v31 = vsel %vm5864_vm8, %v643_v37, %v650_v14  ;;  %v884_v46 = vsel %vm5822_vm4, %v652_v42, %v883_v15  ;;  %v6319_v51 = vld [vmem:[%s8541_s1 + $0x10] ss:$0 sps:$4 sm:$0x33]   ;;  %v1257_v4 = vrot.slane %v1256_v10, 4  ;;  %v1267_v11 = vrot.slane %v1266_v13, 4 }
  0x6b   : > { %882 = vst.msk [vmem:[#allocation2 + $0x70] sm:$0xf] %vm224_vm0, %v651_v31  ;;  %v1271_v43 = vrot.slane %v1269_v2, 5  ;;  %v1665_v40 = vrot.slane %v6193_v58, 5  ;;  %885 = vst [vmem:[#allocation2 + $0x74] sm:$0x1] %v884_v46  ;;  %v1280_v61 = vor.u32 %v1279_v25, %v1276_v9 }
  0x6c   : > { %2261 = vrot.lane.b32.xlu0 %v6219_v24, %s5732_s17  ;;  %268 = vst [vmem:[#allocation2 + $0x78] sm:$0x1] %v267_v48  ;;  %v5192_v16 = vrot.slane %v6191_v56, 9  ;;  %v1668_v54 = vrot.slane %v6260_v52, 5  ;;  %v484_v50 = vld [vmem:[%s5850_s9 + $0x48] sm:$0xf] }
  0x6d   : > { %1545 = vrot.lane.b32.xlu1 %v6205_v18, %s5730_s13  ;;  %v6309_v18 = vrot.slane %v1283_v34, 5  ;;  %v485_v59 = vld [vmem:[%s5850_s9 + $0x4c] sm:$0xf]  ;;  %v6330_v33 = vld [vmem:[#allocation2 + $0x64] sm:$0xf]  ;;  %v323_v57 = vsel %vm5854_vm6, 0, %v322_v32  ;;  %v1272_v8 = vsel %vm5979_vm1, %v1267_v11, %v1271_v43 }
  0x6e   : > { %v6328_v23 = vld [vmem:[#allocation2 + $0x60] sm:$0xf]  ;;  %vm2414_vm7 = vcmask 1041408   ;;  %v1293_v41 = vshll.u32 %v958_v17, 16  ;;  %v1672_v56 = vrot.slane %v6266_v19, 5  ;;  %v1667_v47 = vrot.slane %v1665_v40, 4 }
  0x6f   : > { %v1290_v58 = vor.u32 %v1289_v36, %v6309_v18  ;;  %v6340_v52 = vcombine.low %v6328_v23, %v6330_v33  ;;  %324 = vst [vmem:[#allocation2 + $0x80] sm:$0x1] %v323_v57  ;;  %5547 = vmatprep.subr.msk.bf16.mxu0 %vm2414_vm7, %v6319_v51  ;;  %v5193_v19 = vrot.slane %v6264_v55, 9  ;;  %v1281_v1 = vrot.slane %v1280_v61, 4  ;;  %v269_v29 = vld [vmem:[#allocation2 + $0x84] sm:$0x1] }
  0x70   : > { %2263 = vrot.lane.b32.xlu0 %v6296_v7, %s5732_s17  ;;  %v1675_v2 = vrot.slane %v958_v17, 5  ;;  %v654_v20 = vshrl.u32 %v484_v50, 16  ;;  %v662_v62 = vshrl.u32 %v485_v59, 16  ;;  %v6354_v38 = vld [vmem:[#allocation2 + $0x6c] sm:$0xf]  ;;  %v1295_v34 = vrot.slane %v1293_v41, 5 }
  0x71   : > { %1547 = vrot.lane.b32.xlu1 %v6258_v30, %s5730_s13  ;;  %1094 = vst.msk [vmem:[#allocation4 + $0x40] sm:$0xff] %vm8549_vm12, %v6340_v52  ;;  %v1674_v39 = vrot.slane %v1672_v56, 4  ;;  %v1666_v37 = vsel %vm5950_vm15, %v5192_v16, %v1665_v40  ;;  %v1669_v45 = vsel %vm5950_vm15, %v1667_v47, %v1668_v54  ;;  %v657_v10 = vshll.u32 %v484_v50, 16  ;;  %v6386_v9 = vld [vmem:[%s5850_s9 + $0x50] sm:$0xf] }
  0x72   : > { %v6356_v63 = vld [vmem:[#allocation2 + $0x70] sm:$0xf]  ;;  %v664_v49 = vrot.slane %v662_v62, 7  ;;  %v665_v12 = vshll.u32 %v485_v59, 16  ;;  %v1286_v13 = vsel %vm5979_vm1, %v1281_v1, %v6309_v18  ;;  %v1673_v42 = vsel %vm5950_vm15, %v5193_v19, %v1672_v56  ;;  %v487_v15 = vld [vmem:[%s5850_s9 + $0x54] sm:$0xf] }
  0x73   : > { %v6362_v55 = vcombine.low %v6354_v38, %v6356_v63  ;;  %v1676_v22 = vsel %vm5950_vm15, %v1674_v39, %v1675_v2  ;;  %v886_v25 = vld [vmem:[#allocation2 + $0x78] sm:$0xf]  ;;  %v325_v32 = vld [vmem:[#allocation2 + $0x8c] sm:$0x1]  ;;  %v272_v48 = vld [vmem:[#allocation2 + $0x90] sm:$0x1] }
  0x74   : > { %1789 = vrot.lane.b32.xlu0 %v6219_v24, %s5729_s12  ;;  %v1262_v24 = vsel %vm5979_vm1, %v1257_v4, %v6273_v60  ;;  %v1291_v60 = vrot.slane %v1290_v58, 4  ;;  %v667_v46 = vor.u32 %v665_v12, %v664_v49  ;;  %v6394_v4 = vld [vmem:[%s5850_s9 + $0x58] sm:$0xf]  ;;  %v6398_v43 = vcombine.low %v1673_v42, %v1676_v22  ;;  %v6403_v16 = vld [vmem:[%s5850_s9 + $0x5c] sm:$0xf] }
  0x75   : > { %1791 = vrot.lane.b32.xlu1 %v6296_v7, %s5729_s12  ;;  %v6366_v3 = vcombine.low %v1262_v24, %v1272_v8  ;;  %1095 = vst.msk [vmem:[#allocation4 + $0x48] sm:$0xff] %vm8549_vm12, %v6362_v55  ;;  %v669_v40 = vrot.slane %v664_v49, 4  ;;  %v2416_v17 = vsel %vm2414_vm7, %v6319_v51, 0  ;;  %v1311_v54 = vshrl.u32 %v6330_v33, 16  ;;  %v328_v57 = vld [vmem:[#allocation2 + $0x98] sm:$0x1] }
  0x76   : > { %v1296_v14 = vsel %vm5979_vm1, %v1291_v60, %v1295_v34  ;;  %v890_v31 = vld [vmem:[#allocation2 + $0x80] sm:$0x1]  ;;  %v1307_v61 = vshll.u32 %v6330_v33, 16  ;;  %5472 = vmatpush3.bf16.msra.mxu0 %v2416_v17  ;;  %v1679_v51 = vrot.slane %v6330_v33, 5  ;;  %v270_v58 = vsel %vm5822_vm4, 0, %v269_v29 }
  0x77   : > { %v6396_v11 = vcombine.low %v1286_v13, %v1296_v14  ;;  %v671_v41 = vshrl.u32 %v6386_v9, 16  ;;  %v275_v56 = vld [vmem:[#allocation2 + $0x9c] sm:$0x1]  ;;  %v1298_v24 = vshrl.u32 %v6328_v23, 16  ;;  %271 = vst [vmem:[#allocation2 + $0x84] sm:$0x1] %v270_v58 }
  0x78   : > { %1859 = vrot.lane.b32.xlu0 %v6174_v27, %s5727_s10  ;;  %v656_v27 = vrot.slane %v654_v20, 7  ;;  %v679_v8 = vshrl.u32 %v487_v15, 16  ;;  %v682_v47 = vshll.u32 %v487_v15, 16  ;;  %v326_v19 = vsel %vm5854_vm6, 0, %v325_v32  ;;  %v6444_v42 = vld [vmem:[%s5850_s9 + $0x60] sm:$0xf] }
  0x79   : > { %1861 = vrot.lane.b32.xlu1 %v6197_v28, %s5727_s10  ;;  %v1301_v1 = vshll.u32 %v6328_v23, 16  ;;  %v673_v2 = vrot.slane %v671_v41, 7  ;;  %327 = vst [vmem:[#allocation2 + $0x8c] sm:$0x1] %v326_v19  ;;  %v273_v20 = vsel %vm5822_vm4, 0, %v272_v48  ;;  %v688_v62 = vshrl.u32 %v6394_v4, 16 }
  0x7a   : > { %v659_v18 = vor.u32 %v657_v10, %v656_v27  ;;  %v660_v36 = vrot.slane %v656_v27, 4  ;;  %v6431_v60 = vrot.slane %v1307_v61, 5  ;;  %v674_v34 = vshll.u32 %v6386_v9, 16  ;;  %274 = vst [vmem:[#allocation2 + $0x90] sm:$0x1] %v273_v20 }
  0x7b   : > { %v681_v39 = vrot.slane %v679_v8, 7  ;;  %v690_v27 = vrot.slane %v688_v62, 7  ;;  %v699_v10 = vshll.u32 %v6403_v16, 16  ;;  %v691_v12 = vshll.u32 %v6394_v4, 16  ;;  %v6447_v22 = vld [vmem:[%s5850_s9 + $0x64] sm:$0xf] }
  0x7c   : > { %1951 = vrot.lane.b32.xlu0 %v6258_v30, %s5733_s26  ;;  %v6390_v30 = vcombine.low %v1666_v37, %v1669_v45  ;;  %v668_v50 = vsel %vm5864_vm8, %v660_v36, %v667_v46  ;;  %v887_v59 = vsel %vm5876_vm9, %v659_v18, %v886_v25  ;;  %v696_v37 = vshrl.u32 %v6403_v16, 16  ;;  %v6449_v29 = vld [vmem:[#allocation2 + $0x68] sm:$0x1] }
  0x7d   : > { %1953 = vrot.lane.b32.xlu1 %v6366_v3, %s5733_s26  ;;  %888 = vst [vmem:[#allocation2 + $0x78] sm:$0xf] %v887_v59  ;;  %889 = vst.msk [vmem:[#allocation2 + $0x7c] sm:$0xf] %vm224_vm0, %v668_v50  ;;  %v677_v45 = vrot.slane %v673_v2, 4  ;;  %v684_v49 = vor.u32 %v682_v47, %v681_v39  ;;  %v276_v14 = vsel %vm5822_vm4, 0, %v275_v56  ;;  %v676_v48 = vor.u32 %v674_v34, %v673_v2 }
  0x7e   : > { %v698_v13 = vrot.slane %v696_v37, 7  ;;  %v6451_v9 = vrot.slane %v1298_v24, 4  ;;  %v1303_v25 = vrot.slane %v1301_v1, 5  ;;  %v1322_v15 = vshrl.u32 %v6354_v38, 16  ;;  %277 = vst [vmem:[#allocation2 + $0x9c] sm:$0x1] %v276_v14 }
  0x7f   : > { %v1325_v32 = vshll.u32 %v6354_v38, 16  ;;  %v1335_v18 = vshrl.u32 %v6356_v63, 16  ;;  %v685_v4 = vsel %vm5864_vm8, %v677_v45, %v684_v49  ;;  %v686_v17 = vrot.slane %v681_v39, 4  ;;  %v893_v59 = vld [vmem:[#allocation2 + $0x84] sm:$0xf] }
  0x80   : > { %2027 = vrot.lane.b32.xlu0 %v6296_v7, %s5731_s14  ;;  %v891_v7 = vsel %vm5822_vm4, %v669_v40, %v890_v31  ;;  %v1313_v31 = vrot.slane %v1311_v54, 4  ;;  %896 = vst.msk [vmem:[#allocation2 + $0x88] sm:$0xf] %vm224_vm0, %v685_v4  ;;  %v694_v16 = vrot.slane %v690_v27, 4  ;;  %v701_v54 = vor.u32 %v699_v10, %v698_v13  ;;  %v897_v56 = vld [vmem:[#allocation2 + $0x8c] sm:$0x1] }
  0x81   : > { %2029 = vrot.lane.b32.xlu1 %v6390_v30, %s5731_s14  ;;  %892 = vst [vmem:[#allocation2 + $0x80] sm:$0x1] %v891_v7  ;;  %v1317_v61 = vshll.u32 %v6449_v29, 16  ;;  %v1331_v50 = vshll.u32 %v6356_v63, 16  ;;  %v703_v7 = vrot.slane %v698_v13, 4  ;;  %v5194_v58 = vrot.slane %v6328_v23, 9 }
  0x82   : > { %v1681_v41 = vrot.slane %v1679_v51, 4  ;;  %v705_v24 = vshrl.u32 %v6444_v42, 16  ;;  %v713_v8 = vshrl.u32 %v6447_v22, 16  ;;  %v331_v47 = vld [vmem:[#allocation2 + $0xa4] sm:$0x1]  ;;  %v1304_v19 = vor.u32 %v1303_v25, %v6451_v9 }
  0x83   : > { %v1314_v1 = vor.u32 %v1313_v31, %v6431_v60  ;;  %v1324_v23 = vrot.slane %v1322_v15, 4  ;;  %v1327_v2 = vrot.slane %v1325_v32, 5  ;;  %v900_v20 = vld [vmem:[#allocation2 + $0x90] sm:$0xf]  ;;  %v278_v62 = vld [vmem:[#allocation2 + $0xa8] sm:$0x1]  ;;  %v894_v37 = vsel %vm5876_vm9, %v676_v48, %v893_v59 }
  0x84   : > { %2097 = vrot.lane.b32.xlu0 %v6197_v28, %s5728_s11  ;;  %v329_v28 = vsel %vm5854_vm6, 0, %v328_v57  ;;  %v6458_v36 = vld [vmem:[#allocation2 + $0x78] sm:$0xf]  ;;  %v6460_v46 = vld [vmem:[#allocation2 + $0x7c] sm:$0xf]  ;;  %v693_v57 = vor.u32 %v691_v12, %v690_v27  ;;  %v1337_v39 = vrot.slane %v1335_v18, 4  ;;  %v898_v45 = vsel %vm5822_vm4, %v686_v17, %v897_v56 }
  0x85   : > { %2099 = vrot.lane.b32.xlu1 %v6277_v44, %s5728_s11  ;;  %330 = vst [vmem:[#allocation2 + $0x98] sm:$0x1] %v329_v28  ;;  %v6468_v40 = vcombine.low %v6458_v36, %v6460_v46  ;;  %v964_v34 = vld [vmem:[#allocation2 + $0x74] sm:$0x1]  ;;  %v702_v27 = vsel %vm5864_vm8, %v694_v16, %v701_v54  ;;  %v6492_v28 = vrot.slane %v1331_v50, 5  ;;  %v708_v12 = vshll.u32 %v6444_v42, 16 }
  0x86   : > { %895 = vst [vmem:[#allocation2 + $0x84] sm:$0xf] %v894_v37  ;;  %899 = vst [vmem:[#allocation2 + $0x8c] sm:$0x1] %v898_v45  ;;  %v901_v49 = vsel %vm5876_vm9, %v693_v57, %v900_v20  ;;  %v1682_v13 = vrot.slane %v6449_v29, 5  ;;  %v1686_v14 = vrot.slane %v6356_v63, 5  ;;  %v1328_v48 = vor.u32 %v1327_v2, %v1324_v23 }
  0x87   : > { %1096 = vst.msk [vmem:[#allocation4 + $0x50] sm:$0xff] %vm8549_vm12, %v6468_v40  ;;  %902 = vst [vmem:[#allocation2 + $0x90] sm:$0xf] %v901_v49  ;;  %v707_v9 = vrot.slane %v705_v24, 7  ;;  %v6502_v25 = vrot.slane %v713_v8, 7  ;;  %v1341_v31 = vshll.u32 %v964_v34, 16  ;;  %v1338_v17 = vor.u32 %v1337_v39, %v6492_v28 }
  0x88   : > { %2189 = vrot.lane.b32.xlu0 %v6366_v3, %s5734_s30  ;;  %903 = vst.msk [vmem:[#allocation2 + $0x94] sm:$0xf] %vm224_vm0, %v702_v27  ;;  %v716_v15 = vshll.u32 %v6447_v22, 16  ;;  %v332_v32 = vsel %vm5854_vm6, 0, %v331_v47  ;;  %v279_v42 = vsel %vm5822_vm4, 0, %v278_v62  ;;  %v1305_v63 = vrot.slane %v1304_v19, 4 }
  0x89   : > { %2191 = vrot.lane.b32.xlu1 %v6396_v11, %s5734_s30  ;;  %v1315_v29 = vrot.slane %v1314_v1, 4  ;;  %v1319_v18 = vrot.slane %v1317_v61, 5  ;;  %v907_v4 = vld [vmem:[#allocation2 + $0x9c] sm:$0xf]  ;;  %333 = vst [vmem:[#allocation2 + $0xa4] sm:$0x1] %v332_v32  ;;  %v710_v16 = vor.u32 %v708_v12, %v707_v9  ;;  %v1680_v61 = vsel %vm5950_vm15, %v5194_v58, %v1679_v51 }
  0x8a   : > { %280 = vst [vmem:[#allocation2 + $0xa8] sm:$0x1] %v279_v42  ;;  %v711_v22 = vrot.slane %v707_v9, 4  ;;  %v718_v54 = vor.u32 %v716_v15, %v6502_v25  ;;  %v5195_v50 = vrot.slane %v6354_v38, 9  ;;  %v1688_v59 = vrot.slane %v1686_v14, 4 }
  0x8b   : > { %v1689_v57 = vrot.slane %v964_v34, 5  ;;  %v908_v24 = vsel %vm5876_vm9, %v710_v16, %v907_v4  ;;  %v1320_v38 = vsel %vm5979_vm1, %v1315_v29, %v1319_v18  ;;  %v1346_v33 = vshrl.u32 %v6458_v36, 16  ;;  %v6536_v8 = vld [vmem:[#allocation2 + $0x88] sm:$0xf]  ;;  %v6561_v39 = vld [vmem:[#allocation2 + $0x80] sm:$0x1] }
  0x8c   : > { %2265 = vrot.lane.b32.xlu0 %v6390_v30, %s5732_s17  ;;  %v904_v10 = vld [vmem:[#allocation2 + $0x98] sm:$0x1]  ;;  %v719_v56 = vsel %vm5864_vm8, %v711_v22, %v718_v54  ;;  %v1349_v51 = vshll.u32 %v6458_v36, 16  ;;  %909 = vst [vmem:[#allocation2 + $0x9c] sm:$0xf] %v908_v24  ;;  %v1310_v47 = vsel %vm5979_vm1, %v1305_v63, %v6431_v60  ;;  %v1329_v19 = vrot.slane %v1328_v48, 4 }
  0x8d   : > { %1549 = vrot.lane.b32.xlu1 %v6366_v3, %s5730_s13  ;;  %v905_v3 = vsel %vm5822_vm4, %v703_v7, %v904_v10  ;;  %v1343_v7 = vrot.slane %v1341_v31, 5  ;;  %v6534_v58 = vld [vmem:[#allocation2 + $0x84] sm:$0xf]  ;;  %910 = vst.msk [vmem:[#allocation2 + $0xa0] sm:$0xf] %vm224_vm0, %v719_v56  ;;  %v1339_v1 = vrot.slane %v1338_v17, 4  ;;  %v1687_v20 = vsel %vm5950_vm15, %v5195_v50, %v1686_v14 }
  0x8e   : > { %906 = vst [vmem:[#allocation2 + $0x98] sm:$0x1] %v905_v3  ;;  %v6546_v23 = vld [vmem:[#allocation2 + $0x90] sm:$0xf]  ;;  %v1690_v62 = vsel %vm5950_vm15, %v1688_v59, %v1689_v57  ;;  %v1359_v34 = vshrl.u32 %v6460_v46, 16  ;;  %v6567_v37 = vcombine.low %v1310_v47, %v1320_v38  ;;  %v1348_v45 = vrot.slane %v1346_v33, 4 }
  0x8f   : > { %v6548_v2 = vld [vmem:[#allocation2 + $0x94] sm:$0xf]  ;;  %v1351_v27 = vrot.slane %v1349_v51, 5  ;;  %v1355_v10 = vshll.u32 %v6460_v46, 16  ;;  %v1344_v3 = vsel %vm5979_vm1, %v1339_v1, %v1343_v7  ;;  %v6579_v12 = vcombine.low %v1687_v20, %v1690_v62  ;;  %v493_v20 = vld [vmem:[%s5850_s9 + $0x6c] sm:$0xf] }
  0x90   : > { %2267 = vrot.lane.b32.xlu0 %v6398_v43, %s5732_s17  ;;  %v6557_v60 = vcombine.low %v6546_v23, %v6548_v2  ;;  %v6584_v14 = vrot.slane %v1359_v34, 4  ;;  %v1365_v9 = vshll.u32 %v6561_v39, 16  ;;  %v1693_v15 = vrot.slane %v6460_v46, 5  ;;  %v334_v62 = vld [vmem:[#allocation2 + $0xb0] sm:$0x1] }
  0x91   : > { %1551 = vrot.lane.b32.xlu1 %v6396_v11, %s5730_s13  ;;  %v1707_v42 = vrot.slane %v6548_v2, 5  ;;  %v720_v29 = vrot.slane %v6502_v25, 4  ;;  %v1352_v4 = vor.u32 %v1351_v27, %v1348_v45  ;;  %v6601_v17 = vrot.slane %v1355_v10, 5  ;;  %v6773_v46 = vld [vmem:[#allocation2 + $0x8c] sm:$0x1] }
  0x92   : > { %1098 = vst.msk [vmem:[#allocation4 + $0x60] sm:$0xff] %vm8549_vm12, %v6557_v60  ;;  %v6614_v7 = vrot.slane %v1693_v15, 4  ;;  %vm1585_vm10 = vcmask 64544   ;;  %vm1829_vm11 = vcmask 97344   ;;  %vm1899_vm13 = vcmask 130144  }
  0x93   : > { %v974_v18 = vld [vmem:[#allocation2 + $0x9c] sm:$0xf]  ;;  %v1709_v25 = vrot.slane %v1707_v42, 4  ;;  %v6627_v47 = vrot.slane %v1352_v4, 4  ;;  %vm1991_vm14 = vcmask 162944   ;;  %vm2137_vm7 = vcmask 228544  }
  0x94   : > { %1793 = vrot.lane.b32.xlu0 %v6390_v30, %s5729_s12  ;;  %v1683_v30 = vsel %vm5950_vm15, %v1681_v41, %v1682_v13  ;;  %v6544_v41 = vcombine.low %v6534_v58, %v6536_v8  ;;  %v6582_v13 = vld [vmem:[%s5850_s9 + $0x68] sm:$0xf]  ;;  %v975_v16 = vld [vmem:[#allocation2 + $0xa0] sm:$0xf]  ;;  %v1418_v22 = vshrl.u32 %v974_v18, 16  ;;  %v1421_v56 = vshll.u32 %v974_v18, 16 }
  0x95   : > { %1795 = vrot.lane.b32.xlu1 %v6398_v43, %s5729_s12  ;;  %v6572_v49 = vcombine.low %v1680_v61, %v1683_v30  ;;  %v6589_v32 = vld [vmem:[#allocation2 + $0x98] sm:$0x1]  ;;  %v6608_v57 = vcombine.low %v974_v18, %v975_v16  ;;  %v6610_v61 = vrot.slane %v1365_v9, 5  ;;  %v722_v24 = vshrl.u32 %v6582_v13, 16 }
  0x96   : > { %1097 = vst.msk [vmem:[#allocation4 + $0x58] sm:$0xff] %vm8549_vm12, %v6544_v41  ;;  %v1710_v63 = vrot.slane %v6589_v32, 5  ;;  %v1431_v30 = vshrl.u32 %v975_v16, 16  ;;  %v1420_v51 = vrot.slane %v1418_v22, 4  ;;  %v1423_v1 = vrot.slane %v1421_v56, 5 }
  0x97   : > { %1099 = vst.msk [vmem:[#allocation4 + $0x68] sm:$0xff] %vm8549_vm12, %v6608_v57  ;;  %v1427_v34 = vshll.u32 %v975_v16, 16  ;;  %v5199_v27 = vrot.slane %v974_v18, 9  ;;  %v1714_v10 = vrot.slane %v975_v16, 5  ;;  %v1383_v9 = vshrl.u32 %v6536_v8, 16 }
  0x98   : > { %1863 = vrot.lane.b32.xlu0 %v6277_v44, %s5727_s10  ;;  %v1334_v44 = vsel %vm5979_vm1, %v1329_v19, %v6492_v28  ;;  %v5198_v28 = vrot.slane %v6546_v23, 9  ;;  %v1711_v38 = vsel %vm5950_vm15, %v1709_v25, %v1710_v63  ;;  %v1433_v45 = vrot.slane %v1431_v30, 4 }
  0x99   : > { %1865 = vrot.lane.b32.xlu1 %v6340_v52, %s5727_s10  ;;  %v6599_v48 = vcombine.low %v1334_v44, %v1344_v3  ;;  %v281_v44 = vld [vmem:[#allocation2 + $0xb4] sm:$0x1]  ;;  %v725_v63 = vshll.u32 %v6582_v13, 16  ;;  %v1379_v22 = vshll.u32 %v6536_v8, 16  ;;  %v1715_v18 = vsel %vm5950_vm15, %v5199_v27, %v1714_v10 }
  0x9a   : > { %v1708_v59 = vsel %vm5950_vm15, %v5198_v28, %v1707_v42  ;;  %v1424_v28 = vor.u32 %v1423_v1, %v1420_v51  ;;  %v724_v42 = vrot.slane %v722_v24, 7  ;;  %v1716_v16 = vrot.slane %v1714_v10, 4  ;;  %v337_v1 = vld [vmem:[#allocation2 + $0xbc] sm:$0x1] }
  0x9b   : > { %v6631_v19 = vcombine.low %v1708_v59, %v1711_v38  ;;  %v914_v59 = vld [vmem:[#allocation2 + $0xa8] sm:$0xf]  ;;  %v730_v24 = vshrl.u32 %v493_v20, 16  ;;  %v733_v30 = vshll.u32 %v493_v20, 16  ;;  %v282_v51 = vsel %vm5822_vm4, 0, %v281_v44 }
  0x9c   : > { %1955 = vrot.lane.b32.xlu0 %v6396_v11, %s5733_s26  ;;  %v911_v11 = vld [vmem:[#allocation2 + $0xa4] sm:$0x1]  ;;  %v1425_v25 = vrot.slane %v1424_v28, 4  ;;  %v727_v13 = vor.u32 %v725_v63, %v724_v42  ;;  %v728_v56 = vrot.slane %v724_v42, 4  ;;  %283 = vst [vmem:[#allocation2 + $0xb4] sm:$0x1] %v282_v51 }
  0x9d   : > { %1957 = vrot.lane.b32.xlu1 %v6567_v37, %s5733_s26  ;;  %v6603_v54 = vpop.permute.xlu0 %1851  ;;  %v912_v33 = vsel %vm5822_vm4, %v720_v29, %v911_v11  ;;  %v494_v29 = vld [vmem:[%s5850_s9 + $0x70] sm:$0xf]  ;;  %v6642_v11 = vrot.slane %v1427_v34, 5  ;;  %v732_v10 = vrot.slane %v730_v24, 7  ;;  %v496_v42 = vld [vmem:[%s5850_s9 + $0x78] sm:$0xf] }
  0x9e   : > { %913 = vst [vmem:[#allocation2 + $0xa4] sm:$0x1] %v912_v33  ;;  %v335_v33 = vsel %vm5854_vm6, 0, %v334_v62  ;;  %v915_v28 = vsel %vm5876_vm9, %v727_v13, %v914_v59  ;;  %v739_v20 = vshrl.u32 %v494_v29, 16  ;;  %v742_v63 = vshll.u32 %v494_v29, 16 }
  0x9f   : > { %v1434_v38 = vor.u32 %v1433_v45, %v6642_v11  ;;  %v1430_v27 = vsel %vm5979_vm1, %v1425_v25, %v6642_v11  ;;  %336 = vst [vmem:[#allocation2 + $0xb0] sm:$0x1] %v335_v33  ;;  %v284_v45 = vld [vmem:[#allocation2 + $0xc0] sm:$0x1]  ;;  %916 = vst [vmem:[#allocation2 + $0xa8] sm:$0xf] %v915_v28  ;;  %v735_v25 = vor.u32 %v733_v30, %v732_v10 }
  0xa0   : > { %2031 = vrot.lane.b32.xlu0 %v6398_v43, %s5731_s14  ;;  %v1362_v43 = vor.u32 %v6584_v14, %v6601_v17  ;;  %v737_v13 = vrot.slane %v732_v10, 4  ;;  %v741_v33 = vrot.slane %v739_v20, 7  ;;  %v338_v31 = vsel %vm5854_vm6, 0, %v337_v1 }
  0xa1   : > { %2033 = vrot.lane.b32.xlu1 %v6572_v49, %s5731_s14  ;;  %v6639_v4 = vpop.permute.xlu0 %2089  ;;  %v1435_v44 = vrot.slane %v1434_v38, 4  ;;  %v285_v29 = vsel %vm5822_vm4, 0, %v284_v45  ;;  %v736_v30 = vsel %vm5864_vm8, %v728_v56, %v735_v25  ;;  %339 = vst [vmem:[#allocation2 + $0xbc] sm:$0x1] %v338_v31  ;;  %v756_v10 = vshrl.u32 %v496_v42, 16 }
  0xa2   : > { %286 = vst [vmem:[#allocation2 + $0xc0] sm:$0x1] %v285_v29  ;;  %917 = vst.msk [vmem:[#allocation2 + $0xac] sm:$0xf] %vm224_vm0, %v736_v30  ;;  %v744_v20 = vor.u32 %v742_v63, %v741_v33  ;;  %v745_v45 = vrot.slane %v741_v33, 4  ;;  %v759_v56 = vshll.u32 %v496_v42, 16 }
  0xa3   : > { %v1782_v3 = vpop.permute.xlu1 %1781  ;;  %v6720_v14 = vrot.slane %v1383_v9, 4  ;;  %vm2229_vm5 = vcmask 261344  }
  0xa4   : > { %2101 = vrot.lane.b32.xlu0 %v6340_v52, %s5728_s11  ;;  %v495_v52 = vld [vmem:[%s5850_s9 + $0x74] sm:$0xf] }
  0xa5   : > { %2103 = vrot.lane.b32.xlu1 %v6362_v55, %s5728_s11  ;;  %v976_v62 = vld [vmem:[#allocation2 + $0xa4] sm:$0x1]  ;;  %v747_v5 = vshrl.u32 %v495_v52, 16  ;;  %v750_v50 = vshll.u32 %v495_v52, 16 }
  0xa6   : > { %v1437_v11 = vshll.u32 %v976_v62, 16  ;;  %v1717_v59 = vrot.slane %v976_v62, 5  ;;  %v340_v62 = vld [vmem:[#allocation2 + $0xc8] sm:$0x1]  ;;  %v918_v25 = vld [vmem:[#allocation2 + $0xb0] sm:$0x1] }
  0xa7   : > { %v6654_v34 = vpop.permute.xlu1 %1853  ;;  %v6666_v51 = vrot.slane %v747_v5, 7  ;;  %v497_v5 = vld [vmem:[%s5850_s9 + $0x7c] sm:$0xf]  ;;  %v919_v42 = vsel %vm5822_vm4, %v737_v13, %v918_v25 }
  0xa8   : > { %2193 = vrot.lane.b32.xlu0 %v6567_v37, %s5734_s30  ;;  %v1439_v38 = vrot.slane %v1437_v11, 5  ;;  %v1718_v28 = vsel %vm5950_vm15, %v1716_v16, %v1717_v59  ;;  %v343_v11 = vld [vmem:[#allocation2 + $0xd4] sm:$0x1]  ;;  %v767_v33 = vshll.u32 %v497_v5, 16  ;;  %920 = vst [vmem:[#allocation2 + $0xb0] sm:$0x1] %v919_v42 }
  0xa9   : > { %2195 = vrot.lane.b32.xlu1 %v6599_v48, %s5734_s30  ;;  %v6683_v1 = vcombine.low %v1715_v18, %v1718_v28  ;;  %v752_v16 = vor.u32 %v750_v50, %v6666_v51  ;;  %v287_v18 = vld [vmem:[#allocation2 + $0xcc] sm:$0x1]  ;;  %v341_v28 = vsel %vm5854_vm6, 0, %v340_v62  ;;  %v344_v30 = vsel %vm5854_vm6, 0, %v343_v11 }
  0xaa   : > { %v1538_v24 = vpop.permute.xlu0 %1537  ;;  %v1440_v31 = vsel %vm5979_vm1, %v1435_v44, %v1439_v38  ;;  %v6716_v38 = vrot.slane %v1379_v22, 5  ;;  %v288_v22 = vsel %vm5822_vm4, 0, %v287_v18  ;;  %342 = vst [vmem:[#allocation2 + $0xc8] sm:$0x1] %v341_v28  ;;  %345 = vst [vmem:[#allocation2 + $0xd4] sm:$0x1] %v344_v30  ;;  %v1358_v18 = vsel %vm5979_vm1, %v6627_v47, %v6601_v17 }
  0xab   : > { %1586 = vst.msk [vmem:[#allocation4] sm:$0xff] %vm1585_vm10, %v1538_v24  ;;  %v6673_v52 = vpop.permute.xlu1 %2091  ;;  %v6695_v63 = vcombine.low %v1430_v27, %v1440_v31  ;;  %v753_v50 = vsel %vm5864_vm8, %v745_v45, %v752_v16  ;;  %v921_v24 = vld [vmem:[#allocation2 + $0xb4] sm:$0xf]  ;;  %v754_v27 = vrot.slane %v6666_v51, 4  ;;  %v925_v45 = vld [vmem:[#allocation2 + $0xbc] sm:$0x1] }
  0xac   : > { %1830 = vst.msk [vmem:[#allocation4] sm:$0xff] %vm1829_vm11, %v1782_v3  ;;  %2269 = vrot.lane.b32.xlu0 %v6572_v49, %s5732_s17  ;;  %v758_v3 = vrot.slane %v756_v10, 7  ;;  %v922_v44 = vsel %vm5876_vm9, %v744_v20, %v921_v24  ;;  %v1373_v10 = vshll.u32 %v6534_v58, 16  ;;  %v6736_v20 = vld [vmem:[#allocation2 + $0xa8] sm:$0xf]  ;;  %vm2067_vm6 = vcmask 195744  }
  0xad   : > { %1553 = vrot.lane.b32.xlu1 %v6567_v37, %s5730_s13  ;;  %1900 = vst.msk [vmem:[#allocation4] sm:$0xff] %vm1899_vm13, %v6603_v54  ;;  %v764_v37 = vshrl.u32 %v497_v5, 16  ;;  %v6704_v54 = vrot.slane %v1362_v43, 4  ;;  %923 = vst [vmem:[#allocation2 + $0xb4] sm:$0xf] %v922_v44  ;;  %v1370_v5 = vshrl.u32 %v6534_v58, 16 }
  0xae   : > { %v6693_v59 = vpop.permute.xlu0 %2019  ;;  %924 = vst.msk [vmem:[#allocation2 + $0xb8] sm:$0xf] %vm224_vm0, %v753_v50  ;;  %v761_v43 = vor.u32 %v759_v56, %v758_v3  ;;  %v762_v51 = vrot.slane %v758_v3, 4  ;;  %289 = vst [vmem:[#allocation2 + $0xcc] sm:$0x1] %v288_v22  ;;  %v5200_v6 = vrot.slane %v6736_v20, 9  ;;  %v926_v3 = vsel %vm5822_vm4, %v754_v27, %v925_v45 }
  0xaf   : > { %v6699_v29 = vpop.permute.xlu1 %1783  ;;  %v6722_v13 = vrot.slane %v764_v37, 7  ;;  %v6741_v31 = vld [vmem:[#allocation2 + $0xac] sm:$0xf]  ;;  %v928_v56 = vld [vmem:[#allocation2 + $0xc0] sm:$0xf]  ;;  %v8567_v11 = vrot.slane %v6458_v36, 9  ;;  %v1368_v36 = vsel %vm5979_vm1, %v6704_v54, %v6610_v61 }
  0xb0   : > { %2271 = vrot.lane.b32.xlu0 %v6579_v12, %s5732_s17  ;;  %v8568_v50 = vrot.slane %v6561_v39, 5  ;;  %927 = vst [vmem:[#allocation2 + $0xbc] sm:$0x1] %v926_v3  ;;  %v1721_v39 = vrot.slane %v6741_v31, 5  ;;  %v929_v17 = vsel %vm5876_vm9, %v761_v43, %v928_v56  ;;  %v1372_v47 = vrot.slane %v1370_v5, 4  ;;  %vm7011_vm9 = vmand %vm349_vm3, %vm234_vm2 }
  0xb1   : > { %1555 = vrot.lane.b32.xlu1 %v6599_v48, %s5730_s13  ;;  %v769_v16 = vor.u32 %v767_v33, %v6722_v13  ;;  %v1694_v25 = vsel %vm5950_vm15, %v8567_v11, %v1693_v15  ;;  %v1375_v37 = vrot.slane %v1373_v10, 5  ;;  %v1386_v33 = vor.u32 %v6720_v14, %v6716_v38  ;;  %930 = vst [vmem:[#allocation2 + $0xc0] sm:$0xf] %v929_v17  ;;  %v6787_v42 = vld [vmem:[#allocation2 + $0xb0] sm:$0x1] }
  0xb2   : > { %v6732_v9 = vpop.permute.xlu0 %2257  ;;  %v1697_v24 = vsel %vm5950_vm15, %v6614_v7, %v8568_v50  ;;  %v1722_v26 = vsel %vm5950_vm15, %v5200_v6, %v1721_v39  ;;  %v1723_v27 = vrot.slane %v1721_v39, 4  ;;  %v6793_v14 = vcombine.low %v1358_v18, %v1368_v36 }
  0xb3   : > { %v6739_v62 = vpop.permute.xlu1 %2021  ;;  %v770_v15 = vsel %vm5864_vm8, %v762_v51, %v769_v16  ;;  %v6795_v51 = vcombine.low %v1694_v25, %v1697_v24  ;;  %v1389_v28 = vshll.u32 %v6773_v46, 16  ;;  %v1724_v22 = vrot.slane %v6787_v42, 5 }
  0xb4   : > { %1797 = vrot.lane.b32.xlu0 %v6572_v49, %s5729_s12  ;;  %v6765_v49 = vcombine.low %v6736_v20, %v6741_v31  ;;  %931 = vst.msk [vmem:[#allocation2 + $0xc4] sm:$0xf] %vm224_vm0, %v770_v15  ;;  %v980_v44 = vld [vmem:[#allocation2 + $0xb4] sm:$0xf]  ;;  %v1376_v6 = vor.u32 %v1375_v37, %v1372_v47  ;;  %v1387_v3 = vrot.slane %v1386_v33, 4  ;;  %v771_v47 = vrot.slane %v6722_v13, 4 }
  0xb5   : > { %1799 = vrot.lane.b32.xlu1 %v6579_v12, %s5729_s12  ;;  %v981_v61 = vld [vmem:[#allocation2 + $0xb8] sm:$0xf]  ;;  %v1466_v5 = vshrl.u32 %v980_v44, 16  ;;  %v1469_v10 = vshll.u32 %v980_v44, 16  ;;  %v5201_v15 = vrot.slane %v980_v44, 9  ;;  %v1391_v37 = vrot.slane %v1389_v28, 5 }
  0xb6   : > { %v6780_v7 = vpop.permute.xlu0 %2259  ;;  %1100 = vst.msk [vmem:[#allocation4 + $0x70] sm:$0xff] %vm8549_vm12, %v6765_v49  ;;  %v1479_v43 = vshrl.u32 %v981_v61, 16  ;;  %v6801_v30 = vcombine.low %v980_v44, %v981_v61  ;;  %v1475_v45 = vshll.u32 %v981_v61, 16  ;;  %v1728_v17 = vrot.slane %v981_v61, 5 }
  0xb7   : > { %v1946_v54 = vpop.permute.xlu1 %1945  ;;  %v982_v25 = vld [vmem:[#allocation2 + $0xbc] sm:$0x1]  ;;  %v1468_v50 = vrot.slane %v1466_v5, 4  ;;  %v1471_v24 = vrot.slane %v1469_v10, 5  ;;  %vm2305_vm0 = vcmask 294144  }
  0xb8   : > { %1867 = vrot.lane.b32.xlu0 %v6362_v55, %s5727_s10  ;;  %v1725_v55 = vsel %vm5950_vm15, %v1723_v27, %v1724_v22  ;;  %v1481_v56 = vrot.slane %v1479_v43, 4  ;;  %1101 = vst.msk [vmem:[#allocation4 + $0x78] sm:$0xff] %vm8549_vm12, %v6801_v30  ;;  %v1477_v36 = vrot.slane %v1475_v45, 5  ;;  %v1485_v39 = vshll.u32 %v982_v25, 16  ;;  %v932_v43 = vld [vmem:[#allocation2 + $0xc8] sm:$0x1] }
  0xb9   : > { %1869 = vrot.lane.b32.xlu1 %v6468_v40, %s5727_s10  ;;  %v6806_v11 = vcombine.low %v1722_v26, %v1725_v55  ;;  %v1472_v33 = vor.u32 %v1471_v24, %v1468_v50  ;;  %v1731_v27 = vrot.slane %v982_v25, 5  ;;  %v1729_v61 = vsel %vm5950_vm15, %v5201_v15, %v1728_v17 }
  0xba   : > { %v1540_v16 = vpop.permute.xlu0 %1539  ;;  %v1482_v26 = vor.u32 %v1481_v56, %v1477_v36  ;;  %v1487_v22 = vrot.slane %v1485_v39, 5  ;;  %v1730_v13 = vrot.slane %v1728_v17, 4  ;;  %v1394_v55 = vshrl.u32 %v6546_v23, 16 }
  0xbb   : > { %1587 = vst.msk [vmem:[#allocation4 + $0x8] sm:$0xff] %vm1585_vm10, %v1540_v16  ;;  %v2184_v18 = vpop.permute.xlu1 %2183  ;;  %v1473_v44 = vrot.slane %v1472_v33, 4  ;;  %v1407_v56 = vshrl.u32 %v6548_v2, 16  ;;  %vm8550_vm12 = vcmask 60416   ;;  %vm8572_vm2 = vsmask.f32 7938 }
  0xbc   : > { %1831 = vst.msk [vmem:[#allocation4 + $0x8] sm:$0xff] %vm1829_vm11, %v6699_v29  ;;  %1959 = vrot.lane.b32.xlu0 %v6599_v48, %s5733_s26  ;;  %v1377_v48 = vrot.slane %v1376_v6, 4  ;;  %v1483_v28 = vrot.slane %v1482_v26, 4  ;;  %v1703_v6 = vrot.slane %v6773_v46, 5  ;;  %v1413_v26 = vshll.u32 %v6589_v32, 16 }
  0xbd   : > { %1901 = vst.msk [vmem:[#allocation4 + $0x8] sm:$0xff] %vm1899_vm13, %v6654_v34  ;;  %1961 = vrot.lane.b32.xlu1 %v6793_v14, %s5733_s26  ;;  %v1409_v24 = vrot.slane %v1407_v56, 4 }
  0xbe   : > { %1993 = vst.msk [vmem:[#allocation4 + $0x8] sm:$0xff] %vm1991_vm14, %v1946_v54  ;;  %v1944_v29 = vpop.permute.xlu0 %1943  ;;  %v933_v54 = vsel %vm5822_vm4, %v771_v47, %v932_v43  ;;  %vm2365_vm4 = vcmask 293888  }
  0xbf   : > { %2069 = vst.msk [vmem:[#allocation4 + $0x8] sm:$0xff] %vm2067_vm6, %v6739_v62  ;;  %v1542_v34 = vpop.permute.xlu1 %1541  ;;  %v1732_v62 = vsel %vm5950_vm15, %v1730_v13, %v1731_v27  ;;  %934 = vst [vmem:[#allocation2 + $0xc8] sm:$0x1] %v933_v54 }
  0xc0   : > { %1992 = vst.msk [vmem:[#allocation4] sm:$0xff] %vm1991_vm14, %v1944_v29  ;;  %2035 = vrot.lane.b32.xlu0 %v6579_v12, %s5731_s14  ;;  %v1478_v12 = vsel %vm5979_vm1, %v1473_v44, %v1477_v36  ;;  %v6846_v5 = vcombine.low %v1729_v61, %v1732_v62 }
  0xc1   : > { %2068 = vst.msk [vmem:[#allocation4] sm:$0xff] %vm2067_vm6, %v6693_v59  ;;  %2037 = vrot.lane.b32.xlu1 %v6795_v51, %s5731_s14  ;;  %v1488_v59 = vsel %vm5979_vm1, %v1483_v28, %v1487_v22  ;;  %v1415_v22 = vrot.slane %v1413_v26, 5 }
  0xc2   : > { %2139 = vst.msk [vmem:[#allocation4 + $0x8] sm:$0xff] %vm2137_vm7, %v6673_v52  ;;  %2138 = vst.msk [vmem:[#allocation4] sm:$0xff] %vm2137_vm7, %v6639_v4  ;;  %v1700_v52 = vrot.slane %v6536_v8, 5  ;;  %v2182_v0 = vpop.permute.xlu0 %2181  ;;  %v1382_v4 = vsel %vm5979_vm1, %v1377_v48, %v6716_v38  ;;  %v1392_v8 = vsel %vm5979_vm1, %v1387_v3, %v1391_v37  ;;  %v6855_v10 = vcombine.low %v1478_v12, %v1488_v59 }
  0xc3   : > { %1588 = vst.msk [vmem:[#allocation4 + $0x10] sm:$0xff] %vm1585_vm10, %v1542_v34  ;;  %v1544_v45 = vpop.permute.xlu1 %1543  ;;  %v6865_v38 = vcombine.low %v1382_v4, %v1392_v8  ;;  %v1445_v4 = vshll.u32 %v6736_v20, 16  ;;  %v1455_v8 = vshrl.u32 %v6741_v31, 16 }
  0xc4   : > { %2231 = vst.msk [vmem:[#allocation4 + $0x8] sm:$0xff] %vm2229_vm5, %v2184_v18  ;;  %2230 = vst.msk [vmem:[#allocation4] sm:$0xff] %vm2229_vm5, %v2182_v0  ;;  %2105 = vrot.lane.b32.xlu0 %v6468_v40, %s5728_s11  ;;  %v1702_v16 = vrot.slane %v1700_v52, 4  ;;  %v1403_v40 = vshll.u32 %v6548_v2, 16  ;;  %v1396_v2 = vrot.slane %v1394_v55, 4  ;;  %v1442_v0 = vshrl.u32 %v6736_v20, 16 }
  0xc5   : > { %2307 = vst.msk [vmem:[#allocation4 + $0x8] sm:$0xff] %vm2305_vm0, %v6780_v7  ;;  %2306 = vst.msk [vmem:[#allocation4] sm:$0xff] %vm2305_vm0, %v6732_v9  ;;  %2107 = vrot.lane.b32.xlu1 %v6544_v41, %s5728_s11  ;;  %v5197_v7 = vrot.slane %v6534_v58, 9  ;;  %v1397_v9 = vshll.u32 %v6546_v23, 16  ;;  %v1447_v20 = vrot.slane %v1445_v4, 5 }
  0xc6   : > { %1589 = vst.msk [vmem:[#allocation4 + $0x18] sm:$0xff] %vm1585_vm10, %v1544_v45  ;;  %v1786_v3 = vpop.permute.xlu0 %1785  ;;  %v1704_v23 = vsel %vm5950_vm15, %v1702_v16, %v1703_v6  ;;  %v1405_v50 = vrot.slane %v1403_v40, 5  ;;  %v1451_v45 = vshll.u32 %v6741_v31, 16  ;;  %v1444_v16 = vrot.slane %v1442_v0, 4 }
  0xc7   : > { %1832 = vst.msk [vmem:[#allocation4 + $0x10] sm:$0xff] %vm1829_vm11, %v1786_v3  ;;  %v1788_v18 = vpop.permute.xlu1 %1787  ;;  %v1701_v58 = vsel %vm5950_vm15, %v5197_v7, %v1700_v52  ;;  %v1399_v25 = vrot.slane %v1397_v9, 5  ;;  %v1457_v3 = vrot.slane %v1455_v8, 4  ;;  %v1461_v40 = vshll.u32 %v6787_v42, 16 }
  0xc8   : > { %2197 = vrot.lane.b32.xlu0 %v6793_v14, %s5734_s30  ;;  %1833 = vst.msk [vmem:[#allocation4 + $0x18] sm:$0xff] %vm1829_vm11, %v1788_v18  ;;  %v5213_v17 = vcombine.low %v1701_v58, %v1704_v23  ;;  %v1410_v33 = vor.u32 %v1409_v24, %v1405_v50  ;;  %v1453_v6 = vrot.slane %v1451_v45, 5  ;;  %v1448_v9 = vor.u32 %v1447_v20, %v1444_v16  ;;  %v363_v45 = vld [vmem:[#allocation3 + $0x18] sm:$0x1] }
  0xc9   : > { %2199 = vrot.lane.b32.xlu1 %v6865_v38, %s5734_s30  ;;  %v1400_v37 = vor.u32 %v1399_v25, %v1396_v2  ;;  %v1463_v2 = vrot.slane %v1461_v40, 5  ;;  %v8571_v16 = vmov 0  }
  0xca   : > { %v1856_v46 = vpop.permute.xlu0 %1855  ;;  %v1411_v48 = vrot.slane %v1410_v33, 4  ;;  %v1458_v56 = vor.u32 %v1457_v3, %v1453_v6  ;;  %v1449_v23 = vrot.slane %v1448_v9, 4  ;;  %v6979_v33 = vld [vmem:[#allocation2 + $0xc0] sm:$0xf]  ;;  %347 = vst.msk [vmem:[#allocation3] sm:$0xf] %vm8550_vm12, %v8571_v16 }
  0xcb   : > { %1902 = vst.msk [vmem:[#allocation4 + $0x10] sm:$0xff] %vm1899_vm13, %v1856_v46  ;;  %v1858_v39 = vpop.permute.xlu1 %1857  ;;  %v1401_v29 = vrot.slane %v1400_v37, 4 }
  0xcc   : > { %v2322_v36 = vld [vmem:[#allocation4] sm:$0xff]  ;;  %v2323_v15 = vld [vmem:[#allocation4 + $0x8] sm:$0xff]  ;;  %2273 = vrot.lane.b32.xlu0 %v6795_v51, %s5732_s17  ;;  %1903 = vst.msk [vmem:[#allocation4 + $0x18] sm:$0xff] %vm1899_vm13, %v1858_v39  ;;  %v1416_v13 = vsel %vm5979_vm1, %v1411_v48, %v1415_v22  ;;  %v1459_v46 = vrot.slane %v1458_v56, 4 }
  0xcd   : > { %5473 = vmatprep.mubr.msk.bf16.mxu0 %vm2365_vm4, %v2322_v36  ;;  %1557 = vrot.lane.b32.xlu1 %v6793_v14, %s5730_s13  ;;  %v1406_v61 = vsel %vm5979_vm1, %v1401_v29, %v1405_v50  ;;  %v1454_v50 = vsel %vm5979_vm1, %v1449_v23, %v1453_v6  ;;  %348 = vst.msk [vmem:[#allocation3 + $0x4] sm:$0xf] %vm8550_vm12, %v8571_v16  ;;  %352 = vst.msk [vmem:[#allocation3 + $0xcc] sm:$0xf] %vm8550_vm12, %v8571_v16 }
  0xce   : > { %5474 = vmatmul.mubr.msk.bf16.vlgmr.msra.gmra.mrb[0].mxu0 %vm2365_vm4, %v2323_v15  ;;  %v1948_v47 = vpop.permute.xlu0 %1947  ;;  %v1464_v24 = vsel %vm5979_vm1, %v1459_v46, %v1463_v2  ;;  %353 = vst.msk [vmem:[#allocation3 + $0xd0] sm:$0xf] %vm8550_vm12, %v8571_v16  ;;  %vm7081_vm12 = vmand %vm349_vm3, %vm8572_vm2  ;;  %vm8575_vm3 = vcmask 31744  }
  0xcf   : > { %1994 = vst.msk [vmem:[#allocation4 + $0x10] sm:$0xff] %vm1991_vm14, %v1948_v47  ;;  %v1950_v27 = vpop.permute.xlu1 %1949 }
  0xd0   : > { %2275 = vrot.lane.b32.xlu0 %v5213_v17, %s5732_s17  ;;  %1995 = vst.msk [vmem:[#allocation4 + $0x18] sm:$0xff] %vm1991_vm14, %v1950_v27  ;;  %v1917_v27 = vshrl.u32 %v6979_v33, 16 }
  0xd1   : > { %1559 = vrot.lane.b32.xlu1 %v6865_v38, %s5730_s13 }
  0xd2   : > { %v2024_v43 = vpop.permute.xlu0 %2023 }
  0xd3   : > { %2070 = vst.msk [vmem:[#allocation4 + $0x10] sm:$0xff] %vm2067_vm6, %v2024_v43  ;;  %v2026_v14 = vpop.permute.xlu1 %2025  ;;  %v1920_v43 = vshll.u32 %v6979_v33, 16 }
  0xd4   : > { %2071 = vst.msk [vmem:[#allocation4 + $0x18] sm:$0xff] %vm2067_vm6, %v2026_v14  ;;  %1801 = vrot.lane.b32.xlu0 %v6795_v51, %s5729_s12  ;;  %v5182_v51 = vcombine.low %v1406_v61, %v1416_v13 }
  0xd5   : > { %1803 = vrot.lane.b32.xlu1 %v5213_v17, %s5729_s12  ;;  %v1922_v61 = vrot.slane %v1920_v43, 5 }
  0xd6   : > { %v2094_v32 = vpop.permute.xlu0 %2093 }
  0xd7   : > { %2140 = vst.msk [vmem:[#allocation4 + $0x10] sm:$0xff] %vm2137_vm7, %v2094_v32  ;;  %v2096_v34 = vpop.permute.xlu1 %2095  ;;  %v1919_v32 = vrot.slane %v1917_v27, 4 }
  0xd8   : > { %2141 = vst.msk [vmem:[#allocation4 + $0x18] sm:$0xff] %vm2137_vm7, %v2096_v34  ;;  %1871 = vrot.lane.b32.xlu0 %v6544_v41, %s5727_s10 }
  0xd9   : > { %1873 = vrot.lane.b32.xlu1 %v6557_v60, %s5727_s10 }
  0xda   : > { %v2186_v44 = vpop.permute.xlu0 %2185 }
  0xdb   : > { %2232 = vst.msk [vmem:[#allocation4 + $0x10] sm:$0xff] %vm2229_vm5, %v2186_v44  ;;  %v2188_v28 = vpop.permute.xlu1 %2187  ;;  %v985_v44 = vld [vmem:[#allocation2 + $0xc8] sm:$0x1] }
  0xdc   : > { %2233 = vst.msk [vmem:[#allocation4 + $0x18] sm:$0xff] %vm2229_vm5, %v2188_v28  ;;  %1963 = vrot.lane.b32.xlu0 %v6865_v38, %s5733_s26  ;;  %v7004_v28 = vld [vmem:[#allocation2 + $0xd0] sm:$0xf] }
  0xdd   : > { %1965 = vrot.lane.b32.xlu1 %v5182_v51, %s5733_s26  ;;  %v2168_v4 = vshrl.u32 %v7004_v28, 16  ;;  %v2164_v8 = vshll.u32 %v7004_v28, 16 }
  0xde   : > { %v2262_v62 = vpop.permute.xlu0 %2261 }
  0xdf   : > { %2308 = vst.msk [vmem:[#allocation4 + $0x10] sm:$0xff] %vm2305_vm0, %v2262_v62  ;;  %v1546_v54 = vpop.permute.xlu1 %1545  ;;  %v2166_v56 = vrot.slane %v2164_v8, 5  ;;  %v2170_v40 = vrot.slane %v2168_v4, 4 }
  0xe0   : > { %1590 = vst.msk [vmem:[#allocation4 + $0x20] sm:$0xff] %vm1585_vm10, %v1546_v54  ;;  %2039 = vrot.lane.b32.xlu0 %v5213_v17, %s5731_s14  ;;  %v1923_v54 = vor.u32 %v1922_v61, %v1919_v32  ;;  %v412_v61 = vld [vmem:[#allocation3 + $0x8] sm:$0x1] }
  0xe1   : > { %2041 = vrot.lane.b32.xlu1 %v6631_v19, %s5731_s14 }
  0xe2   : > { %v2264_v41 = vpop.permute.xlu0 %2263  ;;  %v1924_v6 = vrot.slane %v1923_v54, 4 }
  0xe3   : > { %2309 = vst.msk [vmem:[#allocation4 + $0x18] sm:$0xff] %vm2305_vm0, %v2264_v41  ;;  %v1548_v52 = vpop.permute.xlu1 %1547 }
  0xe4   : > { %1591 = vst.msk [vmem:[#allocation4 + $0x28] sm:$0xff] %vm1585_vm10, %v1548_v52  ;;  %2109 = vrot.lane.b32.xlu0 %v6557_v60, %s5728_s11  ;;  %v1936_v52 = vshll.u32 %v985_v44, 16 }
  0xe5   : > { %2111 = vrot.lane.b32.xlu1 %v6608_v57, %s5728_s11 }
  0xe6   : > { %v1790_v12 = vpop.permute.xlu0 %1789  ;;  %v2324_v59 = vld [vmem:[#allocation4 + $0x10] sm:$0xff] }
  0xe7   : > { %1834 = vst.msk [vmem:[#allocation4 + $0x20] sm:$0xff] %vm1829_vm11, %v1790_v12  ;;  %5477 = vmatprep.mubr.msk.bf16.mxu0 %vm2365_vm4, %v2324_v59  ;;  %v1792_v38 = vpop.permute.xlu1 %1791  ;;  %v7006_v12 = vld [vmem:[#allocation2 + $0xcc] sm:$0xf] }
  0xe8   : > { %1835 = vst.msk [vmem:[#allocation4 + $0x28] sm:$0xff] %vm1829_vm11, %v1792_v38  ;;  %2201 = vrot.lane.b32.xlu0 %v5182_v51, %s5734_s30 }
  0xe9   : > { %2203 = vrot.lane.b32.xlu1 %v6695_v63, %s5734_s30 }
  0xea   : > { %v1860_v60 = vpop.permute.xlu0 %1859  ;;  %v2325_v7 = vld [vmem:[#allocation4 + $0x18] sm:$0xff] }
  0xeb   : > { %1904 = vst.msk [vmem:[#allocation4 + $0x20] sm:$0xff] %vm1899_vm13, %v1860_v60  ;;  %5478 = vmatmul.mubr.msk.bf16.gmra.mrb[4].mxu0 %vm2365_vm4, %v2325_v7  ;;  %v1862_v31 = vpop.permute.xlu1 %1861  ;;  %v2155_v60 = vshrl.u32 %v7006_v12, 16  ;;  %v364_v7 = vsel %vm7011_vm9, 0, %v363_v45 }
  0xec   : > { %1905 = vst.msk [vmem:[#allocation4 + $0x28] sm:$0xff] %vm1899_vm13, %v1862_v31  ;;  %2277 = vrot.lane.b32.xlu0 %v6631_v19, %s5732_s17  ;;  %v1938_v31 = vrot.slane %v1936_v52, 5  ;;  %365 = vst [vmem:[#allocation3 + $0x18] sm:$0x1] %v364_v7  ;;  %v418_v52 = vld [vmem:[#allocation3 + $0x20] sm:$0x1] }
  0xed   : > { %1561 = vrot.lane.b32.xlu1 %v5182_v51, %s5730_s13  ;;  %v2157_v46 = vrot.slane %v2155_v60, 4  ;;  %v419_v45 = vsel %vm7081_vm12, 0, %v418_v52  ;;  %v421_v52 = vld [vmem:[#allocation3 + $0x2c] sm:$0x1] }
  0xee   : > { %v1952_v55 = vpop.permute.xlu0 %1951  ;;  %420 = vst [vmem:[#allocation3 + $0x20] sm:$0x1] %v419_v45 }
  0xef   : > { %1996 = vst.msk [vmem:[#allocation4 + $0x20] sm:$0xff] %vm1991_vm14, %v1952_v55  ;;  %v1954_v18 = vpop.permute.xlu1 %1953  ;;  %v2158_v55 = vshll.u32 %v7006_v12, 16 }
  0xf0   : > { %1997 = vst.msk [vmem:[#allocation4 + $0x28] sm:$0xff] %vm1991_vm14, %v1954_v18  ;;  %2279 = vrot.lane.b32.xlu0 %v6683_v1, %s5732_s17 }
  0xf1   : > { %1563 = vrot.lane.b32.xlu1 %v6695_v63, %s5730_s13 }
  0xf2   : > { %v2028_v58 = vpop.permute.xlu0 %2027 }
  0xf3   : > { %2072 = vst.msk [vmem:[#allocation4 + $0x20] sm:$0xff] %vm2067_vm6, %v2028_v58  ;;  %v2030_v25 = vpop.permute.xlu1 %2029  ;;  %v5220_v58 = vrot.slane %v6979_v33, 9 }
  0xf4   : > { %2073 = vst.msk [vmem:[#allocation4 + $0x28] sm:$0xff] %vm2067_vm6, %v2030_v25  ;;  %1805 = vrot.lane.b32.xlu0 %v6631_v19, %s5729_s12  ;;  %v5184_v19 = vcombine.low %v1454_v50, %v1464_v24  ;;  %v2160_v50 = vrot.slane %v2158_v55, 5 }
  0xf5   : > { %1807 = vrot.lane.b32.xlu1 %v6683_v1, %s5729_s12 }
  0xf6   : > { %v2098_v42 = vpop.permute.xlu0 %2097 }
  0xf7   : > { %2142 = vst.msk [vmem:[#allocation4 + $0x20] sm:$0xff] %vm2137_vm7, %v2098_v42  ;;  %v2100_v36 = vpop.permute.xlu1 %2099 }
  0xf8   : > { %2143 = vst.msk [vmem:[#allocation4 + $0x28] sm:$0xff] %vm2137_vm7, %v2100_v36  ;;  %1875 = vrot.lane.b32.xlu0 %v6608_v57, %s5727_s10  ;;  %v988_v36 = vld [vmem:[#allocation2 + $0xd4] sm:$0x1] }
  0xf9   : > { %1877 = vrot.lane.b32.xlu1 %v6765_v49, %s5727_s10 }
  0xfa   : > { %v2190_v39 = vpop.permute.xlu0 %2189 }
  0xfb   : > { %2234 = vst.msk [vmem:[#allocation4 + $0x20] sm:$0xff] %vm2229_vm5, %v2190_v39  ;;  %v2192_v15 = vpop.permute.xlu1 %2191  ;;  %v2171_v39 = vor.u32 %v2170_v40, %v2166_v56 }
  0xfc   : > { %2235 = vst.msk [vmem:[#allocation4 + $0x28] sm:$0xff] %vm2229_vm5, %v2192_v15  ;;  %1967 = vrot.lane.b32.xlu0 %v6695_v63, %s5733_s26  ;;  %v6981_v63 = vld [vmem:[#allocation2 + $0xc4] sm:$0xf] }
  0xfd   : > { %1969 = vrot.lane.b32.xlu1 %v5184_v19, %s5733_s26  ;;  %v1930_v29 = vshrl.u32 %v6981_v63, 16  ;;  %v1926_v48 = vshll.u32 %v6981_v63, 16  ;;  %v2011_v38 = vrot.slane %v6981_v63, 5  ;;  %v5218_v18 = vcombine.low %v6979_v33, %v6981_v63 }
  0xfe   : > { %v2266_v17 = vpop.permute.xlu0 %2265  ;;  %v2249_v63 = vrot.slane %v7004_v28, 5  ;;  %v2172_v43 = vrot.slane %v2171_v39, 4 }
  0xff   : > { %2310 = vst.msk [vmem:[#allocation4 + $0x20] sm:$0xff] %vm2305_vm0, %v2266_v17  ;;  %v1550_v47 = vpop.permute.xlu1 %1549  ;;  %v1928_v13 = vrot.slane %v1926_v48, 5  ;;  %v1932_v34 = vrot.slane %v1930_v29, 4  ;;  %v2013_v23 = vrot.slane %v2011_v38, 4  ;;  %v2012_v17 = vsel %vm5950_vm15, %v5220_v58, %v2011_v38  ;;  %v415_v38 = vld [vmem:[#allocation3 + $0x14] sm:$0x1] }
 0x100   : > { %1592 = vst.msk [vmem:[#allocation4 + $0x30] sm:$0xff] %vm1585_vm10, %v1550_v47  ;;  %2043 = vrot.lane.b32.xlu0 %v6683_v1, %s5731_s14  ;;  %v416_v16 = vsel %vm7081_vm12, 0, %v415_v38 }
 0x101   : > { %2045 = vrot.lane.b32.xlu1 %v6806_v11, %s5731_s14  ;;  %v1933_v41 = vor.u32 %v1932_v34, %v1928_v13  ;;  %v1929_v25 = vsel %vm5979_vm1, %v1924_v6, %v1928_v13  ;;  %417 = vst [vmem:[#allocation3 + $0x14] sm:$0x1] %v416_v16 }
 0x102   : > { %v2268_v57 = vpop.permute.xlu0 %2267 }
 0x103   : > { %2311 = vst.msk [vmem:[#allocation4 + $0x28] sm:$0xff] %vm2305_vm0, %v2268_v57  ;;  %v1552_v37 = vpop.permute.xlu1 %1551  ;;  %v1934_v3 = vrot.slane %v1933_v41, 4  ;;  %v2161_v57 = vor.u32 %v2160_v50, %v2157_v46 }
 0x104   : > { %1593 = vst.msk [vmem:[#allocation4 + $0x38] sm:$0xff] %vm1585_vm10, %v1552_v37  ;;  %2113 = vrot.lane.b32.xlu0 %v6765_v49, %s5728_s11  ;;  %v2174_v37 = vshll.u32 %v988_v36, 16 }
 0x105   : > { %2115 = vrot.lane.b32.xlu1 %v6801_v30, %s5728_s11  ;;  %v1939_v42 = vsel %vm5979_vm1, %v1934_v3, %v1938_v31  ;;  %v2162_v27 = vrot.slane %v2161_v57, 4 }
 0x106   : > { %v1794_v1 = vpop.permute.xlu0 %1793  ;;  %v2326_v26 = vld [vmem:[#allocation4 + $0x20] sm:$0xff]  ;;  %v2176_v29 = vrot.slane %v2174_v37, 5 }
 0x107   : > { %1836 = vst.msk [vmem:[#allocation4 + $0x30] sm:$0xff] %vm1829_vm11, %v1794_v1  ;;  %5481 = vmatprep.mubr.msk.bf16.mxu0 %vm2365_vm4, %v2326_v26  ;;  %v1796_v22 = vpop.permute.xlu1 %1795  ;;  %v357_v1 = vld [vmem:[#allocation3] sm:$0x1] }
 0x108   : > { %1837 = vst.msk [vmem:[#allocation4 + $0x38] sm:$0xff] %vm1829_vm11, %v1796_v22  ;;  %2205 = vrot.lane.b32.xlu0 %v5184_v19, %s5734_s30  ;;  %v358_v48 = vsel %vm7011_vm9, 0, %v357_v1  ;;  %v2177_v34 = vsel %vm5979_vm1, %v2172_v43, %v2176_v29 }
 0x109   : > { %2207 = vrot.lane.b32.xlu1 %v6855_v10, %s5734_s30  ;;  %359 = vst [vmem:[#allocation3] sm:$0x1] %v358_v48 }
 0x10a   : > { %v1864_v49 = vpop.permute.xlu0 %1863  ;;  %v2327_v14 = vld [vmem:[#allocation4 + $0x28] sm:$0xff] }
 0x10b   : > { %1906 = vst.msk [vmem:[#allocation4 + $0x30] sm:$0xff] %vm1899_vm13, %v1864_v49  ;;  %5482 = vmatmul.mubr.msk.bf16.gmra.mrb[8].mxu0 %vm2365_vm4, %v2327_v14  ;;  %v1866_v51 = vpop.permute.xlu1 %1865  ;;  %v5224_v49 = vrot.slane %v7006_v12, 9  ;;  %v2251_v14 = vrot.slane %v2249_v63, 4 }
 0x10c   : > { %1907 = vst.msk [vmem:[#allocation4 + $0x38] sm:$0xff] %vm1899_vm13, %v1866_v51  ;;  %2281 = vrot.lane.b32.xlu0 %v6806_v11, %s5732_s17  ;;  %v2252_v51 = vrot.slane %v988_v36, 5 }
 0x10d   : > { %1565 = vrot.lane.b32.xlu1 %v5184_v19, %s5730_s13  ;;  %v7053_v19 = vcombine.low %v1929_v25, %v1939_v42  ;;  %v2250_v4 = vsel %vm5950_vm15, %v5224_v49, %v2249_v63 }
 0x10e   : > { %v1956_v62 = vpop.permute.xlu0 %1955  ;;  %v2253_v8 = vsel %vm5950_vm15, %v2251_v14, %v2252_v51 }
 0x10f   : > { %1998 = vst.msk [vmem:[#allocation4 + $0x30] sm:$0xff] %vm1991_vm14, %v1956_v62  ;;  %v1958_v59 = vpop.permute.xlu1 %1957  ;;  %v360_v62 = vld [vmem:[#allocation3 + $0xc] sm:$0x1] }
 0x110   : > { %1999 = vst.msk [vmem:[#allocation4 + $0x38] sm:$0xff] %vm1991_vm14, %v1958_v59  ;;  %2283 = vrot.lane.b32.xlu0 %v6846_v5, %s5732_s17  ;;  %v361_v41 = vsel %vm7011_vm9, 0, %v360_v62  ;;  %v3286_v60 = vld [vmem:[#allocation3] sm:$0xf] }
 0x111   : > { %1567 = vrot.lane.b32.xlu1 %v6855_v10, %s5730_s13  ;;  %362 = vst [vmem:[#allocation3 + $0xc] sm:$0x1] %v361_v41  ;;  %v3486_v6 = vshrl.u32 %v3286_v60, 16  ;;  %v3489_v3 = vshll.u32 %v3286_v60, 16 }
 0x112   : > { %v2032_v20 = vpop.permute.xlu0 %2031 }
 0x113   : > { %2074 = vst.msk [vmem:[#allocation4 + $0x30] sm:$0xff] %vm2067_vm6, %v2032_v20  ;;  %v2034_v9 = vpop.permute.xlu1 %2033  ;;  %v3287_v20 = vld [vmem:[#allocation3 + $0x4] sm:$0xf]  ;;  %v3491_v40 = vrot.slane %v3489_v3, 5 }
 0x114   : > { %2075 = vst.msk [vmem:[#allocation4 + $0x38] sm:$0xff] %vm2067_vm6, %v2034_v9  ;;  %1809 = vrot.lane.b32.xlu0 %v6806_v11, %s5729_s12  ;;  %v2014_v11 = vrot.slane %v985_v44, 5  ;;  %v413_v44 = vsel %vm7081_vm12, 0, %v412_v61  ;;  %v3499_v31 = vshrl.u32 %v3287_v20, 16  ;;  %v3495_v55 = vshll.u32 %v3287_v20, 16 }
 0x115   : > { %1811 = vrot.lane.b32.xlu1 %v6846_v5, %s5729_s12  ;;  %414 = vst [vmem:[#allocation3 + $0x8] sm:$0x1] %v413_v44  ;;  %v5225_v9 = vcombine.low %v2250_v4, %v2253_v8  ;;  %v5294_v50 = vcombine.low %v3286_v60, %v3287_v20  ;;  %v4000_v57 = vrot.slane %v3287_v20, 5  ;;  %v366_v44 = vld [vmem:[#allocation3 + $0x24] sm:$0x1]  ;;  %s5735_s12 = smov 52  }
 0x116   : > { %v2102_v2 = vpop.permute.xlu0 %2101  ;;  %v2015_v47 = vsel %vm5950_vm15, %v2013_v23, %v2014_v11  ;;  %v3497_v46 = vrot.slane %v3495_v55, 5  ;;  %v367_v62 = vsel %vm7011_vm9, 0, %v366_v44 }
 0x117   : > { %2144 = vst.msk [vmem:[#allocation4 + $0x30] sm:$0xff] %vm2137_vm7, %v2102_v2  ;;  %v2104_v24 = vpop.permute.xlu1 %2103  ;;  %v3501_v2 = vrot.slane %v3499_v31, 4  ;;  %v4002_v63 = vrot.slane %v4000_v57, 4  ;;  %368 = vst [vmem:[#allocation3 + $0x24] sm:$0x1] %v367_v62 }
 0x118   : > { %2145 = vst.msk [vmem:[#allocation4 + $0x38] sm:$0xff] %vm2137_vm7, %v2104_v24  ;;  %1879 = vrot.lane.b32.xlu0 %v6801_v30, %s5727_s10  ;;  %v7065_v30 = vcombine.low %v2012_v17, %v2015_v47  ;;  %v436_v62 = vld [vmem:[#allocation3 + $0x68] sm:$0x1] }
 0x119   : > { %1881 = vrot.lane.b32.xlu1 %v5218_v18, %s5727_s10  ;;  %v3502_v24 = vor.u32 %v3501_v2, %v3497_v46 }
 0x11a   : > { %v2194_v15 = vpop.permute.xlu0 %2193 }
 0x11b   : > { %2236 = vst.msk [vmem:[#allocation4 + $0x30] sm:$0xff] %vm2229_vm5, %v2194_v15  ;;  %v2196_v33 = vpop.permute.xlu1 %2195  ;;  %v3503_v15 = vrot.slane %v3502_v24, 4  ;;  %v430_v24 = vld [vmem:[#allocation3 + $0x50] sm:$0x1] }
 0x11c   : > { %2237 = vst.msk [vmem:[#allocation4 + $0x38] sm:$0xff] %vm2229_vm5, %v2196_v33  ;;  %1971 = vrot.lane.b32.xlu0 %v6855_v10, %s5733_s26  ;;  %v5222_v10 = vcombine.low %v7006_v12, %v7004_v28  ;;  %v3288_v23 = vld [vmem:[#allocation3 + $0x8] sm:$0x1] }
 0x11d   : > { %1973 = vrot.lane.b32.xlu1 %v7053_v19, %s5733_s26  ;;  %v3505_v11 = vshll.u32 %v3288_v23, 16  ;;  %v4003_v1 = vrot.slane %v3288_v23, 5 }
 0x11e   : > { %v2270_v26 = vpop.permute.xlu0 %2269 }
 0x11f   : > { %2312 = vst.msk [vmem:[#allocation4 + $0x30] sm:$0xff] %vm2305_vm0, %v2270_v26  ;;  %v1554_v22 = vpop.permute.xlu1 %1553  ;;  %v4004_v29 = vsel %vm5950_vm15, %v4002_v63, %v4003_v1 }
 0x120   : > { %1594 = vst.msk [vmem:[#allocation4 + $0x40] sm:$0xff] %vm1585_vm10, %v1554_v22  ;;  %2047 = vrot.lane.b32.xlu0 %v6846_v5, %s5731_s14  ;;  %v2167_v5 = vsel %vm5979_vm1, %v2162_v27, %v2166_v56  ;;  %v3488_v56 = vrot.slane %v3486_v6, 4 }
 0x121   : > { %2049 = vrot.lane.b32.xlu1 %v7065_v30, %s5731_s14  ;;  %v5223_v54 = vcombine.low %v2167_v5, %v2177_v34 }
 0x122   : > { %v2272_v13 = vpop.permute.xlu0 %2271  ;;  %v3492_v42 = vor.u32 %v3491_v40, %v3488_v56  ;;  %v375_v56 = vld [vmem:[#allocation3 + $0x48] sm:$0x1] }
 0x123   : > { %2313 = vst.msk [vmem:[#allocation4 + $0x38] sm:$0xff] %vm2305_vm0, %v2272_v13  ;;  %v1556_v28 = vpop.permute.xlu1 %1555  ;;  %v369_v13 = vld [vmem:[#allocation3 + $0x30] sm:$0x1]  ;;  %v376_v40 = vsel %vm7011_vm9, 0, %v375_v56 }
 0x124   : > { %1595 = vst.msk [vmem:[#allocation4 + $0x48] sm:$0xff] %vm1585_vm10, %v1556_v28  ;;  %2117 = vrot.lane.b32.xlu0 %v5218_v18, %s5728_s11  ;;  %v3493_v36 = vrot.slane %v3492_v42, 4  ;;  %v370_v34 = vsel %vm7011_vm9, 0, %v369_v13  ;;  %377 = vst [vmem:[#allocation3 + $0x48] sm:$0x1] %v376_v40 }
 0x125   : > { %2119 = vrot.lane.b32.xlu1 %v5222_v10, %s5728_s11  ;;  %371 = vst [vmem:[#allocation3 + $0x30] sm:$0x1] %v370_v34  ;;  %v372_v42 = vld [vmem:[#allocation3 + $0x3c] sm:$0x1] }
 0x126   : > { %v1798_v12 = vpop.permute.xlu0 %1797  ;;  %v2328_v59 = vld [vmem:[#allocation4 + $0x30] sm:$0xff]  ;;  %v3498_v47 = vsel %vm5979_vm1, %v3493_v36, %v3497_v46  ;;  %v427_v36 = vld [vmem:[#allocation3 + $0x44] sm:$0x1] }
 0x127   : > { %1838 = vst.msk [vmem:[#allocation4 + $0x40] sm:$0xff] %vm1829_vm11, %v1798_v12  ;;  %5485 = vmatprep.mubr.msk.bf16.mxu0 %vm2365_vm4, %v2328_v59  ;;  %v1800_v7 = vpop.permute.xlu1 %1799  ;;  %v422_v12 = vsel %vm7081_vm12, 0, %v421_v52  ;;  %v433_v52 = vld [vmem:[#allocation3 + $0x5c] sm:$0x1] }
 0x128   : > { %1839 = vst.msk [vmem:[#allocation4 + $0x48] sm:$0xff] %vm1829_vm11, %v1800_v7  ;;  %2209 = vrot.lane.b32.xlu0 %v7053_v19, %s5734_s30  ;;  %v3507_v19 = vrot.slane %v3505_v11, 5  ;;  %423 = vst [vmem:[#allocation3 + $0x2c] sm:$0x1] %v422_v12 }
 0x129   : > { %2211 = vrot.lane.b32.xlu1 %v5223_v54, %s5734_s30  ;;  %v424_v54 = vld [vmem:[#allocation3 + $0x38] sm:$0x1] }
 0x12a   : > { %v2329_v18 = vld [vmem:[#allocation4 + $0x38] sm:$0xff]  ;;  %v1868_v58 = vpop.permute.xlu0 %1867  ;;  %v3508_v37 = vsel %vm5979_vm1, %v3503_v15, %v3507_v19  ;;  %v425_v41 = vsel %vm7081_vm12, 0, %v424_v54  ;;  %v431_v19 = vsel %vm7081_vm12, 0, %v430_v24 }
 0x12b   : > { %5486 = vmatmul.mubr.msk.bf16.gmra.mrb[12].mxu0 %vm2365_vm4, %v2329_v18  ;;  %1908 = vst.msk [vmem:[#allocation4 + $0x40] sm:$0xff] %vm1899_vm13, %v1868_v58  ;;  %v1870_v25 = vpop.permute.xlu1 %1869  ;;  %v5310_v33 = vcombine.low %v3498_v47, %v3508_v37  ;;  %426 = vst [vmem:[#allocation3 + $0x38] sm:$0x1] %v425_v41  ;;  %v437_v41 = vsel %vm7081_vm12, 0, %v436_v62 }
 0x12c   : > { %1909 = vst.msk [vmem:[#allocation4 + $0x48] sm:$0xff] %vm1899_vm13, %v1870_v25  ;;  %2285 = vrot.lane.b32.xlu0 %v7065_v30, %s5732_s17  ;;  %v5326_v30 = vrot.slane %v3286_v60, 9  ;;  %432 = vst [vmem:[#allocation3 + $0x50] sm:$0x1] %v431_v19 }
 0x12d   : > { %2287 = vrot.lane.b32.xlu1 %v5225_v9, %s5732_s17  ;;  %438 = vst [vmem:[#allocation3 + $0x68] sm:$0x1] %v437_v41  ;;  %s5738_s17 = smov 60  }
 0x12e   : > { %v1960_v39 = vpop.permute.xlu0 %1959  ;;  %v4001_v43 = vsel %vm5950_vm15, %v5326_v30, %v4000_v57 }
 0x12f   : > { %2000 = vst.msk [vmem:[#allocation4 + $0x40] sm:$0xff] %vm1991_vm14, %v1960_v39  ;;  %v1962_v17 = vpop.permute.xlu1 %1961  ;;  %v5342_v48 = vcombine.low %v4001_v43, %v4004_v29  ;;  %v428_v39 = vsel %vm7081_vm12, 0, %v427_v36  ;;  %v381_v43 = vld [vmem:[#allocation3 + $0x60] sm:$0x1] }
 0x130   : > { %2001 = vst.msk [vmem:[#allocation4 + $0x48] sm:$0xff] %vm1991_vm14, %v1962_v17  ;;  %3420 = vrot.lane.b32.xlu0 %v5294_v50, %s5730_s13  ;;  %v373_v50 = vsel %vm7011_vm9, 0, %v372_v42  ;;  %429 = vst [vmem:[#allocation3 + $0x44] sm:$0x1] %v428_v39  ;;  %v382_v29 = vsel %vm7011_vm9, 0, %v381_v43 }
 0x131   : > { %374 = vst [vmem:[#allocation3 + $0x3c] sm:$0x1] %v373_v50  ;;  %383 = vst [vmem:[#allocation3 + $0x60] sm:$0x1] %v382_v29  ;;  %v3030_v29 = vld [vmem:[#allocation3 + $0xc] sm:$0xf] }
 0x132   : > { %v2036_v26 = vpop.permute.xlu0 %2035 }
 0x133   : > { %2076 = vst.msk [vmem:[#allocation4 + $0x40] sm:$0xff] %vm2067_vm6, %v2036_v26  ;;  %v2038_v27 = vpop.permute.xlu1 %2037 }
 0x134   : > { %2077 = vst.msk [vmem:[#allocation4 + $0x48] sm:$0xff] %vm2067_vm6, %v2038_v27  ;;  %3917 = vrot.lane.b32.xlu0 %v5310_v33, %s5727_s10 }
 0x136   : > { %v2106_v22 = vpop.permute.xlu0 %2105 }
 0x137   : > { %2146 = vst.msk [vmem:[#allocation4 + $0x40] sm:$0xff] %vm2137_vm7, %v2106_v22  ;;  %v2108_v10 = vpop.permute.xlu1 %2107 }
 0x138   : > { %2147 = vst.msk [vmem:[#allocation4 + $0x48] sm:$0xff] %vm2137_vm7, %v2108_v10  ;;  %4158 = vrot.lane.b32.xlu0 %v5342_v48, %s5731_s14 }
 0x13a   : > { %v2198_v49 = vpop.permute.xlu0 %2197 }
 0x13b   : > { %2238 = vst.msk [vmem:[#allocation4 + $0x40] sm:$0xff] %vm2229_vm5, %v2198_v49  ;;  %v2200_v14 = vpop.permute.xlu1 %2199 }
 0x13c   : > { %2239 = vst.msk [vmem:[#allocation4 + $0x48] sm:$0xff] %vm2229_vm5, %v2200_v14 }
 0x13e   : > { %v2274_v61 = vpop.permute.xlu0 %2273 }
 0x13f   : > { %2314 = vst.msk [vmem:[#allocation4 + $0x40] sm:$0xff] %vm2305_vm0, %v2274_v61  ;;  %v1558_v5 = vpop.permute.xlu1 %1557 }
 0x140   : > { %1596 = vst.msk [vmem:[#allocation4 + $0x50] sm:$0xff] %vm1585_vm10, %v1558_v5 }
 0x142   : > { %v2276_v51 = vpop.permute.xlu0 %2275 }
 0x143   : > { %2315 = vst.msk [vmem:[#allocation4 + $0x48] sm:$0xff] %vm2305_vm0, %v2276_v51  ;;  %v1560_v28 = vpop.permute.xlu1 %1559  ;;  %v378_v51 = vld [vmem:[#allocation3 + $0x54] sm:$0x1] }
 0x144   : > { %1597 = vst.msk [vmem:[#allocation4 + $0x58] sm:$0xff] %vm1585_vm10, %v1560_v28  ;;  %v379_v28 = vsel %vm7011_vm9, 0, %v378_v51 }
 0x145   : > { %380 = vst [vmem:[#allocation3 + $0x54] sm:$0x1] %v379_v28 }
 0x146   : > { %v2330_v59 = vld [vmem:[#allocation4 + $0x40] sm:$0xff]  ;;  %v1802_v4 = vpop.permute.xlu0 %1801 }
 0x147   : > { %5489 = vmatprep.mubr.msk.bf16.mxu0 %vm2365_vm4, %v2330_v59  ;;  %1840 = vst.msk [vmem:[#allocation4 + $0x50] sm:$0xff] %vm1829_vm11, %v1802_v4  ;;  %v1804_v8 = vpop.permute.xlu1 %1803  ;;  %v434_v59 = vsel %vm7081_vm12, 0, %v433_v52  ;;  %v3034_v52 = vld [vmem:[#allocation3 + $0x14] sm:$0x1] }
 0x148   : > { %1841 = vst.msk [vmem:[#allocation4 + $0x58] sm:$0xff] %vm1829_vm11, %v1804_v8  ;;  %435 = vst [vmem:[#allocation3 + $0x5c] sm:$0x1] %v434_v59  ;;  %v442_v59 = vld [vmem:[#allocation3 + $0x80] sm:$0x1] }
 0x14a   : > { %v2331_v45 = vld [vmem:[#allocation4 + $0x48] sm:$0xff]  ;;  %v1872_v38 = vpop.permute.xlu0 %1871 }
 0x14b   : > { %5490 = vmatmul.mubr.msk.bf16.gmra.mrb[16].mxu0 %vm2365_vm4, %v2331_v45  ;;  %1910 = vst.msk [vmem:[#allocation4 + $0x50] sm:$0xff] %vm1899_vm13, %v1872_v38  ;;  %v1874_v60 = vpop.permute.xlu1 %1873 }
 0x14c   : > { %1911 = vst.msk [vmem:[#allocation4 + $0x58] sm:$0xff] %vm1899_vm13, %v1874_v60 }
 0x14e   : > { %v1964_v7 = vpop.permute.xlu0 %1963 }
 0x14f   : > { %2002 = vst.msk [vmem:[#allocation4 + $0x50] sm:$0xff] %vm1991_vm14, %v1964_v7  ;;  %v1966_v16 = vpop.permute.xlu1 %1965 }
 0x150   : > { %2003 = vst.msk [vmem:[#allocation4 + $0x58] sm:$0xff] %vm1991_vm14, %v1966_v16  ;;  %v5630_v16 = vld [vmem:[%s5850_s9] sm:$0xff]  }
 0x151   : > { %3270 = vst.msk [vmem:[#allocation5] sm:$0xff] %vm8575_vm3, %v5630_v16 }
 0x152   : > { %v2040_v20 = vpop.permute.xlu0 %2039 }
 0x153   : > { %2078 = vst.msk [vmem:[#allocation4 + $0x50] sm:$0xff] %vm2067_vm6, %v2040_v20  ;;  %v2042_v6 = vpop.permute.xlu1 %2041  ;;  %v387_v20 = vld [vmem:[#allocation3 + $0x78] sm:$0x1] }
 0x154   : > { %2079 = vst.msk [vmem:[#allocation4 + $0x58] sm:$0xff] %vm2067_vm6, %v2042_v6  ;;  %v388_v6 = vsel %vm7011_vm9, 0, %v387_v20 }
 0x155   : > { %389 = vst [vmem:[#allocation3 + $0x78] sm:$0x1] %v388_v6  ;;  %v5632_v6 = vld [vmem:[%s5850_s9 + $0x10] sm:$0xff]  }
 0x156   : > { %v2110_v3 = vpop.permute.xlu0 %2109 }
 0x157   : > { %2148 = vst.msk [vmem:[#allocation4 + $0x50] sm:$0xff] %vm2137_vm7, %v2110_v3  ;;  %v2112_v31 = vpop.permute.xlu1 %2111  ;;  %v7220_v3 = vld [vmem:[%s8542_s2] ss:$0 sm:$0xff] }
 0x158   : > { %2149 = vst.msk [vmem:[#allocation4 + $0x58] sm:$0xff] %vm2137_vm7, %v2112_v31 }
 0x15a   : > { %v2202_v55 = vpop.permute.xlu0 %2201 }
 0x15b   : > { %2240 = vst.msk [vmem:[#allocation4 + $0x50] sm:$0xff] %vm2229_vm5, %v2202_v55  ;;  %v2204_v9 = vpop.permute.xlu1 %2203 }
 0x15c   : > { %2241 = vst.msk [vmem:[#allocation4 + $0x58] sm:$0xff] %vm2229_vm5, %v2204_v9 }
 0x15e   : > { %v2278_v18 = vpop.permute.xlu0 %2277 }
 0x15f   : > { %2316 = vst.msk [vmem:[#allocation4 + $0x50] sm:$0xff] %vm2305_vm0, %v2278_v18  ;;  %v1562_v58 = vpop.permute.xlu1 %1561 }
 0x160   : > { %1598 = vst.msk [vmem:[#allocation4 + $0x60] sm:$0xff] %vm1585_vm10, %v1562_v58 }
 0x162   : > { %v2280_v23 = vpop.permute.xlu0 %2279 }
 0x163   : > { %2317 = vst.msk [vmem:[#allocation4 + $0x58] sm:$0xff] %vm2305_vm0, %v2280_v23  ;;  %v1564_v46 = vpop.permute.xlu1 %1563 }
 0x164   : > { %1599 = vst.msk [vmem:[#allocation4 + $0x68] sm:$0xff] %vm1585_vm10, %v1564_v46 }
 0x166   : > { %v1806_v2 = vpop.permute.xlu0 %1805  ;;  %v2332_v25 = vld [vmem:[#allocation4 + $0x50] sm:$0xff] }
 0x167   : > { %1842 = vst.msk [vmem:[#allocation4 + $0x60] sm:$0xff] %vm1829_vm11, %v1806_v2  ;;  %5493 = vmatprep.mubr.msk.bf16.mxu0 %vm2365_vm4, %v2332_v25  ;;  %v1808_v11 = vpop.permute.xlu1 %1807 }
 0x168   : > { %1843 = vst.msk [vmem:[#allocation4 + $0x68] sm:$0xff] %vm1829_vm11, %v1808_v11 }
 0x16a   : > { %v1876_v15 = vpop.permute.xlu0 %1875  ;;  %v2333_v17 = vld [vmem:[#allocation4 + $0x58] sm:$0xff] }
 0x16b   : > { %1912 = vst.msk [vmem:[#allocation4 + $0x60] sm:$0xff] %vm1899_vm13, %v1876_v15  ;;  %5494 = vmatmul.mubr.msk.bf16.gmra.mrb[20].mxu0 %vm2365_vm4, %v2333_v17  ;;  %v1878_v47 = vpop.permute.xlu1 %1877 }
 0x16c   : > { %1913 = vst.msk [vmem:[#allocation4 + $0x68] sm:$0xff] %vm1899_vm13, %v1878_v47 }
 0x16e   : > { %v1968_v57 = vpop.permute.xlu0 %1967 }
 0x16f   : > { %2004 = vst.msk [vmem:[#allocation4 + $0x60] sm:$0xff] %vm1991_vm14, %v1968_v57  ;;  %v1970_v37 = vpop.permute.xlu1 %1969 }
 0x170   : > { %2005 = vst.msk [vmem:[#allocation4 + $0x68] sm:$0xff] %vm1991_vm14, %v1970_v37 }
 0x172   : > { %v2044_v33 = vpop.permute.xlu0 %2043 }
 0x173   : > { %2080 = vst.msk [vmem:[#allocation4 + $0x60] sm:$0xff] %vm2067_vm6, %v2044_v33  ;;  %v2046_v30 = vpop.permute.xlu1 %2045 }
 0x174   : > { %2081 = vst.msk [vmem:[#allocation4 + $0x68] sm:$0xff] %vm2067_vm6, %v2046_v30 }
 0x176   : > { %v2114_v63 = vpop.permute.xlu0 %2113 }
 0x177   : > { %2150 = vst.msk [vmem:[#allocation4 + $0x60] sm:$0xff] %vm2137_vm7, %v2114_v63  ;;  %v2116_v1 = vpop.permute.xlu1 %2115  ;;  %v3037_v63 = vld [vmem:[#allocation3 + $0x18] sm:$0xf] }
 0x178   : > { %2151 = vst.msk [vmem:[#allocation4 + $0x68] sm:$0xff] %vm2137_vm7, %v2116_v1 }
 0x17a   : > { %v2206_v26 = vpop.permute.xlu0 %2205 }
 0x17b   : > { %2242 = vst.msk [vmem:[#allocation4 + $0x60] sm:$0xff] %vm2229_vm5, %v2206_v26  ;;  %v2208_v27 = vpop.permute.xlu1 %2207 }
 0x17c   : > { %2243 = vst.msk [vmem:[#allocation4 + $0x68] sm:$0xff] %vm2229_vm5, %v2208_v27 }
 0x17e   : > { %v2282_v48 = vpop.permute.xlu0 %2281 }
 0x17f   : > { %2318 = vst.msk [vmem:[#allocation4 + $0x60] sm:$0xff] %vm2305_vm0, %v2282_v48  ;;  %v1566_v22 = vpop.permute.xlu1 %1565 }
 0x180   : > { %1600 = vst.msk [vmem:[#allocation4 + $0x70] sm:$0xff] %vm1585_vm10, %v1566_v22 }
 0x182   : > { %v2284_v10 = vpop.permute.xlu0 %2283 }
 0x183   : > { %2319 = vst.msk [vmem:[#allocation4 + $0x68] sm:$0xff] %vm2305_vm0, %v2284_v10  ;;  %v1568_v49 = vpop.permute.xlu1 %1567 }
 0x184   : > { %1601 = vst.msk [vmem:[#allocation4 + $0x78] sm:$0xff] %vm1585_vm10, %v1568_v49  ;;  %vm8576_vm10 = vmmov %vm8572_vm2 }
 0x185   : > { %vm8583_vm2 = vmmov %vm8575_vm3 }
 0x186   : > { %v2334_v14 = vld [vmem:[#allocation4 + $0x60] sm:$0xff]  ;;  %v1810_v61 = vpop.permute.xlu0 %1809 }
 0x187   : > { %5497 = vmatprep.mubr.msk.bf16.mxu0 %vm2365_vm4, %v2334_v14  ;;  %1844 = vst.msk [vmem:[#allocation4 + $0x70] sm:$0xff] %vm1829_vm11, %v1810_v61  ;;  %v1812_v13 = vpop.permute.xlu1 %1811  ;;  %v3041_v14 = vld [vmem:[#allocation3 + $0x20] sm:$0x1] }
 0x188   : > { %1845 = vst.msk [vmem:[#allocation4 + $0x78] sm:$0xff] %vm1829_vm11, %v1812_v13  ;;  %vm8577_vm11 = vcmask 60416  }
 0x18a   : > { %v2335_v5 = vld [vmem:[#allocation4 + $0x68] sm:$0xff]  ;;  %v1880_v34 = vpop.permute.xlu0 %1879 }
 0x18b   : > { %5498 = vmatmul.mubr.msk.bf16.gmra.mrb[24].mxu0 %vm2365_vm4, %v2335_v5  ;;  %1914 = vst.msk [vmem:[#allocation4 + $0x70] sm:$0xff] %vm1899_vm13, %v1880_v34  ;;  %v1882_v44 = vpop.permute.xlu1 %1881 }
 0x18c   : > { %1915 = vst.msk [vmem:[#allocation4 + $0x78] sm:$0xff] %vm1899_vm13, %v1882_v44  ;;  %vm7234_vm13 = vmand %vm8577_vm11, %vm8576_vm10  ;;  %v384_v44 = vld [vmem:[#allocation3 + $0x6c] sm:$0x1] }
 0x18e   : > { %v1972_v54 = vpop.permute.xlu0 %1971 }
 0x18f   : > { %2006 = vst.msk [vmem:[#allocation4 + $0x70] sm:$0xff] %vm1991_vm14, %v1972_v54  ;;  %v1974_v12 = vpop.permute.xlu1 %1973 }
 0x190   : > { %2007 = vst.msk [vmem:[#allocation4 + $0x78] sm:$0xff] %vm1991_vm14, %v1974_v12  ;;  %v385_v12 = vsel %vm7011_vm9, 0, %v384_v44  ;;  %vm3965_vm14 = vcmask 162912  }
 0x191   : > { %386 = vst [vmem:[#allocation3 + $0x6c] sm:$0x1] %v385_v12 }
 0x192   : > { %v2048_v4 = vpop.permute.xlu0 %2047 }
 0x193   : > { %2082 = vst.msk [vmem:[#allocation4 + $0x70] sm:$0xff] %vm2067_vm6, %v2048_v4  ;;  %v2050_v8 = vpop.permute.xlu1 %2049 }
 0x194   : > { %2083 = vst.msk [vmem:[#allocation4 + $0x78] sm:$0xff] %vm2067_vm6, %v2050_v8  ;;  %vm8580_vm6 = vmmov %vm8577_vm11 }
 0x195   : > { %vm8586_vm11 = vmmov %vm8583_vm2 }
 0x196   : > { %v2118_v45 = vpop.permute.xlu0 %2117 }
 0x197   : > { %2152 = vst.msk [vmem:[#allocation4 + $0x70] sm:$0xff] %vm2137_vm7, %v2118_v45  ;;  %v2120_v38 = vpop.permute.xlu1 %2119 }
 0x198   : > { %2153 = vst.msk [vmem:[#allocation4 + $0x78] sm:$0xff] %vm2137_vm7, %v2120_v38  ;;  %v443_v38 = vsel %vm7081_vm12, 0, %v442_v59  ;;  %vm8552_vm7 = vcmask 228512  }
 0x199   : > { %444 = vst [vmem:[#allocation3 + $0x80] sm:$0x1] %v443_v38 }
 0x19a   : > { %v2210_v60 = vpop.permute.xlu0 %2209 }
 0x19b   : > { %2244 = vst.msk [vmem:[#allocation4 + $0x70] sm:$0xff] %vm2229_vm5, %v2210_v60  ;;  %v2212_v7 = vpop.permute.xlu1 %2211  ;;  %v439_v60 = vld [vmem:[#allocation3 + $0x74] sm:$0x1] }
 0x19c   : > { %2245 = vst.msk [vmem:[#allocation4 + $0x78] sm:$0xff] %vm2229_vm5, %v2212_v7  ;;  %vm3468_vm5 = vcmask 97312   ;;  %v440_v20 = vsel %vm7081_vm12, 0, %v439_v60 }
 0x19d   : > { %441 = vst [vmem:[#allocation3 + $0x74] sm:$0x1] %v440_v20 }
 0x19e   : > { %v2286_v31 = vpop.permute.xlu0 %2285 }
 0x19f   : > { %2320 = vst.msk [vmem:[#allocation4 + $0x70] sm:$0xff] %vm2305_vm0, %v2286_v31  ;;  %v2288_v55 = vpop.permute.xlu1 %2287 }
 0x1a0   : > { %2321 = vst.msk [vmem:[#allocation4 + $0x78] sm:$0xff] %vm2305_vm0, %v2288_v55  ;;  %vm8581_vm0 = vmmov %vm8580_vm6 }
 0x1a1   : > { %v5475_v9 = vpop.f32.mrb[0].mxu0  ;;  %vm8585_vm10 = vmmov %vm8581_vm0 }
 0x1a2   : > { %v2461_v56 = vadd.f32 %v5475_v9, %v7220_v3  ;;  %v2452_v40 = vpop.f32.mrb[1].mxu0  ;;  %v3421_v23 = vpop.permute.xlu0 %3420 }
 0x1a3   : > { %v2453_v18 = vadd.f32 %v7220_v3, %v2452_v40  ;;  %v5476_v58 = vpop.f32.mrb[2].mxu0  ;;  %3469 = vst.msk [vmem:[#allocation5] sm:$0xff] %vm3468_vm5, %v3421_v23 }
 0x1a4   : > { %v2581_v46 = vmax.f32 %v2461_v56, 0.0  ;;  %v2464_v2 = vadd.f32 %v5476_v58, %v7220_v3  ;;  %v2455_v25 = vpop.f32.mrb[3].mxu0  ;;  %v5633_v56 = vld [vmem:[%s5850_s9 + $0x8] sm:$0xff]  }
 0x1a5   : > { %v2579_v42 = vmax.f32 %v2453_v18, 0.0  ;;  %v2456_v11 = vadd.f32 %v7220_v3, %v2455_v25  ;;  %3271 = vst.msk [vmem:[#allocation5 + $0x8] sm:$0xff] %vm8583_vm2, %v5633_v56 }
 0x1a6   : > { %v5396_v50 = vpack.c.bf16 %v2581_v46, %v2581_v46  ;;  %v2582_v24 = vmax.f32 %v2464_v2, 0.0  ;;  %v2336_v39 = vld [vmem:[#allocation4 + $0x70] sm:$0xff]  ;;  %v3918_v28 = vpop.permute.xlu0 %3917 }
 0x1a7   : > { %v5394_v36 = vpack.c.bf16 %v2579_v42, %v2579_v42  ;;  %v2580_v19 = vmax.f32 %v2456_v11, 0.0  ;;  %5501 = vmatprep.mubr.msk.bf16.mxu0 %vm2365_vm4, %v2336_v39  ;;  %v2337_v47 = vld [vmem:[#allocation4 + $0x78] sm:$0xff]  ;;  %3966 = vst.msk [vmem:[#allocation5] sm:$0xff] %vm3965_vm14, %v3918_v28 }
 0x1a8   : > { %v2725_v15 = vshrl.u32 %v5396_v50, 16  ;;  %v5397_v17 = vpack.c.bf16 %v2582_v24, %v2582_v24  ;;  %5502 = vmatmul.mubr.msk.bf16.gmra.mrb[28].mxu0 %vm2365_vm4, %v2337_v47  ;;  %v2728_v30 = vshll.u32 %v5396_v50, 16  ;;  %vm8582_vm4 = vmmov %vm8575_vm3 }
 0x1a9   : > { %v2708_v57 = vshrl.u32 %v5394_v36, 16  ;;  %v5395_v37 = vpack.c.bf16 %v2580_v19, %v2580_v19  ;;  %v2711_v43 = vshll.u32 %v5394_v36, 16  ;;  %3272 = vst.msk [vmem:[#allocation5 + $0x10] sm:$0xff] %vm8582_vm4, %v5632_v6  ;;  %v3051_v6 = vld [vmem:[#allocation3 + $0x30] sm:$0xf]  ;;  %vm8584_vm3 = vmmov %vm8581_vm0 }
 0x1aa   : > { %v2727_v33 = vrot.slane %v2725_v15, 7  ;;  %v2733_v1 = vshrl.u32 %v5397_v17, 16  ;;  %v2736_v49 = vshll.u32 %v5397_v17, 16  ;;  %v4159_v9 = vpop.permute.xlu0 %4158  ;;  %vm8588_vm4 = vmmov %vm8581_vm0 }
 0x1ab   : > { %v2710_v27 = vrot.slane %v2708_v57, 7  ;;  %v2716_v48 = vshrl.u32 %v5395_v37, 16  ;;  %v2719_v61 = vshll.u32 %v5395_v37, 16  ;;  %4207 = vst.msk [vmem:[#allocation5] sm:$0xff] %vm8552_vm7, %v4159_v9 }
 0x1ac   : > { %v2730_v22 = vor.u32 %v2728_v30, %v2727_v33  ;;  %v2735_v10 = vrot.slane %v2733_v1, 7  ;;  %v2731_v13 = vrot.slane %v2727_v33, 4 }
 0x1ad   : > { %v2713_v5 = vor.u32 %v2711_v43, %v2710_v27  ;;  %v2714_v34 = vrot.slane %v2710_v27, 4  ;;  %v2718_v51 = vrot.slane %v2716_v48, 7 }
 0x1ae   : > { %v3038_v62 = vsel %vm7234_vm13, %v2730_v22, %v3037_v63  ;;  %v2738_v54 = vor.u32 %v2736_v49, %v2735_v10  ;;  %v2740_v41 = vrot.slane %v2735_v10, 4 }
 0x1af   : > { %3039 = vst [vmem:[#allocation3 + $0x18] sm:$0xf] %v3038_v62  ;;  %v3031_v4 = vsel %vm7234_vm13, %v2713_v5, %v3030_v29  ;;  %v2721_v8 = vor.u32 %v2719_v61, %v2718_v51  ;;  %v2723_v45 = vrot.slane %v2718_v51, 4 }
 0x1b0   : > { %3032 = vst [vmem:[#allocation3 + $0xc] sm:$0xf] %v3031_v4  ;;  %v2739_v7 = vsel %vm5864_vm8, %v2731_v13, %v2738_v54  ;;  %v3042_v16 = vsel %vm7011_vm9, %v2740_v41, %v3041_v14  ;;  %v393_v54 = vld [vmem:[#allocation3 + $0x90] sm:$0x1] }
 0x1b1   : > { %3040 = vst.msk [vmem:[#allocation3 + $0x1c] sm:$0xf] %vm8580_vm6, %v2739_v7  ;;  %3043 = vst [vmem:[#allocation3 + $0x20] sm:$0x1] %v3042_v16  ;;  %v2722_v31 = vsel %vm5864_vm8, %v2714_v34, %v2721_v8  ;;  %v3035_v55 = vsel %vm7011_vm9, %v2723_v45, %v3034_v52  ;;  %v394_v38 = vsel %vm7011_vm9, 0, %v393_v54  ;;  %v5637_v54 = vld [vmem:[%s5850_s9 + $0x18] sm:$0xff]  }
 0x1b2   : > { %3033 = vst.msk [vmem:[#allocation3 + $0x10] sm:$0xf] %vm8581_vm0, %v2722_v31  ;;  %3036 = vst [vmem:[#allocation3 + $0x14] sm:$0x1] %v3035_v55 }
 0x1b3   : > { %395 = vst [vmem:[#allocation3 + $0x90] sm:$0x1] %v394_v38  ;;  %vm8587_vm6 = vmmov %vm8583_vm2 }
 0x1b4   : > { %3273 = vst.msk [vmem:[#allocation5 + $0x18] sm:$0xff] %vm8587_vm6, %v5637_v54  ;;  %vm8591_vm6 = vmmov %vm8581_vm0 }
 0x1b6   : > { %v7264_v40 = vld [vmem:[#allocation3 + $0x18] sm:$0xf] }
 0x1b7   : > { %v7278_v11 = vld [vmem:[#allocation3 + $0xc] sm:$0xf]  ;;  %v5328_v19 = vrot.slane %v7264_v40, 9  ;;  %v3534_v10 = vshrl.u32 %v7264_v40, 16  ;;  %v3537_v61 = vshll.u32 %v7264_v40, 16 }
 0x1b8   : > { %v7266_v18 = vld [vmem:[#allocation3 + $0x1c] sm:$0xf]  ;;  %v7272_v46 = vld [vmem:[#allocation3 + $0x20] sm:$0x1]  ;;  %v5327_v48 = vrot.slane %v7278_v11, 9  ;;  %v3510_v52 = vshrl.u32 %v7278_v11, 16 }
 0x1b9   : > { %v5296_v58 = vcombine.low %v7264_v40, %v7266_v18  ;;  %v7270_v23 = vld [vmem:[#allocation3 + $0x10] sm:$0xf]  ;;  %v4014_v2 = vrot.slane %v7266_v18, 5  ;;  %v4017_v50 = vrot.slane %v7272_v46, 5  ;;  %v7283_v36 = vld [vmem:[#allocation3 + $0x14] sm:$0x1] }
 0x1ba   : > { %v4007_v25 = vrot.slane %v7270_v23, 5  ;;  %v5295_v24 = vcombine.low %v7278_v11, %v7270_v23  ;;  %v4010_v33 = vrot.slane %v7283_v36, 5  ;;  %v3547_v51 = vshrl.u32 %v7266_v18, 16 }
 0x1bb   : > { %4466 = vrot.lane.b32.xlu0 %v5296_v58, %s5735_s12  ;;  %4230 = vrot.lane.b32.xlu1 %v5296_v58, %s5734_s30  ;;  %v4016_v42 = vrot.slane %v4014_v2, 4  ;;  %v4015_v37 = vsel %vm5950_vm15, %v5328_v19, %v4014_v2  ;;  %v3543_v59 = vshll.u32 %v7266_v18, 16  ;;  %v3523_v4 = vshrl.u32 %v7270_v23, 16  ;;  %v3044_v18 = vld [vmem:[#allocation3 + $0x24] sm:$0xf] }
 0x1bc   : > { %v4009_v15 = vrot.slane %v4007_v25, 4  ;;  %v4008_v34 = vsel %vm5950_vm15, %v5327_v48, %v4007_v25  ;;  %v7314_v20 = vrot.slane %v3534_v10, 4  ;;  %v3549_v56 = vrot.slane %v3547_v51, 4  ;;  %v5636_v51 = vld [vmem:[%s5850_s9 + $0x20] sm:$0xff]  }
 0x1bd   : > { %v4018_v39 = vsel %vm5950_vm15, %v4016_v42, %v4017_v50  ;;  %v7316_v25 = vrot.slane %v3543_v59, 5  ;;  %v3055_v50 = vld [vmem:[#allocation3 + $0x38] sm:$0x1]  ;;  %v3513_v10 = vshll.u32 %v7278_v11, 16  ;;  %3274 = vst.msk [vmem:[#allocation5 + $0x20] sm:$0xff] %vm8586_vm11, %v5636_v51  ;;  %vm8590_vm11 = vmmov %vm8581_vm0 }
 0x1be   : > { %v5479_v17 = vpop.f32.mrb[4].mxu0  ;;  %v5344_v1 = vcombine.low %v4015_v37, %v4018_v39  ;;  %v4011_v22 = vsel %vm5950_vm15, %v4009_v15, %v4010_v33  ;;  %v3519_v39 = vshll.u32 %v7270_v23, 16  ;;  %v3048_v37 = vld [vmem:[#allocation3 + $0x2c] sm:$0x1] }
 0x1bf   : > { %3424 = vrot.lane.b32.xlu1 %v5296_v58, %s5730_s13  ;;  %4228 = vrot.lane.b32.xlu0 %v5295_v24, %s5734_s30  ;;  %v2477_v47 = vadd.f32 %v5479_v17, %v7220_v3  ;;  %v2468_v57 = vpop.f32.mrb[5].mxu0  ;;  %v5343_v62 = vcombine.low %v4008_v34, %v4011_v22  ;;  %v448_v22 = vld [vmem:[#allocation3 + $0x98] sm:$0x1]  ;;  %v3515_v59 = vrot.slane %v3513_v10, 5 }
 0x1c0   : > { %v2469_v30 = vadd.f32 %v7220_v3, %v2468_v57  ;;  %v5480_v63 = vpop.f32.mrb[6].mxu0 }
 0x1c1   : > { %v2585_v27 = vmax.f32 %v2477_v47, 0.0  ;;  %v2480_v43 = vadd.f32 %v5480_v63, %v7220_v3  ;;  %v2471_v29 = vpop.f32.mrb[7].mxu0 }
 0x1c2   : > { %v2583_v49 = vmax.f32 %v2469_v30, 0.0  ;;  %v2472_v14 = vadd.f32 %v7220_v3, %v2471_v29  ;;  %v3539_v29 = vrot.slane %v3537_v61, 5  ;;  %v449_v61 = vsel %vm7081_vm12, 0, %v448_v22 }
 0x1c3   : > { %4162 = vrot.lane.b32.xlu0 %v5344_v1, %s5731_s14  ;;  %3422 = vrot.lane.b32.xlu1 %v5295_v24, %s5730_s13  ;;  %v5400_v13 = vpack.c.bf16 %v2585_v27, %v2585_v27  ;;  %v2586_v5 = vmax.f32 %v2480_v43, 0.0  ;;  %v390_v43 = vld [vmem:[#allocation3 + $0x84] sm:$0x1]  ;;  %450 = vst [vmem:[#allocation3 + $0x98] sm:$0x1] %v449_v61 }
 0x1c4   : > { %v5398_v44 = vpack.c.bf16 %v2583_v49, %v2583_v49  ;;  %v2584_v28 = vmax.f32 %v2472_v14, 0.0  ;;  %v391_v48 = vsel %vm7011_vm9, 0, %v390_v43 }
 0x1c5   : > { %v2759_v41 = vshrl.u32 %v5400_v13, 16  ;;  %v5401_v12 = vpack.c.bf16 %v2586_v5, %v2586_v5  ;;  %v2762_v7 = vshll.u32 %v5400_v13, 16  ;;  %392 = vst [vmem:[#allocation3 + $0x84] sm:$0x1] %v391_v48  ;;  %v445_v13 = vld [vmem:[#allocation3 + $0x8c] sm:$0x1]  ;;  %v3550_v5 = vor.u32 %v3549_v56, %v7316_v25 }
 0x1c6   : > { %v2742_v8 = vshrl.u32 %v5398_v44, 16  ;;  %v5399_v45 = vpack.c.bf16 %v2584_v28, %v2584_v28  ;;  %v2745_v55 = vshll.u32 %v5398_v44, 16  ;;  %v446_v34 = vsel %vm7081_vm12, 0, %v445_v13 }
 0x1c7   : > { %4396 = vrot.lane.b32.xlu0 %v5343_v62, %s5736_s15  ;;  %4398 = vrot.lane.b32.xlu1 %v5344_v1, %s5736_s15  ;;  %v2761_v60 = vrot.slane %v2759_v41, 7  ;;  %v2767_v16 = vshrl.u32 %v5401_v12, 16  ;;  %v2770_v2 = vshll.u32 %v5401_v12, 16  ;;  %v3521_v44 = vrot.slane %v3519_v39, 5  ;;  %447 = vst [vmem:[#allocation3 + $0x8c] sm:$0x1] %v446_v34 }
 0x1c8   : > { %v2744_v31 = vrot.slane %v2742_v8, 7  ;;  %v2750_v9 = vshrl.u32 %v5399_v45, 16  ;;  %v2753_v19 = vshll.u32 %v5399_v45, 16  ;;  %v3525_v28 = vrot.slane %v3523_v4, 4 }
 0x1c9   : > { %v2764_v40 = vor.u32 %v2762_v7, %v2761_v60  ;;  %v2769_v58 = vrot.slane %v2767_v16, 7  ;;  %v2765_v15 = vrot.slane %v2761_v60, 4  ;;  %v3553_v41 = vshll.u32 %v7272_v46, 16 }
 0x1ca   : > { %v2747_v42 = vor.u32 %v2745_v55, %v2744_v31  ;;  %v2752_v24 = vrot.slane %v2750_v9, 7  ;;  %v2748_v33 = vrot.slane %v2744_v31, 4  ;;  %v3512_v12 = vrot.slane %v3510_v52, 4 }
 0x1cb   : > { %4634 = vrot.lane.b32.xlu1 %v5344_v1, %s5737_s16  ;;  %v3052_v17 = vsel %vm7234_vm13, %v2764_v40, %v3051_v6  ;;  %v2772_v47 = vor.u32 %v2770_v2, %v2769_v58  ;;  %v2774_v57 = vrot.slane %v2769_v58, 4  ;;  %v3551_v8 = vrot.slane %v3550_v5, 4 }
 0x1cc   : > { %3053 = vst [vmem:[#allocation3 + $0x30] sm:$0xf] %v3052_v17  ;;  %v3045_v30 = vsel %vm7234_vm13, %v2747_v42, %v3044_v18  ;;  %v2755_v63 = vor.u32 %v2753_v19, %v2752_v24  ;;  %v2757_v27 = vrot.slane %v2752_v24, 4  ;;  %v3526_v45 = vor.u32 %v3525_v28, %v3521_v44  ;;  %v399_v28 = vld [vmem:[#allocation3 + $0xa8] sm:$0x1] }
 0x1cd   : > { %3046 = vst [vmem:[#allocation3 + $0x24] sm:$0xf] %v3045_v30  ;;  %v2773_v1 = vsel %vm5864_vm8, %v2765_v15, %v2772_v47  ;;  %v3056_v23 = vsel %vm7011_vm9, %v2774_v57, %v3055_v50  ;;  %v3555_v7 = vrot.slane %v3553_v41, 5  ;;  %v3516_v46 = vor.u32 %v3515_v59, %v3512_v12 }
 0x1ce   : > { %3054 = vst.msk [vmem:[#allocation3 + $0x34] sm:$0xf] %vm8584_vm3, %v2773_v1  ;;  %3057 = vst [vmem:[#allocation3 + $0x38] sm:$0x1] %v3056_v23  ;;  %v2756_v49 = vsel %vm5864_vm8, %v2748_v33, %v2755_v63  ;;  %v3049_v14 = vsel %vm7011_vm9, %v2757_v27, %v3048_v37  ;;  %v3527_v52 = vrot.slane %v3526_v45, 4 }
 0x1cf   : > { %4160 = vrot.lane.b32.xlu1 %v5343_v62, %s5731_s14  ;;  %3047 = vst.msk [vmem:[#allocation3 + $0x28] sm:$0xf] %vm8585_vm10, %v2756_v49  ;;  %3050 = vst [vmem:[#allocation3 + $0x2c] sm:$0x1] %v3049_v14  ;;  %v3540_v62 = vor.u32 %v3539_v29, %v7314_v20  ;;  %v3529_v20 = vshll.u32 %v7283_v36, 16  ;;  %v3556_v11 = vsel %vm5979_vm1, %v3551_v8, %v3555_v7  ;;  %v3517_v55 = vrot.slane %v3516_v46, 4 }
 0x1d0   : > { %vm8589_vm3 = vmmov %vm8583_vm2  ;;  %vm4810_vm10 = vcmask 1045504  }
 0x1d1   : > { %v3541_v4 = vrot.slane %v3540_v62, 4  ;;  %v3531_v9 = vrot.slane %v3529_v20, 5  ;;  %v400_v20 = vsel %vm7011_vm9, 0, %v399_v28 }
 0x1d2   : > { %401 = vst [vmem:[#allocation3 + $0xa8] sm:$0x1] %v400_v20 }
 0x1d3   : > { %v7351_v38 = vld [vmem:[#allocation3 + $0x30] sm:$0xf]  ;;  %v3546_v6 = vsel %vm5979_vm1, %v3541_v4, %v7316_v25  ;;  %v3532_v36 = vsel %vm5979_vm1, %v3527_v52, %v3531_v9  ;;  %v3522_v25 = vsel %vm5979_vm1, %v3517_v55, %v3521_v44 }
 0x1d4   : > { %v7365_v31 = vcombine.low %v3546_v6, %v3556_v11  ;;  %v7374_v40 = vld [vmem:[#allocation3 + $0x24] sm:$0xf]  ;;  %v3582_v50 = vshrl.u32 %v7351_v38, 16  ;;  %v3585_v24 = vshll.u32 %v7351_v38, 16  ;;  %v7386_v15 = vcombine.low %v3522_v25, %v3532_v36  ;;  %v3065_v11 = vld [vmem:[#allocation3 + $0x48] sm:$0xf] }
 0x1d5   : > { %v7353_v60 = vld [vmem:[#allocation3 + $0x34] sm:$0xf]  ;;  %v7381_v42 = vld [vmem:[#allocation3 + $0x38] sm:$0x1]  ;;  %v5330_v37 = vrot.slane %v7351_v38, 9  ;;  %v5329_v10 = vrot.slane %v7374_v40, 9 }
 0x1d6   : > { %v5298_v16 = vcombine.low %v7351_v38, %v7353_v60  ;;  %v7367_v56 = vld [vmem:[#allocation3 + $0x28] sm:$0xf]  ;;  %v4028_v18 = vrot.slane %v7353_v60, 5  ;;  %v3595_v17 = vshrl.u32 %v7353_v60, 16  ;;  %v7394_v33 = vld [vmem:[#allocation3 + $0x2c] sm:$0x1] }
 0x1d7   : > { %v5297_v2 = vcombine.low %v7374_v40, %v7367_v56  ;;  %v4021_v30 = vrot.slane %v7367_v56, 5  ;;  %v4031_v23 = vrot.slane %v7381_v42, 5  ;;  %v3571_v48 = vshrl.u32 %v7367_v56, 16 }
 0x1d8   : > { %4470 = vrot.lane.b32.xlu0 %v5298_v16, %s5735_s12  ;;  %4234 = vrot.lane.b32.xlu1 %v5298_v16, %s5734_s30  ;;  %v4030_v1 = vrot.slane %v4028_v18, 4  ;;  %v4029_v61 = vsel %vm5950_vm15, %v5330_v37, %v4028_v18  ;;  %v4024_v13 = vrot.slane %v7394_v33, 5  ;;  %v7409_v44 = vrot.slane %v3582_v50, 4  ;;  %v3058_v18 = vld [vmem:[#allocation3 + $0x3c] sm:$0xf] }
 0x1d9   : > { %v4023_v51 = vrot.slane %v4021_v30, 4  ;;  %v3591_v4 = vshll.u32 %v7353_v60, 16  ;;  %v3597_v9 = vrot.slane %v3595_v17, 4  ;;  %v3561_v28 = vshll.u32 %v7374_v40, 16 }
 0x1da   : > { %v4032_v12 = vsel %vm5950_vm15, %v4030_v1, %v4031_v23  ;;  %v4022_v23 = vsel %vm5950_vm15, %v5329_v10, %v4021_v30  ;;  %v3567_v10 = vshll.u32 %v7367_v56, 16 }
 0x1db   : > { %v5346_v55 = vcombine.low %v4029_v61, %v4032_v12  ;;  %v7424_v17 = vrot.slane %v3591_v4, 5  ;;  %v396_v61 = vld [vmem:[#allocation3 + $0x9c] sm:$0x1]  ;;  %v5640_v12 = vld [vmem:[%s8543_s3] sm:$0xff]  }
 0x1dc   : > { %4558 = vrot.lane.b32.xlu0 %v7365_v31, %s5738_s17  ;;  %3428 = vrot.lane.b32.xlu1 %v5298_v16, %s5730_s13  ;;  %v5642_v4 = vld [vmem:[%s5850_s9 + $0x30] sm:$0xff]  }
 0x1dd   : > { %v3598_v38 = vor.u32 %v3597_v9, %v7424_v17  ;;  %5505 = vmatprep.subr.bf16.mxu1 %v5640_v12  ;;  %3276 = vst.msk [vmem:[#allocation5 + $0x30] sm:$0xff] %vm8589_vm3, %v5642_v4  ;;  %v3577_v9 = vshll.u32 %v7394_v33, 16  ;;  %v5645_v33 = vld [vmem:[%s8543_s3 + $0x18] sm:$0xff]   ;;  %vm8594_vm3 = vmmov %vm8591_vm6 }
 0x1de   : > { %v5483_v58 = vpop.f32.mrb[8].mxu0  ;;  %5506 = vmatpush3.bf16.msra.mxu1 %v5640_v12 }
 0x1df   : > { %v2493_v19 = vadd.f32 %v5483_v58, %v7220_v3  ;;  %v2484_v39 = vpop.f32.mrb[9].mxu0 }
 0x1e0   : > { %v2485_v47 = vadd.f32 %v7220_v3, %v2484_v39  ;;  %v5484_v57 = vpop.f32.mrb[10].mxu0  ;;  %3426 = vrot.lane.b32.xlu0 %v5297_v2, %s5730_s13  ;;  %4322 = vrot.lane.b32.xlu1 %v7365_v31, %s5739_s23 }
 0x1e1   : > { %v2589_v63 = vmax.f32 %v2493_v19, 0.0  ;;  %v2496_v27 = vadd.f32 %v5484_v57, %v7220_v3  ;;  %v2487_v43 = vpop.f32.mrb[11].mxu0  ;;  %v3069_v19 = vld [vmem:[#allocation3 + $0x50] sm:$0x1] }
 0x1e2   : > { %v2587_v29 = vmax.f32 %v2485_v47, 0.0  ;;  %v2488_v22 = vadd.f32 %v7220_v3, %v2487_v43 }
 0x1e3   : > { %v5404_v49 = vpack.c.bf16 %v2589_v63, %v2589_v63  ;;  %v2590_v14 = vmax.f32 %v2496_v27, 0.0  ;;  %v3062_v63 = vld [vmem:[#allocation3 + $0x44] sm:$0x1] }
 0x1e4   : > { %v5402_v5 = vpack.c.bf16 %v2587_v29, %v2587_v29  ;;  %v2588_v34 = vmax.f32 %v2488_v22, 0.0  ;;  %4232 = vrot.lane.b32.xlu0 %v5297_v2, %s5734_s30  ;;  %4468 = vrot.lane.b32.xlu1 %v5297_v2, %s5735_s12  ;;  %v4025_v2 = vsel %vm5950_vm15, %v4023_v51, %v4024_v13  ;;  %v397_v13 = vsel %vm7011_vm9, 0, %v396_v61 }
 0x1e5   : > { %v2793_v54 = vshrl.u32 %v5404_v49, 16  ;;  %v2796_v62 = vshll.u32 %v5404_v49, 16  ;;  %v5405_v41 = vpack.c.bf16 %v2590_v14, %v2590_v14  ;;  %v5345_v49 = vcombine.low %v4022_v23, %v4025_v2  ;;  %398 = vst [vmem:[#allocation3 + $0x9c] sm:$0x1] %v397_v13 }
 0x1e6   : > { %v2776_v59 = vshrl.u32 %v5402_v5, 16  ;;  %v2779_v8 = vshll.u32 %v5402_v5, 16  ;;  %v5403_v45 = vpack.c.bf16 %v2588_v34, %v2588_v34  ;;  %v3587_v14 = vrot.slane %v3585_v24, 5  ;;  %v454_v5 = vld [vmem:[#allocation3 + $0xb0] sm:$0x1] }
 0x1e7   : > { %v2795_v7 = vrot.slane %v2793_v54, 7  ;;  %v2801_v16 = vshrl.u32 %v5405_v41, 16  ;;  %v2804_v46 = vshll.u32 %v5405_v41, 16  ;;  %v455_v24 = vsel %vm7081_vm12, 0, %v454_v5  ;;  %v451_v34 = vld [vmem:[#allocation3 + $0xa4] sm:$0x1] }
 0x1e8   : > { %v2778_v52 = vrot.slane %v2776_v59, 7  ;;  %v2784_v6 = vshrl.u32 %v5403_v45, 16  ;;  %4320 = vrot.lane.b32.xlu0 %v7386_v15, %s5739_s23  ;;  %3921 = vrot.lane.b32.xlu1 %v7365_v31, %s5727_s10  ;;  %v2787_v47 = vshll.u32 %v5403_v45, 16  ;;  %v3558_v51 = vshrl.u32 %v7374_v40, 16  ;;  %456 = vst [vmem:[#allocation3 + $0xb0] sm:$0x1] %v455_v24 }
 0x1e9   : > { %v2798_v36 = vor.u32 %v2796_v62, %v2795_v7  ;;  %v2799_v60 = vrot.slane %v2795_v7, 4  ;;  %v2803_v58 = vrot.slane %v2801_v16, 7  ;;  %v452_v54 = vsel %vm7081_vm12, 0, %v451_v34  ;;  %v5641_v59 = vld [vmem:[%s5850_s9 + $0x28] sm:$0xff]   ;;  %v5646_v24 = vld [vmem:[%s8543_s3 + $0x20] sm:$0x3f]  }
 0x1ea   : > { %v2781_v25 = vor.u32 %v2779_v8, %v2778_v52  ;;  %v2782_v50 = vrot.slane %v2778_v52, 4  ;;  %v2786_v39 = vrot.slane %v2784_v6, 7  ;;  %v3588_v62 = vor.u32 %v3587_v14, %v7409_v44  ;;  %453 = vst [vmem:[#allocation3 + $0xa4] sm:$0x1] %v452_v54  ;;  %3275 = vst.msk [vmem:[#allocation5 + $0x28] sm:$0xff] %vm8583_vm2, %v5641_v59  ;;  %v5643_v44 = vld [vmem:[%s8543_s3 + $0x8] sm:$0xff]  }
 0x1eb   : > { %v3066_v57 = vsel %vm7234_vm13, %v2798_v36, %v3065_v11  ;;  %v2806_v37 = vor.u32 %v2804_v46, %v2803_v58  ;;  %v2808_v31 = vrot.slane %v2803_v58, 4  ;;  %v3601_v41 = vshll.u32 %v7381_v42, 16  ;;  %5507 = vmatprep.subr.bf16.mxu1 %v5643_v44  ;;  %v5644_v52 = vld [vmem:[%s8543_s3 + $0x10] sm:$0xff]   ;;  %v3079_v59 = vld [vmem:[#allocation3 + $0x60] sm:$0xf] }
 0x1ec   : > { %3067 = vst [vmem:[#allocation3 + $0x48] sm:$0xf] %v3066_v57  ;;  %v3059_v27 = vsel %vm7234_vm13, %v2781_v25, %v3058_v18  ;;  %v2789_v43 = vor.u32 %v2787_v47, %v2786_v39  ;;  %v2791_v1 = vrot.slane %v2786_v39, 4  ;;  %4166 = vrot.lane.b32.xlu0 %v5346_v55, %s5731_s14  ;;  %3919 = vrot.lane.b32.xlu1 %v7386_v15, %s5727_s10  ;;  %v3569_v8 = vrot.slane %v3567_v10, 5 }
 0x1ed   : > { %3060 = vst [vmem:[#allocation3 + $0x3c] sm:$0xf] %v3059_v27  ;;  %v2807_v29 = vsel %vm5864_vm8, %v2799_v60, %v2806_v37  ;;  %v3070_v22 = vsel %vm7011_vm9, %v2808_v31, %v3069_v19  ;;  %v3573_v40 = vrot.slane %v3571_v48, 4  ;;  %v3599_v45 = vrot.slane %v3598_v38, 4  ;;  %5508 = vmatpush3.bf16.msra.mxu1 %v5643_v44 }
 0x1ee   : > { %3068 = vst.msk [vmem:[#allocation3 + $0x4c] sm:$0xf] %vm8581_vm0, %v2807_v29  ;;  %3071 = vst [vmem:[#allocation3 + $0x50] sm:$0x1] %v3070_v22  ;;  %v2790_v15 = vsel %vm5864_vm8, %v2782_v50, %v2789_v43  ;;  %v3063_v30 = vsel %vm7011_vm9, %v2791_v1, %v3062_v63  ;;  %v3560_v42 = vrot.slane %v3558_v51, 4  ;;  %v3563_v7 = vrot.slane %v3561_v28, 5  ;;  %5509 = vmatprep.subr.bf16.mxu1 %v5644_v52 }
 0x1ef   : > { %3061 = vst.msk [vmem:[#allocation3 + $0x40] sm:$0xf] %vm8588_vm4, %v2790_v15  ;;  %3064 = vst [vmem:[#allocation3 + $0x44] sm:$0x1] %v3063_v30  ;;  %v3589_v56 = vrot.slane %v3588_v62, 4  ;;  %v3603_v48 = vrot.slane %v3601_v41, 5  ;;  %v3574_v11 = vor.u32 %v3573_v40, %v3569_v8 }
 0x1f0   : > { %4636 = vrot.lane.b32.xlu0 %v5345_v49, %s5737_s16  ;;  %4402 = vrot.lane.b32.xlu1 %v5346_v55, %s5736_s15  ;;  %v3579_v25 = vrot.slane %v3577_v9, 5  ;;  %vm8592_vm0 = vmmov %vm8583_vm2  ;;  %vm4276_vm2 = vcmask 294112  }
 0x1f1   : > { %v3604_v6 = vsel %vm5979_vm1, %v3599_v45, %v3603_v48  ;;  %v3594_v36 = vsel %vm5979_vm1, %v3589_v56, %v7424_v17  ;;  %v3575_v18 = vrot.slane %v3574_v11, 4  ;;  %5510 = vmatpush3.bf16.msra.mxu1 %v5644_v52  ;;  %v4812_v48 = vsel %vm4810_vm10, %v5646_v24, 0  ;;  %vm8593_vm4 = vmmov %vm8592_vm0 }
 0x1f2   : > { %v7492_v60 = vcombine.low %v3594_v36, %v3604_v6  ;;  %5511 = vmatprep.subr.bf16.mxu1 %v5645_v33 }
 0x1f3   : > { %v7474_v16 = vld [vmem:[#allocation3 + $0x48] sm:$0xf]  ;;  %v3580_v47 = vsel %vm5979_vm1, %v3575_v18, %v3579_v25 }
 0x1f4   : > { %4400 = vrot.lane.b32.xlu0 %v5345_v49, %s5736_s15  ;;  %4638 = vrot.lane.b32.xlu1 %v5346_v55, %s5737_s16  ;;  %v3564_v55 = vor.u32 %v3563_v7, %v3560_v42  ;;  %v7502_v50 = vld [vmem:[#allocation3 + $0x3c] sm:$0xf]  ;;  %v5332_v27 = vrot.slane %v7474_v16, 9  ;;  %v3630_v1 = vshrl.u32 %v7474_v16, 16  ;;  %v3633_v61 = vshll.u32 %v7474_v16, 16 }
 0x1f5   : > { %v7476_v46 = vld [vmem:[#allocation3 + $0x4c] sm:$0xf]  ;;  %v7520_v14 = vld [vmem:[#allocation3 + $0x50] sm:$0x1]  ;;  %5512 = vmatpush3.bf16.msra.mxu1 %v5645_v33  ;;  %v3072_v42 = vld [vmem:[#allocation3 + $0x54] sm:$0xf] }
 0x1f6   : > { %v5300_v20 = vcombine.low %v7474_v16, %v7476_v46  ;;  %v7494_v58 = vld [vmem:[#allocation3 + $0x40] sm:$0xf]  ;;  %v3565_v2 = vrot.slane %v3564_v55, 4  ;;  %v4042_v43 = vrot.slane %v7476_v46, 5  ;;  %v3643_v13 = vshrl.u32 %v7476_v46, 16  ;;  %5548 = vmatprep.subr.msk.bf16.mxu1 %vm4810_vm10, %v5646_v24  ;;  %vm8595_vm10 = vmmov %vm8594_vm3 }
 0x1f7   : > { %v5299_v39 = vcombine.low %v7502_v50, %v7494_v58  ;;  %v4035_v10 = vrot.slane %v7494_v58, 5  ;;  %v4045_v28 = vrot.slane %v7520_v14, 5  ;;  %v3639_v6 = vshll.u32 %v7476_v46, 16  ;;  %v405_v55 = vld [vmem:[#allocation3 + $0xc0] sm:$0x1] }
 0x1f8   : > { %4474 = vrot.lane.b32.xlu0 %v5300_v20, %s5735_s12  ;;  %4164 = vrot.lane.b32.xlu1 %v5345_v49, %s5731_s14  ;;  %v3570_v17 = vsel %vm5979_vm1, %v3565_v2, %v3569_v8  ;;  %v4044_v12 = vrot.slane %v4042_v43, 4  ;;  %v3083_v2 = vld [vmem:[#allocation3 + $0x68] sm:$0x1]  ;;  %v406_v25 = vsel %vm7011_vm9, 0, %v405_v55  ;;  %v3649_v16 = vshll.u32 %v7520_v14, 16 }
 0x1f9   : > { %v7518_v49 = vcombine.low %v3570_v17, %v3580_v47  ;;  %v4037_v4 = vrot.slane %v4035_v10, 4  ;;  %5514 = vmatpush3.bf16.msra.mxu1 %v4812_v48  ;;  %407 = vst [vmem:[#allocation3 + $0xc0] sm:$0x1] %v406_v25  ;;  %v5649_v48 = vld [vmem:[%s5850_s9 + $0x40] sm:$0xff]  }
 0x1fa   : > { %3278 = vst.msk [vmem:[#allocation5 + $0x40] sm:$0xff] %vm8593_vm4, %v5649_v48 }
 0x1fc   : > { %4562 = vrot.lane.b32.xlu0 %v7492_v60, %s5738_s17  ;;  %4238 = vrot.lane.b32.xlu1 %v5300_v20, %s5734_s30 }
 0x1fe   : > { %v5487_v19 = vpop.f32.mrb[12].mxu0 }
 0x1ff   : > { %v2509_v57 = vadd.f32 %v5487_v19, %v7220_v3  ;;  %v2500_v37 = vpop.f32.mrb[13].mxu0 }
 0x200   : > { %v2501_v31 = vadd.f32 %v7220_v3, %v2500_v37  ;;  %v5488_v63 = vpop.f32.mrb[14].mxu0  ;;  %3430 = vrot.lane.b32.xlu0 %v5299_v39, %s5730_s13  ;;  %3432 = vrot.lane.b32.xlu1 %v5300_v20, %s5730_s13  ;;  %v7549_v37 = vld [vmem:[#allocation3 + $0x44] sm:$0x1] }
 0x201   : > { %v2593_v23 = vmax.f32 %v2509_v57, 0.0  ;;  %v2512_v29 = vadd.f32 %v5488_v63, %v7220_v3  ;;  %v2503_v22 = vpop.f32.mrb[15].mxu0  ;;  %v4046_v57 = vsel %vm5950_vm15, %v4044_v12, %v4045_v28  ;;  %v3641_v12 = vrot.slane %v3639_v6, 5 }
 0x202   : > { %v2591_v15 = vmax.f32 %v2501_v31, 0.0  ;;  %v2504_v30 = vadd.f32 %v7220_v3, %v2503_v22  ;;  %v7534_v3 = vsel %vm5950_vm15, %v5332_v27, %v4042_v43  ;;  %v3076_v27 = vld [vmem:[#allocation3 + $0x5c] sm:$0x1] }
 0x203   : > { %v5408_v5 = vpack.c.bf16 %v2593_v23, %v2593_v23  ;;  %v2594_v38 = vmax.f32 %v2512_v29, 0.0  ;;  %v460_v23 = vld [vmem:[#allocation3 + $0xc8] sm:$0x1] }
 0x204   : > { %v5406_v34 = vpack.c.bf16 %v2591_v15, %v2591_v15  ;;  %v2592_v51 = vmax.f32 %v2504_v30, 0.0  ;;  %4236 = vrot.lane.b32.xlu0 %v5299_v39, %s5734_s30  ;;  %4326 = vrot.lane.b32.xlu1 %v7492_v60, %s5739_s23  ;;  %v461_v30 = vsel %vm7081_vm12, 0, %v460_v23 }
 0x205   : > { %v2827_v54 = vshrl.u32 %v5408_v5, 16  ;;  %v2830_v62 = vshll.u32 %v5408_v5, 16  ;;  %v5409_v41 = vpack.c.bf16 %v2594_v38, %v2594_v38  ;;  %v457_v5 = vld [vmem:[#allocation3 + $0xbc] sm:$0x1]  ;;  %462 = vst [vmem:[#allocation3 + $0xc8] sm:$0x1] %v461_v30 }
 0x206   : > { %v2810_v8 = vshrl.u32 %v5406_v34, 16  ;;  %v2813_v40 = vshll.u32 %v5406_v34, 16  ;;  %v5407_v45 = vpack.c.bf16 %v2592_v51, %v2592_v51  ;;  %v4038_v34 = vrot.slane %v7549_v37, 5 }
 0x207   : > { %v2829_v44 = vrot.slane %v2827_v54, 7  ;;  %v2835_v7 = vshrl.u32 %v5409_v41, 16  ;;  %v2838_v56 = vshll.u32 %v5409_v41, 16  ;;  %v458_v51 = vsel %vm7081_vm12, 0, %v457_v5 }
 0x208   : > { %v2812_v20 = vrot.slane %v2810_v8, 7  ;;  %v2818_v11 = vshrl.u32 %v5407_v45, 16  ;;  %v2821_v52 = vshll.u32 %v5407_v45, 16  ;;  %4560 = vrot.lane.b32.xlu0 %v7518_v49, %s5738_s17  ;;  %4472 = vrot.lane.b32.xlu1 %v5299_v39, %s5735_s12  ;;  %v402_v39 = vld [vmem:[#allocation3 + $0xb4] sm:$0x1]  ;;  %v5348_v54 = vcombine.low %v7534_v3, %v4046_v57 }
 0x209   : > { %v2832_v9 = vor.u32 %v2830_v62, %v2829_v44  ;;  %v2833_v36 = vrot.slane %v2829_v44, 4  ;;  %v2837_v18 = vrot.slane %v2835_v7, 7  ;;  %v403_v43 = vsel %vm7011_vm9, 0, %v402_v39  ;;  %459 = vst [vmem:[#allocation3 + $0xbc] sm:$0x1] %v458_v51 }
 0x20a   : > { %v2815_v33 = vor.u32 %v2813_v40, %v2812_v20  ;;  %v2816_v19 = vrot.slane %v2812_v20, 4  ;;  %v2820_v47 = vrot.slane %v2818_v11, 7  ;;  %404 = vst [vmem:[#allocation3 + $0xb4] sm:$0x1] %v403_v43  ;;  %v5331_v62 = vrot.slane %v7502_v50, 9 }
 0x20b   : > { %v3080_v31 = vsel %vm7234_vm13, %v2832_v9, %v3079_v59  ;;  %v2840_v63 = vor.u32 %v2838_v56, %v2837_v18  ;;  %v2842_v17 = vrot.slane %v2837_v18, 4  ;;  %v4039_v41 = vsel %vm5950_vm15, %v4037_v4, %v4038_v34 }
 0x20c   : > { %3081 = vst [vmem:[#allocation3 + $0x60] sm:$0xf] %v3080_v31  ;;  %v3073_v29 = vsel %vm7234_vm13, %v2815_v33, %v3072_v42  ;;  %v2823_v22 = vor.u32 %v2821_v52, %v2820_v47  ;;  %v2825_v15 = vrot.slane %v2820_v47, 4  ;;  %4324 = vrot.lane.b32.xlu0 %v7518_v49, %s5739_s23  ;;  %3925 = vrot.lane.b32.xlu1 %v7492_v60, %s5727_s10  ;;  %v3645_v59 = vrot.slane %v3643_v13, 4  ;;  %v7624_v33 = vld [vmem:[%s8542_s2] ss:$0 sm:$0xff] }
 0x20d   : > { %3074 = vst [vmem:[#allocation3 + $0x54] sm:$0xf] %v3073_v29  ;;  %v2841_v38 = vsel %vm5864_vm8, %v2833_v36, %v2840_v63  ;;  %v3084_v24 = vsel %vm7011_vm9, %v2842_v17, %v3083_v2  ;;  %v4036_v3 = vsel %vm5950_vm15, %v5331_v62, %v4035_v10  ;;  %v3632_v8 = vrot.slane %v3630_v1, 4  ;;  %v5648_v10 = vld [vmem:[%s5850_s9 + $0x38] sm:$0xff]  }
 0x20e   : > { %3082 = vst.msk [vmem:[#allocation3 + $0x64] sm:$0xf] %vm8590_vm11, %v2841_v38  ;;  %3085 = vst [vmem:[#allocation3 + $0x68] sm:$0x1] %v3084_v24  ;;  %v2824_v60 = vsel %vm5864_vm8, %v2816_v19, %v2823_v22  ;;  %v3077_v28 = vsel %vm7011_vm9, %v2825_v15, %v3076_v27  ;;  %v3635_v40 = vrot.slane %v3633_v61, 5  ;;  %v3619_v45 = vshrl.u32 %v7494_v58, 16 }
 0x20f   : > { %3075 = vst.msk [vmem:[#allocation3 + $0x58] sm:$0xf] %vm8591_vm6, %v2824_v60  ;;  %3078 = vst [vmem:[#allocation3 + $0x5c] sm:$0x1] %v3077_v28  ;;  %v5347_v46 = vcombine.low %v4036_v3, %v4039_v41  ;;  %v3615_v13 = vshll.u32 %v7494_v58, 16  ;;  %v3646_v4 = vor.u32 %v3645_v59, %v3641_v12  ;;  %v3609_v44 = vshll.u32 %v7502_v50, 16 }
 0x210   : > { %4170 = vrot.lane.b32.xlu0 %v5348_v54, %s5731_s14  ;;  %3923 = vrot.lane.b32.xlu1 %v7518_v49, %s5727_s10  ;;  %v3606_v49 = vshrl.u32 %v7502_v50, 16  ;;  %v3636_v1 = vor.u32 %v3635_v40, %v3632_v8  ;;  %v3621_v42 = vrot.slane %v3619_v45, 4  ;;  %3277 = vst.msk [vmem:[#allocation5 + $0x38] sm:$0xff] %vm8592_vm0, %v5648_v10  ;;  %v3651_v52 = vrot.slane %v3649_v16, 5  ;;  %vm8596_vm11 = vmmov %vm8592_vm0 }
 0x211   : > { %v3617_v61 = vrot.slane %v3615_v13, 5  ;;  %v3647_v56 = vrot.slane %v3646_v4, 4  ;;  %v3611_v11 = vrot.slane %v3609_v44, 5  ;;  %v3625_v36 = vshll.u32 %v7549_v37, 16  ;;  %v3093_v4 = vld [vmem:[#allocation3 + $0x78] sm:$0xf]  ;;  %vm8597_vm6 = vmmov %vm8592_vm0 }
 0x212   : > { %v3608_v20 = vrot.slane %v3606_v49, 4  ;;  %v3637_v14 = vrot.slane %v3636_v1, 4  ;;  %vm8598_vm0 = vmmov %vm8594_vm3 }
 0x213   : > { %v7602_v7 = vld [vmem:[#allocation3 + $0x60] sm:$0xf]  ;;  %v3652_v6 = vsel %vm5979_vm1, %v3647_v56, %v3651_v52  ;;  %v3622_v55 = vor.u32 %v3621_v42, %v3617_v61  ;;  %v3627_v63 = vrot.slane %v3625_v36, 5  ;;  %v3086_v42 = vld [vmem:[#allocation3 + $0x6c] sm:$0xf]  ;;  %vm8599_vm4 = vmmov %vm8598_vm0 }
 0x214   : > { %4640 = vrot.lane.b32.xlu0 %v5347_v46, %s5737_s16  ;;  %4406 = vrot.lane.b32.xlu1 %v5348_v54, %s5736_s15  ;;  %v3612_v9 = vor.u32 %v3611_v11, %v3608_v20  ;;  %v3642_v18 = vsel %vm5979_vm1, %v3637_v14, %v3641_v12  ;;  %v7632_v23 = vld [vmem:[#allocation3 + $0x54] sm:$0xf]  ;;  %v5334_v1 = vrot.slane %v7602_v7, 9  ;;  %v3097_v11 = vld [vmem:[#allocation3 + $0x80] sm:$0x1] }
 0x215   : > { %v7604_v58 = vld [vmem:[#allocation3 + $0x64] sm:$0xf]  ;;  %v7619_v25 = vcombine.low %v3642_v18, %v3652_v6  ;;  %v3623_v57 = vrot.slane %v3622_v55, 4  ;;  %v7647_v8 = vld [vmem:[#allocation3 + $0x68] sm:$0x1] }
 0x216   : > { %v5302_v50 = vcombine.low %v7602_v7, %v7604_v58  ;;  %v3613_v31 = vrot.slane %v3612_v9, 4  ;;  %v7634_v29 = vld [vmem:[#allocation3 + $0x58] sm:$0xf]  ;;  %v4056_v13 = vrot.slane %v7604_v58, 5  ;;  %v4059_v48 = vrot.slane %v7647_v8, 5 }
 0x217   : > { %v5301_v30 = vcombine.low %v7632_v23, %v7634_v29  ;;  %v3628_v24 = vsel %vm5979_vm1, %v3623_v57, %v3627_v63  ;;  %v4049_v52 = vrot.slane %v7634_v29, 5  ;;  %v3090_v36 = vld [vmem:[#allocation3 + $0x74] sm:$0x1]  ;;  %v3681_v63 = vshll.u32 %v7602_v7, 16 }
 0x218   : > { %4404 = vrot.lane.b32.xlu0 %v5347_v46, %s5736_s15  ;;  %4642 = vrot.lane.b32.xlu1 %v5348_v54, %s5737_s16  ;;  %v3618_v62 = vsel %vm5979_vm1, %v3613_v31, %v3617_v61  ;;  %v4058_v18 = vrot.slane %v4056_v13, 4  ;;  %v7668_v31 = vld [vmem:[#allocation3 + $0x5c] sm:$0x1] }
 0x219   : > { %v7645_v3 = vcombine.low %v3618_v62, %v3628_v24  ;;  %v4052_v24 = vrot.slane %v7668_v31, 5 }
 0x21c   : > { %4478 = vrot.lane.b32.xlu0 %v5302_v50, %s5735_s12  ;;  %4168 = vrot.lane.b32.xlu1 %v5347_v46, %s5731_s14 }
 0x21e   : > { %v5491_v2 = vpop.f32.mrb[16].mxu0 }
 0x21f   : > { %v2525_v19 = vadd.f32 %v7624_v33, %v5491_v2  ;;  %v2516_v47 = vpop.f32.mrb[17].mxu0  ;;  %v3678_v2 = vshrl.u32 %v7602_v7, 16  ;;  %v4057_v7 = vsel %vm5950_vm15, %v5334_v1, %v4056_v13 }
 0x220   : > { %4566 = vrot.lane.b32.xlu0 %v7619_v25, %s5738_s17  ;;  %4242 = vrot.lane.b32.xlu1 %v5302_v50, %s5734_s30  ;;  %v2517_v37 = vadd.f32 %v7624_v33, %v2516_v47  ;;  %v5492_v39 = vpop.f32.mrb[18].mxu0 }
 0x221   : > { %v2597_v17 = vmax.f32 %v2525_v19, 0.0  ;;  %v2528_v27 = vadd.f32 %v7624_v33, %v5492_v39  ;;  %v2519_v43 = vpop.f32.mrb[19].mxu0  ;;  %v3680_v62 = vrot.slane %v3678_v2, 4 }
 0x222   : > { %v2595_v22 = vmax.f32 %v2517_v37, 0.0  ;;  %v2520_v15 = vadd.f32 %v7624_v33, %v2519_v43 }
 0x223   : > { %v5412_v5 = vpack.c.bf16 %v2597_v17, %v2597_v17  ;;  %v2598_v38 = vmax.f32 %v2528_v27, 0.0  ;;  %v3691_v17 = vshrl.u32 %v7604_v58, 16 }
 0x224   : > { %v5410_v34 = vpack.c.bf16 %v2595_v22, %v2595_v22  ;;  %v2596_v51 = vmax.f32 %v2520_v15, 0.0  ;;  %3434 = vrot.lane.b32.xlu0 %v5301_v30, %s5730_s13  ;;  %3436 = vrot.lane.b32.xlu1 %v5302_v50, %s5730_s13 }
 0x225   : > { %v2861_v60 = vshrl.u32 %v5412_v5, 16  ;;  %v2864_v28 = vshll.u32 %v5412_v5, 16  ;;  %v5413_v54 = vpack.c.bf16 %v2598_v38, %v2598_v38  ;;  %v4060_v5 = vsel %vm5950_vm15, %v4058_v18, %v4059_v48 }
 0x226   : > { %v2844_v41 = vshrl.u32 %v5410_v34, 16  ;;  %v2847_v12 = vshll.u32 %v5410_v34, 16  ;;  %v5411_v59 = vpack.c.bf16 %v2596_v51, %v2596_v51  ;;  %v4051_v38 = vrot.slane %v4049_v52, 4 }
 0x227   : > { %v2863_v40 = vrot.slane %v2861_v60, 7  ;;  %v2869_v45 = vshrl.u32 %v5413_v54, 16  ;;  %v2872_v46 = vshll.u32 %v5413_v54, 16  ;;  %v3687_v34 = vshll.u32 %v7604_v58, 16 }
 0x228   : > { %v2846_v49 = vrot.slane %v2844_v41, 7  ;;  %v2852_v44 = vshrl.u32 %v5411_v59, 16  ;;  %v2855_v10 = vshll.u32 %v5411_v59, 16  ;;  %4240 = vrot.lane.b32.xlu0 %v5301_v30, %s5734_s30  ;;  %4330 = vrot.lane.b32.xlu1 %v7619_v25, %s5739_s23  ;;  %v5350_v54 = vcombine.low %v4057_v7, %v4060_v5 }
 0x229   : > { %v2866_v16 = vor.u32 %v2864_v28, %v2863_v40  ;;  %v2867_v61 = vrot.slane %v2863_v40, 4  ;;  %v2871_v56 = vrot.slane %v2869_v45, 7  ;;  %v3667_v28 = vshrl.u32 %v7634_v29, 16 }
 0x22a   : > { %v2849_v50 = vor.u32 %v2847_v12, %v2846_v49  ;;  %v2850_v20 = vrot.slane %v2846_v49, 4  ;;  %v2854_v14 = vrot.slane %v2852_v44, 7  ;;  %v3683_v41 = vrot.slane %v3681_v63, 5 }
 0x22b   : > { %v3094_v6 = vsel %vm7234_vm13, %v2866_v16, %v3093_v4  ;;  %v2874_v55 = vor.u32 %v2872_v46, %v2871_v56  ;;  %v2876_v9 = vrot.slane %v2871_v56, 4  ;;  %v3663_v12 = vshll.u32 %v7634_v29, 16 }
 0x22c   : > { %3095 = vst [vmem:[#allocation3 + $0x78] sm:$0xf] %v3094_v6  ;;  %v3087_v19 = vsel %vm7234_vm13, %v2849_v50, %v3086_v42  ;;  %v2857_v47 = vor.u32 %v2855_v10, %v2854_v14  ;;  %v2859_v57 = vrot.slane %v2854_v14, 4  ;;  %4564 = vrot.lane.b32.xlu0 %v7645_v3, %s5738_s17  ;;  %4476 = vrot.lane.b32.xlu1 %v5301_v30, %s5735_s12  ;;  %v5333_v30 = vrot.slane %v7632_v23, 9  ;;  %v5653_v14 = vld [vmem:[%s5850_s9 + $0x50] sm:$0xff]  }
 0x22d   : > { %v7661_v37 = vpop.permute.xlu0 %4466  ;;  %v7663_v39 = vpop.permute.xlu1 %4230  ;;  %3088 = vst [vmem:[#allocation3 + $0x6c] sm:$0xf] %v3087_v19  ;;  %v2875_v27 = vsel %vm5864_vm8, %v2867_v61, %v2874_v55  ;;  %v3098_v43 = vsel %vm7011_vm9, %v2876_v9, %v3097_v11  ;;  %v4053_v59 = vsel %vm5950_vm15, %v4051_v38, %v4052_v24  ;;  %v3689_v40 = vrot.slane %v3687_v34, 5  ;;  %v5652_v61 = vld [vmem:[%s5850_s9 + $0x48] sm:$0xff]   ;;  %3280 = vst.msk [vmem:[#allocation5 + $0x50] sm:$0xff] %vm8597_vm6, %v5653_v14 }
 0x22e   : > { %3096 = vst.msk [vmem:[#allocation3 + $0x7c] sm:$0xf] %vm8594_vm3, %v2875_v27  ;;  %3099 = vst [vmem:[#allocation3 + $0x80] sm:$0x1] %v3098_v43  ;;  %v2858_v22 = vsel %vm5864_vm8, %v2850_v20, %v2857_v47  ;;  %v3091_v15 = vsel %vm7011_vm9, %v2859_v57, %v3090_v36  ;;  %v4050_v58 = vsel %vm5950_vm15, %v5333_v30, %v4049_v52  ;;  %v3693_v45 = vrot.slane %v3691_v17, 4 }
 0x22f   : > { %3089 = vst.msk [vmem:[#allocation3 + $0x70] sm:$0xf] %vm8595_vm10, %v2858_v22  ;;  %3092 = vst [vmem:[#allocation3 + $0x74] sm:$0x1] %v3091_v15  ;;  %v3657_v46 = vshll.u32 %v7632_v23, 16  ;;  %v3697_v29 = vshll.u32 %v7647_v8, 16  ;;  %v5349_v4 = vcombine.low %v4050_v58, %v4053_v59  ;;  %v3684_v49 = vor.u32 %v3683_v41, %v3680_v62 }
 0x230   : > { %4328 = vrot.lane.b32.xlu0 %v7645_v3, %s5739_s23  ;;  %3929 = vrot.lane.b32.xlu1 %v7619_v25, %s5727_s10  ;;  %v3654_v25 = vshrl.u32 %v7632_v23, 16  ;;  %v3665_v44 = vrot.slane %v3663_v12, 5  ;;  %v3669_v10 = vrot.slane %v3667_v28, 4  ;;  %v3694_v1 = vor.u32 %v3693_v45, %v3689_v40  ;;  %3279 = vst.msk [vmem:[#allocation5 + $0x48] sm:$0xff] %vm8596_vm11, %v5652_v61  ;;  %v3100_v61 = vld [vmem:[#allocation3 + $0x84] sm:$0xf] }
 0x231   : > { %v3425_v51 = vpop.permute.xlu1 %3424  ;;  %v4229_v60 = vpop.permute.xlu0 %4228  ;;  %v3659_v16 = vrot.slane %v3657_v46, 5  ;;  %v3699_v56 = vrot.slane %v3697_v29, 5  ;;  %v3673_v8 = vshll.u32 %v7668_v31, 16  ;;  %v3111_v14 = vld [vmem:[#allocation3 + $0x98] sm:$0x1]  ;;  %vm4444_vm3 = vcmask 425312  }
 0x232   : > { %3471 = vst.msk [vmem:[#allocation5 + $0x10] sm:$0xff] %vm3468_vm5, %v3425_v51  ;;  %v3656_v23 = vrot.slane %v3654_v25, 4  ;;  %v3670_v48 = vor.u32 %v3669_v10, %v3665_v44  ;;  %v3695_v11 = vrot.slane %v3694_v1, 4  ;;  %vm4514_vm10 = vcmask 490912  }
 0x233   : > { %4277 = vst.msk [vmem:[#allocation5] sm:$0xff] %vm4276_vm2, %v4229_v60  ;;  %v7715_v50 = vld [vmem:[#allocation3 + $0x78] sm:$0xf]  ;;  %v3675_v36 = vrot.slane %v3673_v8, 5  ;;  %vm4606_vm11 = vcmask 556512  }
 0x234   : > { %4174 = vrot.lane.b32.xlu0 %v5350_v54, %s5731_s14  ;;  %3927 = vrot.lane.b32.xlu1 %v7645_v3, %s5727_s10  ;;  %v3685_v3 = vrot.slane %v3684_v49, 4  ;;  %v3660_v6 = vor.u32 %v3659_v16, %v3656_v23  ;;  %v3671_v9 = vrot.slane %v3670_v48, 4  ;;  %v3700_v19 = vsel %vm5979_vm1, %v3695_v11, %v3699_v56  ;;  %v7748_v12 = vld [vmem:[#allocation3 + $0x6c] sm:$0xf] }
 0x235   : > { %v3423_v13 = vpop.permute.xlu1 %3422  ;;  %v7717_v20 = vld [vmem:[#allocation3 + $0x7c] sm:$0xf]  ;;  %v7725_v18 = vpop.permute.xlu0 %4162  ;;  %v3729_v23 = vshll.u32 %v7715_v50, 16 }
 0x236   : > { %3470 = vst.msk [vmem:[#allocation5 + $0x8] sm:$0xff] %vm3468_vm5, %v3423_v13  ;;  %v5304_v52 = vcombine.low %v7715_v50, %v7717_v20  ;;  %v3690_v2 = vsel %vm5979_vm1, %v3685_v3, %v3689_v40  ;;  %v3661_v27 = vrot.slane %v3660_v6, 4  ;;  %v3676_v38 = vsel %vm5979_vm1, %v3671_v9, %v3675_v36  ;;  %v7750_v58 = vld [vmem:[#allocation3 + $0x70] sm:$0xf] }
 0x237   : > { %v7738_v7 = vcombine.low %v3690_v2, %v3700_v19  ;;  %v5303_v29 = vcombine.low %v7748_v12, %v7750_v58  ;;  %v5336_v6 = vrot.slane %v7715_v50, 9 }
 0x238   : > { %4644 = vrot.lane.b32.xlu0 %v5349_v4, %s5737_s16  ;;  %4410 = vrot.lane.b32.xlu1 %v5350_v54, %s5736_s15  ;;  %v3666_v28 = vsel %vm5979_vm1, %v3661_v27, %v3665_v44  ;;  %v3107_v44 = vld [vmem:[#allocation3 + $0x90] sm:$0xf] }
 0x239   : > { %v7711_v42 = vpop.permute.xlu1 %4398  ;;  %v7752_v59 = vcombine.low %v3666_v28, %v3676_v38  ;;  %v7754_v40 = vpop.permute.xlu0 %4396 }
 0x23c   : > { %4408 = vrot.lane.b32.xlu0 %v5349_v4, %s5736_s15  ;;  %4646 = vrot.lane.b32.xlu1 %v5350_v54, %s5737_s16 }
 0x23d   : > { %v7732_v31 = vpop.permute.xlu1 %4634 }
 0x23e   : > { %v5495_v55 = vpop.f32.mrb[20].mxu0 }
 0x23f   : > { %v2541_v47 = vadd.f32 %v7624_v33, %v5495_v55  ;;  %v2532_v57 = vpop.f32.mrb[21].mxu0 }
 0x240   : > { %4482 = vrot.lane.b32.xlu0 %v5304_v52, %s5735_s12  ;;  %4172 = vrot.lane.b32.xlu1 %v5349_v4, %s5731_s14  ;;  %v2533_v63 = vadd.f32 %v7624_v33, %v2532_v57  ;;  %v5496_v17 = vpop.f32.mrb[22].mxu0  ;;  %v3726_v4 = vshrl.u32 %v7715_v50, 16  ;;  %v4070_v57 = vrot.slane %v7717_v20, 5 }
 0x241   : > { %v2601_v43 = vmax.f32 %v2541_v47, 0.0  ;;  %v2544_v22 = vadd.f32 %v7624_v33, %v5496_v17  ;;  %v2535_v15 = vpop.f32.mrb[23].mxu0  ;;  %v7756_v45 = vpop.permute.xlu1 %4160  ;;  %v7769_v47 = vld [vmem:[#allocation3 + $0x80] sm:$0x1] }
 0x242   : > { %v2599_v30 = vmax.f32 %v2533_v63, 0.0  ;;  %v2536_v5 = vadd.f32 %v7624_v33, %v2535_v15  ;;  %v3739_v63 = vshrl.u32 %v7717_v20, 16 }
 0x243   : > { %v5416_v24 = vpack.c.bf16 %v2601_v43, %v2601_v43  ;;  %v2602_v34 = vmax.f32 %v2544_v22, 0.0  ;;  %v3104_v43 = vld [vmem:[#allocation3 + $0x8c] sm:$0x1] }
 0x244   : > { %4570 = vrot.lane.b32.xlu0 %v7738_v7, %s5738_s17  ;;  %4246 = vrot.lane.b32.xlu1 %v5304_v52, %s5734_s30  ;;  %v5414_v51 = vpack.c.bf16 %v2599_v30, %v2599_v30  ;;  %v2600_v60 = vmax.f32 %v2536_v5, 0.0  ;;  %v408_v22 = vld [vmem:[#allocation3 + $0xcc] sm:$0x1] }
 0x245   : > { %v2895_v54 = vshrl.u32 %v5416_v24, 16  ;;  %v2898_v62 = vshll.u32 %v5416_v24, 16  ;;  %v5417_v41 = vpack.c.bf16 %v2602_v34, %v2602_v34  ;;  %v409_v38 = vsel %vm7011_vm9, 0, %v408_v22 }
 0x246   : > { %v2878_v25 = vshrl.u32 %v5414_v51, 16  ;;  %v2881_v46 = vshll.u32 %v5414_v51, 16  ;;  %v5415_v13 = vpack.c.bf16 %v2600_v60, %v2600_v60  ;;  %v4073_v51 = vrot.slane %v7769_v47, 5  ;;  %410 = vst [vmem:[#allocation3 + $0xcc] sm:$0x1] %v409_v38 }
 0x247   : > { %v2897_v49 = vrot.slane %v2895_v54, 7  ;;  %v2903_v10 = vshrl.u32 %v5417_v41, 16  ;;  %v2906_v1 = vshll.u32 %v5417_v41, 16  ;;  %v4063_v60 = vrot.slane %v7750_v58, 5 }
 0x248   : > { %v2880_v16 = vrot.slane %v2878_v25, 7  ;;  %v2886_v3 = vshrl.u32 %v5415_v13, 16  ;;  %v2889_v56 = vshll.u32 %v5415_v13, 16  ;;  %3438 = vrot.lane.b32.xlu0 %v5303_v29, %s5730_s13  ;;  %3440 = vrot.lane.b32.xlu1 %v5304_v52, %s5730_s13  ;;  %v4072_v25 = vrot.slane %v4070_v57, 4 }
 0x249   : > { %v2900_v48 = vor.u32 %v2898_v62, %v2897_v49  ;;  %v2901_v8 = vrot.slane %v2897_v49, 4  ;;  %v2905_v11 = vrot.slane %v2903_v10, 7  ;;  %v3735_v13 = vshll.u32 %v7717_v20, 16 }
 0x24a   : > { %v2883_v55 = vor.u32 %v2881_v46, %v2880_v16  ;;  %v2884_v9 = vrot.slane %v2880_v16, 4  ;;  %v2888_v36 = vrot.slane %v2886_v3, 7  ;;  %v7765_v2 = vpop.permute.xlu0 %4470  ;;  %v7767_v19 = vpop.permute.xlu1 %4234  ;;  %v3315_v46 = vld [vmem:[#allocation3 + $0x74] sm:$0x1]  ;;  %v3702_v49 = vshrl.u32 %v7748_v12, 16 }
 0x24b   : > { %v3108_v52 = vsel %vm7234_vm13, %v2900_v48, %v3107_v44  ;;  %v2908_v17 = vor.u32 %v2906_v1, %v2905_v11  ;;  %v2910_v27 = vrot.slane %v2905_v11, 4  ;;  %v3705_v44 = vshll.u32 %v7748_v12, 16  ;;  %v463_v16 = vld [vmem:[#allocation3 + $0xd4] sm:$0x1] }
 0x24c   : > { %3109 = vst [vmem:[#allocation3 + $0x90] sm:$0xf] %v3108_v52  ;;  %v3101_v15 = vsel %vm7234_vm13, %v2883_v55, %v3100_v61  ;;  %v2891_v30 = vor.u32 %v2889_v56, %v2888_v36  ;;  %v2893_v5 = vrot.slane %v2888_v36, 4  ;;  %4244 = vrot.lane.b32.xlu0 %v5303_v29, %s5734_s30  ;;  %4334 = vrot.lane.b32.xlu1 %v7738_v7, %s5739_s23  ;;  %v3715_v10 = vshrl.u32 %v7750_v58, 16 }
 0x24d   : > { %3102 = vst [vmem:[#allocation3 + $0x84] sm:$0xf] %v3101_v15  ;;  %v2909_v24 = vsel %vm5864_vm8, %v2901_v8, %v2908_v17  ;;  %v3112_v34 = vsel %vm7011_vm9, %v2910_v27, %v3111_v14  ;;  %v3711_v1 = vshll.u32 %v7750_v58, 16  ;;  %v5335_v20 = vrot.slane %v7748_v12, 9  ;;  %v5656_v15 = vld [vmem:[%s5850_s9 + $0x58] sm:$0xff]  }
 0x24e   : > { %3110 = vst.msk [vmem:[#allocation3 + $0x94] sm:$0xf] %vm8598_vm0, %v2909_v24  ;;  %3113 = vst [vmem:[#allocation3 + $0x98] sm:$0x1] %v3112_v34  ;;  %v2892_v28 = vsel %vm5864_vm8, %v2884_v9, %v2891_v30  ;;  %v3105_v54 = vsel %vm7011_vm9, %v2893_v5, %v3104_v43  ;;  %v7793_v62 = vpop.permute.xlu0 %4558  ;;  %v3429_v41 = vpop.permute.xlu1 %3428  ;;  %v464_v61 = vsel %vm7081_vm12, 0, %v463_v16  ;;  %v4071_v3 = vsel %vm5950_vm15, %v5336_v6, %v4070_v57 }
 0x24f   : > { %3103 = vst.msk [vmem:[#allocation3 + $0x88] sm:$0xf] %vm8599_vm4, %v2892_v28  ;;  %3106 = vst [vmem:[#allocation3 + $0x8c] sm:$0x1] %v3105_v54  ;;  %v4065_v56 = vrot.slane %v4063_v60, 4  ;;  %v4066_v48 = vrot.slane %v3315_v46, 5  ;;  %v4064_v50 = vsel %vm5950_vm15, %v5335_v20, %v4063_v60 }
 0x250   : > { %3473 = vst.msk [vmem:[#allocation5 + $0x20] sm:$0xff] %vm3468_vm5, %v3429_v41  ;;  %4568 = vrot.lane.b32.xlu0 %v7752_v59, %s5738_s17  ;;  %4480 = vrot.lane.b32.xlu1 %v5303_v29, %s5735_s12  ;;  %v3728_v8 = vrot.slane %v3726_v4, 4  ;;  %465 = vst [vmem:[#allocation3 + $0xd4] sm:$0x1] %v464_v61  ;;  %v4074_v29 = vsel %vm5950_vm15, %v4072_v25, %v4073_v51  ;;  %v3731_v12 = vrot.slane %v3729_v23, 5  ;;  %v7818_v32 = vrot.slane %v3735_v13, 5 }
 0x251   : > { %v3741_v14 = vrot.slane %v3739_v63, 4  ;;  %v3704_v6 = vrot.slane %v3702_v49, 4  ;;  %v3707_v55 = vrot.slane %v3705_v44, 5  ;;  %v7821_v9 = vrot.slane %v3711_v1, 5  ;;  %3281 = vst.msk [vmem:[#allocation5 + $0x58] sm:$0xff] %vm8597_vm6, %v5656_v15 }
 0x252   : > { %v3427_v58 = vpop.permute.xlu0 %3426  ;;  %v7812_v11 = vpop.permute.xlu1 %4322  ;;  %v3717_v4 = vrot.slane %v3715_v10, 4  ;;  %v5352_v57 = vcombine.low %v4071_v3, %v4074_v29  ;;  %v3732_v63 = vor.u32 %v3731_v12, %v3728_v8  ;;  %v3745_v17 = vshll.u32 %v7769_v47, 16 }
 0x253   : > { %3472 = vst.msk [vmem:[#allocation5 + $0x18] sm:$0xff] %vm3468_vm5, %v3427_v58  ;;  %v3742_v52 = vor.u32 %v3741_v14, %v7818_v32  ;;  %v4067_v27 = vsel %vm5950_vm15, %v4065_v56, %v4066_v48  ;;  %v3708_v43 = vor.u32 %v3707_v55, %v3704_v6  ;;  %vm4368_vm12 = vcmask 359712   ;;  %v7864_v41 = vld [vmem:[#allocation3 + $0x90] sm:$0xf] }
 0x254   : > { %4332 = vrot.lane.b32.xlu0 %v7752_v59, %s5739_s23  ;;  %3933 = vrot.lane.b32.xlu1 %v7738_v7, %s5727_s10  ;;  %v3718_v22 = vor.u32 %v3717_v4, %v7821_v9  ;;  %v3721_v7 = vshll.u32 %v3315_v46, 16  ;;  %v5351_v38 = vcombine.low %v4064_v50, %v4067_v27  ;;  %v3733_v47 = vrot.slane %v3732_v63, 4  ;;  %v7876_v13 = vld [vmem:[#allocation3 + $0x84] sm:$0xf] }
 0x255   : > { %v3743_v24 = vrot.slane %v3742_v52, 4  ;;  %v3747_v34 = vrot.slane %v3745_v17, 5  ;;  %v3709_v51 = vrot.slane %v3708_v43, 4  ;;  %vm4682_vm0 = vcmask 622112  }
 0x256   : > { %v4233_v23 = vpop.permute.xlu0 %4232  ;;  %v7829_v36 = vpop.permute.xlu1 %4468  ;;  %v3719_v60 = vrot.slane %v3718_v22, 4  ;;  %v3723_v28 = vrot.slane %v3721_v7, 5  ;;  %vm8551_vm4 = vcmask 621568   ;;  %v7890_v61 = vld [vmem:[#allocation3 + $0x88] sm:$0xf]  ;;  %v3750_v48 = vshrl.u32 %v7876_v13, 16 }
 0x257   : > { %v3753_v8 = vshll.u32 %v7876_v13, 16  ;;  %v3777_v58 = vshll.u32 %v7864_v41, 16  ;;  %v5337_v14 = vrot.slane %v7876_v13, 9  ;;  %v7911_v55 = vcombine.low %v7876_v13, %v7890_v61  ;;  %v3324_v13 = vld [vmem:[#allocation3 + $0x98] sm:$0x1] }
 0x258   : > { %4178 = vrot.lane.b32.xlu0 %v5352_v57, %s5731_s14  ;;  %3931 = vrot.lane.b32.xlu1 %v7752_v59, %s5727_s10  ;;  %v3724_v25 = vsel %vm5979_vm1, %v3719_v60, %v3723_v28  ;;  %v4077_v22 = vrot.slane %v7890_v61, 5  ;;  %v3759_v7 = vshll.u32 %v7890_v61, 16  ;;  %vm8600_vm6 = vcmask 60416  }
 0x259   : > { %v3755_v60 = vrot.slane %v3753_v8, 5 }
 0x25a   : > { %v4321_v30 = vpop.permute.xlu0 %4320  ;;  %v3922_v5 = vpop.permute.xlu1 %3921 }
 0x25b   : > { %4369 = vst.msk [vmem:[#allocation5] sm:$0xff] %vm4368_vm12, %v4321_v30  ;;  %v3121_v30 = vld [vmem:[#allocation3 + $0xa8] sm:$0xf] }
 0x25c   : > { %3968 = vst.msk [vmem:[#allocation5 + $0x10] sm:$0xff] %vm3965_vm14, %v3922_v5  ;;  %4648 = vrot.lane.b32.xlu0 %v5351_v38, %s5737_s16  ;;  %4414 = vrot.lane.b32.xlu1 %v5352_v57, %s5736_s15 }
 0x25d   : > { %4445 = vst.msk [vmem:[#allocation5] sm:$0xff] %vm4444_vm3, %v7754_v40  ;;  %v3738_v40 = vsel %vm5979_vm1, %v3733_v47, %v7818_v32  ;;  %v7905_v32 = vld [vmem:[#allocation3 + $0x94] sm:$0xf] }
 0x25e   : > { %4209 = vst.msk [vmem:[#allocation5 + $0x10] sm:$0xff] %vm8552_vm7, %v7725_v18  ;;  %v7854_v59 = vpop.permute.xlu0 %4166  ;;  %v3920_v54 = vpop.permute.xlu1 %3919  ;;  %v3748_v18 = vsel %vm5979_vm1, %v3743_v24, %v3747_v34  ;;  %v7916_v4 = vcombine.low %v7864_v41, %v7905_v32  ;;  %v3114_v34 = vld [vmem:[#allocation3 + $0x9c] sm:$0xf] }
 0x25f   : > { %4515 = vst.msk [vmem:[#allocation5] sm:$0xff] %vm4514_vm10, %v7661_v37  ;;  %v5499_v37 = vpop.f32.mrb[24].mxu0  ;;  %v7880_v49 = vcombine.low %v3738_v40, %v3748_v18 }
 0x260   : > { %4279 = vst.msk [vmem:[#allocation5 + $0x10] sm:$0xff] %vm4276_vm2, %v4233_v23  ;;  %4412 = vrot.lane.b32.xlu0 %v5351_v38, %s5736_s15  ;;  %4650 = vrot.lane.b32.xlu1 %v5352_v57, %s5737_s16  ;;  %v2548_v46 = vpop.f32.mrb[25].mxu0 }
 0x261   : > { %4607 = vst.msk [vmem:[#allocation5] sm:$0xff] %vm4606_vm11, %v7793_v62  ;;  %v3714_v62 = vsel %vm5979_vm1, %v3709_v51, %v7821_v9  ;;  %v2549_v44 = vadd.f32 %v7624_v33, %v2548_v46  ;;  %v5500_v10 = vpop.f32.mrb[26].mxu0  ;;  %v3763_v9 = vshrl.u32 %v7890_v61, 16  ;;  %v3752_v51 = vrot.slane %v3750_v48, 4 }
 0x262   : > { %4683 = vst.msk [vmem:[#allocation5] sm:$0xff] %vm4682_vm0, %v7732_v31  ;;  %v2557_v31 = vadd.f32 %v7624_v33, %v5499_v37  ;;  %v7887_v1 = vpop.permute.xlu1 %4402  ;;  %v2560_v20 = vadd.f32 %v7624_v33, %v5500_v10  ;;  %v7893_v3 = vcombine.low %v3714_v62, %v3724_v25  ;;  %v3125_v10 = vld [vmem:[#allocation3 + $0xb0] sm:$0x1] }
 0x263   : > { %3967 = vst.msk [vmem:[#allocation5 + $0x8] sm:$0xff] %vm3965_vm14, %v3920_v54  ;;  %v2603_v56 = vmax.f32 %v2549_v44, 0.0  ;;  %v3765_v28 = vrot.slane %v3763_v9, 4 }
 0x264   : > { %4208 = vst.msk [vmem:[#allocation5 + $0x8] sm:$0xff] %vm8552_vm7, %v7756_v45  ;;  %v7885_v45 = vpop.permute.xlu0 %4636  ;;  %v2605_v16 = vmax.f32 %v2557_v31, 0.0  ;;  %4574 = vrot.lane.b32.xlu0 %v7880_v49, %s5738_s17  ;;  %4176 = vrot.lane.b32.xlu1 %v5351_v38, %s5731_s14  ;;  %v2606_v12 = vmax.f32 %v2560_v20, 0.0  ;;  %v3321_v31 = vld [vmem:[#allocation3 + $0x8c] sm:$0x1]  ;;  %v7933_v20 = vrot.slane %v3759_v7, 5 }
 0x265   : > { %4278 = vst.msk [vmem:[#allocation5 + $0x8] sm:$0xff] %vm4276_vm2, %v7663_v39  ;;  %v3774_v39 = vshrl.u32 %v7864_v41, 16  ;;  %v5418_v6 = vpack.c.bf16 %v2603_v56, %v2603_v56 }
 0x266   : > { %4370 = vst.msk [vmem:[#allocation5 + $0x8] sm:$0xff] %vm4368_vm12, %v7812_v11  ;;  %v2551_v11 = vpop.f32.mrb[27].mxu0  ;;  %v5420_v29 = vpack.c.bf16 %v2605_v16, %v2605_v16  ;;  %v7920_v57 = vpop.permute.xlu1 %4638  ;;  %v5421_v52 = vpack.c.bf16 %v2606_v12, %v2606_v12  ;;  %v3118_v12 = vld [vmem:[#allocation3 + $0xa4] sm:$0x1]  ;;  %v3766_v7 = vor.u32 %v3765_v28, %v7933_v20 }
 0x267   : > { %4446 = vst.msk [vmem:[#allocation5 + $0x8] sm:$0xff] %vm4444_vm3, %v7711_v42  ;;  %v2552_v42 = vadd.f32 %v7624_v33, %v2551_v11  ;;  %v2912_v27 = vshrl.u32 %v5418_v6, 16  ;;  %v2915_v43 = vshll.u32 %v5418_v6, 16  ;;  %v3783_v6 = vshll.u32 %v7905_v32, 16 }
 0x268   : > { %4516 = vst.msk [vmem:[#allocation5 + $0x8] sm:$0xff] %vm4514_vm10, %v7829_v36  ;;  %v2929_v50 = vshrl.u32 %v5420_v29, 16  ;;  %v2932_v23 = vshll.u32 %v5420_v29, 16  ;;  %v7918_v36 = vpop.permute.xlu0 %4400  ;;  %v2937_v5 = vshrl.u32 %v5421_v52, 16  ;;  %v2940_v38 = vshll.u32 %v5421_v52, 16  ;;  %3442 = vrot.lane.b32.xlu0 %v7911_v55, %s5730_s13  ;;  %4250 = vrot.lane.b32.xlu1 %v7916_v4, %s5734_s30 }
 0x269   : > { %v4699_v63 = vld [vmem:[#allocation5] sm:$0xff]  ;;  %v2604_v17 = vmax.f32 %v2552_v42, 0.0  ;;  %v2914_v24 = vrot.slane %v2912_v27, 7  ;;  %v3787_v29 = vshrl.u32 %v7905_v32, 16  ;;  %v4080_v42 = vrot.slane %v3321_v31, 5 }
 0x26a   : > { %5515 = vmatprep.mubr.msk.bf16.mxu1 %vm8551_vm4, %v4699_v63  ;;  %v2931_v15 = vrot.slane %v2929_v50, 7  ;;  %v2939_v18 = vrot.slane %v2937_v5, 7  ;;  %v7931_v25 = vpop.permute.xlu1 %4164  ;;  %v4079_v27 = vrot.slane %v4077_v22, 4  ;;  %vm8601_vm4 = vmmov %vm8600_vm6 }
 0x26b   : > { %v5419_v47 = vpack.c.bf16 %v2604_v17, %v2604_v17  ;;  %v2917_v46 = vor.u32 %v2915_v43, %v2914_v24  ;;  %v2918_v44 = vrot.slane %v2914_v24, 4  ;;  %v3756_v43 = vor.u32 %v3755_v60, %v3752_v51 }
 0x26c   : > { %v2934_v54 = vor.u32 %v2932_v23, %v2931_v15  ;;  %v2935_v40 = vrot.slane %v2931_v15, 4  ;;  %v7929_v62 = vpop.permute.xlu0 %4474  ;;  %v2942_v56 = vor.u32 %v2940_v38, %v2939_v18  ;;  %v2944_v48 = vrot.slane %v2939_v18, 4  ;;  %4248 = vrot.lane.b32.xlu0 %v7911_v55, %s5734_s30  ;;  %4338 = vrot.lane.b32.xlu1 %v7880_v49, %s5739_s23 }
 0x26d   : > { %v2920_v37 = vshrl.u32 %v5419_v47, 16  ;;  %v2923_v16 = vshll.u32 %v5419_v47, 16  ;;  %v3115_v11 = vsel %vm7234_vm13, %v2917_v46, %v3114_v34  ;;  %v3769_v15 = vshll.u32 %v3321_v31, 16 }
 0x26e   : > { %v3122_v61 = vsel %vm7234_vm13, %v2934_v54, %v3121_v30  ;;  %3116 = vst [vmem:[#allocation3 + $0x9c] sm:$0xf] %v3115_v11  ;;  %v2943_v9 = vsel %vm5864_vm8, %v2935_v40, %v2942_v56  ;;  %v3126_v50 = vsel %vm7011_vm9, %v2944_v48, %v3125_v10  ;;  %v7951_v17 = vpop.permute.xlu1 %4238  ;;  %v3776_v38 = vrot.slane %v3774_v39, 4 }
 0x26f   : > { %v2922_v8 = vrot.slane %v2920_v37, 7  ;;  %3123 = vst [vmem:[#allocation3 + $0xa8] sm:$0xf] %v3122_v61  ;;  %3124 = vst.msk [vmem:[#allocation3 + $0xac] sm:$0xf] %vm8600_vm6, %v2943_v9  ;;  %v4078_v34 = vsel %vm5950_vm15, %v5337_v14, %v4077_v22  ;;  %v3779_v51 = vrot.slane %v3777_v58, 5  ;;  %v4081_v39 = vsel %vm5950_vm15, %v4079_v27, %v4080_v42 }
 0x270   : > { %v7949_v52 = vpop.permute.xlu0 %4562  ;;  %3127 = vst [vmem:[#allocation3 + $0xb0] sm:$0x1] %v3126_v50  ;;  %4572 = vrot.lane.b32.xlu0 %v7893_v3, %s5738_s17  ;;  %4484 = vrot.lane.b32.xlu1 %v7911_v55, %s5735_s12  ;;  %v7972_v60 = vrot.slane %v3783_v6, 5  ;;  %v3789_v28 = vrot.slane %v3787_v29, 4  ;;  %v3757_v55 = vrot.slane %v3756_v43, 4  ;;  %v3767_v54 = vrot.slane %v3766_v7, 4 }
 0x271   : > { %v2925_v23 = vor.u32 %v2923_v16, %v2922_v8  ;;  %v2927_v63 = vrot.slane %v2922_v8, 4  ;;  %v3771_v40 = vrot.slane %v3769_v15, 5  ;;  %v7984_v22 = vcombine.low %v4078_v34, %v4081_v39 }
 0x272   : > { %v3433_v24 = vpop.permute.xlu1 %3432  ;;  %v3780_v18 = vor.u32 %v3779_v51, %v3776_v38  ;;  %v3790_v37 = vor.u32 %v3789_v28, %v7972_v60  ;;  %v3793_v31 = vshll.u32 %v3324_v13, 16  ;;  %v5338_v42 = vrot.slane %v7864_v41, 9 }
 0x273   : > { %v2926_v30 = vsel %vm5864_vm8, %v2918_v44, %v2925_v23  ;;  %v3119_v5 = vsel %vm7011_vm9, %v2927_v63, %v3118_v12  ;;  %3475 = vst.msk [vmem:[#allocation5 + $0x30] sm:$0xff] %vm3468_vm5, %v3433_v24  ;;  %v3762_v44 = vsel %vm5979_vm1, %v3757_v55, %v7933_v20  ;;  %v3772_v10 = vsel %vm5979_vm1, %v3767_v54, %v3771_v40 }
 0x274   : > { %3117 = vst.msk [vmem:[#allocation3 + $0xa0] sm:$0xf] %vm8601_vm4, %v2926_v30  ;;  %3120 = vst [vmem:[#allocation3 + $0xa4] sm:$0x1] %v3119_v5  ;;  %v3431_v47 = vpop.permute.xlu0 %3430  ;;  %4336 = vrot.lane.b32.xlu0 %v7893_v3, %s5739_s23  ;;  %3937 = vrot.lane.b32.xlu1 %v7880_v49, %s5727_s10  ;;  %v4084_v49 = vrot.slane %v7905_v32, 5  ;;  %v5321_v20 = vcombine.low %v3762_v44, %v3772_v10  ;;  %v3781_v11 = vrot.slane %v3780_v18, 4 }
 0x275   : > { %3474 = vst.msk [vmem:[#allocation5 + $0x28] sm:$0xff] %vm3468_vm5, %v3431_v47  ;;  %v7987_v46 = vld [vmem:[#allocation3 + $0x9c] sm:$0xf]  ;;  %v3791_v29 = vrot.slane %v3790_v37, 4  ;;  %v3795_v12 = vrot.slane %v3793_v31, 5  ;;  %v4087_v50 = vrot.slane %v3324_v13, 5 }
 0x276   : > { %v7982_v14 = vpop.permute.xlu1 %4326  ;;  %v3798_v61 = vshrl.u32 %v7987_v46, 16  ;;  %v3801_v56 = vshll.u32 %v7987_v46, 16  ;;  %v4086_v9 = vrot.slane %v4084_v49, 4  ;;  %v4085_v34 = vsel %vm5950_vm15, %v5338_v42, %v4084_v49 }
 0x277   : > { %v3796_v5 = vsel %vm5979_vm1, %v3791_v29, %v3795_v12  ;;  %vm8602_vm4 = vcmask 621568   ;;  %vm8603_vm6 = vcmask 31744  }
 0x278   : > { %v4237_v58 = vpop.permute.xlu0 %4236  ;;  %4652 = vrot.lane.b32.xlu0 %v7984_v22, %s5737_s16  ;;  %3935 = vrot.lane.b32.xlu1 %v7893_v3, %s5727_s10  ;;  %v3800_v43 = vrot.slane %v3798_v61, 4  ;;  %v3803_v7 = vrot.slane %v3801_v56, 5  ;;  %v4088_v55 = vsel %vm5950_vm15, %v4086_v9, %v4087_v50 }
 0x279   : > { %v8064_v42 = vcombine.low %v4085_v34, %v4088_v55 }
 0x27a   : > { %v8003_v8 = vpop.permute.xlu1 %4472 }
 0x27b   : > { %v7999_v16 = vld [vmem:[#allocation3 + $0xa0] sm:$0xf]  ;;  %v5503_v3 = vpop.f32.mrb[28].mxu0  ;;  %v8022_v24 = vld [vmem:[#allocation3 + $0xa4] sm:$0x1] }
 0x27c   : > { %v4561_v48 = vpop.permute.xlu0 %4560  ;;  %v3811_v32 = vshrl.u32 %v7999_v16, 16  ;;  %v3807_v6 = vshll.u32 %v7999_v16, 16  ;;  %4576 = vrot.lane.b32.xlu0 %v5321_v20, %s5738_s17  ;;  %4180 = vrot.lane.b32.xlu1 %v7984_v22, %s5731_s14  ;;  %v2573_v23 = vadd.f32 %v7624_v33, %v5503_v3  ;;  %v2564_v63 = vpop.f32.mrb[29].mxu0  ;;  %v3817_v37 = vshll.u32 %v8022_v24, 16  ;;  %v3135_v3 = vld [vmem:[#allocation3 + $0xc0] sm:$0xf] }
 0x27d   : > { %4608 = vst.msk [vmem:[#allocation5 + $0x8] sm:$0xff] %vm4606_vm11, %v4561_v48  ;;  %v2565_v41 = vadd.f32 %v7624_v33, %v2564_v63  ;;  %v5504_v27 = vpop.f32.mrb[30].mxu0  ;;  %v4094_v21 = vrot.slane %v8022_v24, 5 }
 0x27e   : > { %4684 = vst.msk [vmem:[#allocation5 + $0x8] sm:$0xff] %vm4682_vm0, %v7885_v45  ;;  %v3926_v30 = vpop.permute.xlu1 %3925  ;;  %v3786_v45 = vsel %vm5979_vm1, %v3781_v11, %v7972_v60  ;;  %v2609_v38 = vmax.f32 %v2573_v23, 0.0  ;;  %v2576_v47 = vadd.f32 %v7624_v33, %v5504_v27  ;;  %v2567_v28 = vpop.f32.mrb[31].mxu0  ;;  %v8028_v39 = vrot.slane %v3807_v6, 5  ;;  %v5658_v11 = vld [vmem:[%s5850_s9 + $0x68] sm:$0xff]  }
 0x27f   : > { %3970 = vst.msk [vmem:[#allocation5 + $0x20] sm:$0xff] %vm3965_vm14, %v3926_v30  ;;  %v2607_v51 = vmax.f32 %v2565_v41, 0.0  ;;  %v3813_v60 = vrot.slane %v3811_v32, 4  ;;  %v2568_v13 = vadd.f32 %v7624_v33, %v2567_v28  ;;  %v3819_v6 = vrot.slane %v3817_v37, 5  ;;  %v3128_v23 = vld [vmem:[#allocation3 + $0xb4] sm:$0xf] }
 0x280   : > { %v4325_v15 = vpop.permute.xlu0 %4324  ;;  %4211 = vst.msk [vmem:[#allocation5 + $0x20] sm:$0xff] %vm8552_vm7, %v7854_v59  ;;  %4340 = vrot.lane.b32.xlu0 %v5321_v20, %s5739_s23  ;;  %3939 = vrot.lane.b32.xlu1 %v5321_v20, %s5727_s10  ;;  %v5424_v54 = vpack.c.bf16 %v2609_v38, %v2609_v38  ;;  %v2610_v40 = vmax.f32 %v2576_v47, 0.0  ;;  %v3804_v59 = vor.u32 %v3803_v7, %v3800_v43  ;;  %v5657_v20 = vld [vmem:[%s5850_s9 + $0x60] sm:$0xff]  }
 0x281   : > { %4371 = vst.msk [vmem:[#allocation5 + $0x10] sm:$0xff] %vm4368_vm12, %v4325_v15  ;;  %v5422_v18 = vpack.c.bf16 %v2607_v51, %v2607_v51  ;;  %v3814_v48 = vor.u32 %v3813_v60, %v8028_v39  ;;  %v3139_v7 = vld [vmem:[#allocation3 + $0xc8] sm:$0x1]  ;;  %v8088_v47 = vcombine.low %v7987_v46, %v7999_v16 }
 0x282   : > { %4447 = vst.msk [vmem:[#allocation5 + $0x10] sm:$0xff] %vm4444_vm3, %v7918_v36  ;;  %v8042_v36 = vcombine.low %v3786_v45, %v3796_v5  ;;  %v3924_v44 = vpop.permute.xlu1 %3923  ;;  %v2963_v33 = vshrl.u32 %v5424_v54, 16  ;;  %v2966_v10 = vshll.u32 %v5424_v54, 16  ;;  %v5425_v49 = vpack.c.bf16 %v2610_v40, %v2610_v40 }
 0x283   : > { %4517 = vst.msk [vmem:[#allocation5 + $0x10] sm:$0xff] %vm4514_vm10, %v7765_v2  ;;  %v2608_v2 = vmax.f32 %v2568_v13, 0.0  ;;  %v2946_v61 = vshrl.u32 %v5422_v18, 16  ;;  %v2949_v56 = vshll.u32 %v5422_v18, 16  ;;  %v3815_v30 = vrot.slane %v3814_v48, 4 }
 0x284   : > { %4281 = vst.msk [vmem:[#allocation5 + $0x20] sm:$0xff] %vm4276_vm2, %v4237_v58  ;;  %v8047_v31 = vpop.permute.xlu0 %4170  ;;  %4416 = vrot.lane.b32.xlu0 %v7984_v22, %s5736_s15  ;;  %4342 = vrot.lane.b32.xlu1 %v8042_v36, %s5739_s23  ;;  %v2974_v29 = vshll.u32 %v5425_v49, 16  ;;  %v4091_v18 = vrot.slane %v7999_v16, 5 }
 0x285   : > { %4609 = vst.msk [vmem:[#allocation5 + $0x10] sm:$0xff] %vm4606_vm11, %v7949_v52  ;;  %v4700_v58 = vld [vmem:[#allocation5 + $0x8] sm:$0xff]  ;;  %v2965_v52 = vrot.slane %v2963_v33, 7  ;;  %v5423_v12 = vpack.c.bf16 %v2608_v2, %v2608_v2  ;;  %v2948_v32 = vrot.slane %v2946_v61, 7  ;;  %v3820_v13 = vsel %vm5979_vm1, %v3815_v30, %v3819_v6  ;;  %v8121_v33 = vld [vmem:[#allocation3 + $0xa8] sm:$0xf] }
 0x286   : > { %4685 = vst.msk [vmem:[#allocation5 + $0x10] sm:$0xff] %vm4682_vm0, %v7920_v57  ;;  %v2971_v57 = vshrl.u32 %v5425_v49, 16  ;;  %5516 = vmatmul.mubr.msk.bf16.vlgmr.msra.gmra.mrb[0].mxu1 %vm8602_vm4, %v4700_v58  ;;  %v8072_v9 = vpop.permute.xlu1 %4406  ;;  %v4093_v49 = vrot.slane %v4091_v18, 4  ;;  %v8125_v2 = vld [vmem:[#allocation3 + $0xac] sm:$0xf]  ;;  %v3822_v0 = vshrl.u32 %v8121_v33, 16 }
 0x287   : > { %3969 = vst.msk [vmem:[#allocation5 + $0x18] sm:$0xff] %vm3965_vm14, %v3924_v44  ;;  %v2969_v50 = vrot.slane %v2965_v52, 4  ;;  %v2954_v41 = vshrl.u32 %v5423_v12, 16  ;;  %v2951_v27 = vor.u32 %v2949_v56, %v2948_v32  ;;  %v2952_v43 = vrot.slane %v2948_v32, 4  ;;  %v3330_v32 = vld [vmem:[#allocation3 + $0xb0] sm:$0x1] }
 0x288   : > { %4210 = vst.msk [vmem:[#allocation5 + $0x18] sm:$0xff] %vm8552_vm7, %v7931_v25  ;;  %v3805_v25 = vrot.slane %v3804_v59, 4  ;;  %vm8604_vm7 = vmmov %vm8603_vm6  ;;  %v8070_v22 = vpop.permute.xlu0 %4640  ;;  %v2973_v63 = vrot.slane %v2971_v57, 7  ;;  %v2957_v15 = vshll.u32 %v5423_v12, 16  ;;  %4486 = vrot.lane.b32.xlu0 %v7916_v4, %s5735_s12  ;;  %4418 = vrot.lane.b32.xlu1 %v8064_v42, %s5736_s15  ;;  %v3825_v56 = vshll.u32 %v8121_v33, 16 }
 0x289   : > { %4280 = vst.msk [vmem:[#allocation5 + $0x18] sm:$0xff] %vm4276_vm2, %v7767_v19  ;;  %v2968_v19 = vor.u32 %v2966_v10, %v2965_v52  ;;  %v3129_v38 = vsel %vm7234_vm13, %v2951_v27, %v3128_v23  ;;  %v5339_v10 = vrot.slane %v7987_v46, 9  ;;  %v3835_v46 = vshrl.u32 %v8125_v2, 16 }
 0x28a   : > { %3282 = vst.msk [vmem:[#allocation5 + $0x60] sm:$0xff] %vm8603_vm6, %v5657_v20  ;;  %v2976_v45 = vor.u32 %v2974_v29, %v2973_v63  ;;  %v2978_v5 = vrot.slane %v2973_v63, 4  ;;  %v8092_v51 = vpop.permute.xlu1 %4642  ;;  %3130 = vst [vmem:[#allocation3 + $0xb4] sm:$0xf] %v3129_v38  ;;  %v3810_v40 = vsel %vm5979_vm1, %v3805_v25, %v8028_v39  ;;  %v3831_v24 = vshll.u32 %v8125_v2, 16 }
 0x28b   : > { %3283 = vst.msk [vmem:[#allocation5 + $0x68] sm:$0xff] %vm8604_vm7, %v5658_v11  ;;  %vm8606_vm7 = vcmask 60416   ;;  %v8119_v16 = vcombine.low %v3810_v40, %v3820_v13  ;;  %v4092_v48 = vsel %vm5950_vm15, %v5339_v10, %v4091_v18  ;;  %v4095_v20 = vsel %vm5950_vm15, %v4093_v49, %v4094_v21  ;;  %v5659_v21 = vld [vmem:[%s5850_s9 + $0x70] sm:$0xff]  }
 0x28c   : > { %4372 = vst.msk [vmem:[#allocation5 + $0x18] sm:$0xff] %vm4368_vm12, %v7982_v14  ;;  %v3136_v14 = vsel %vm7234_vm13, %v2968_v19, %v3135_v3  ;;  %v8090_v34 = vpop.permute.xlu0 %4404  ;;  %v2977_v60 = vsel %vm5864_vm8, %v2969_v50, %v2976_v45  ;;  %v3140_v55 = vsel %vm7011_vm9, %v2978_v5, %v3139_v7  ;;  %vm8605_vm13 = vmmov %vm8602_vm4  ;;  %4578 = vrot.lane.b32.xlu0 %v8042_v36, %s5738_s17  ;;  %v3827_v29 = vrot.slane %v3825_v56, 5 }
 0x28d   : > { %4448 = vst.msk [vmem:[#allocation5 + $0x18] sm:$0xff] %vm4444_vm3, %v7887_v1  ;;  %v2956_v1 = vrot.slane %v2954_v41, 7  ;;  %3137 = vst [vmem:[#allocation3 + $0xc0] sm:$0xf] %v3136_v14  ;;  %v4701_v28 = vld [vmem:[#allocation5 + $0x10] sm:$0xff]  ;;  %4488 = vrot.lane.b32.xlu1 %v8088_v47, %s5735_s12  ;;  %v8147_v57 = vcombine.low %v4092_v48, %v4095_v20  ;;  %v3833_v12 = vrot.slane %v3831_v24, 5 }
 0x28e   : > { %4518 = vst.msk [vmem:[#allocation5 + $0x18] sm:$0xff] %vm4514_vm10, %v8003_v8  ;;  %v3132_v8 = vld [vmem:[#allocation3 + $0xbc] sm:$0x1]  ;;  %5519 = vmatprep.mubr.msk.bf16.mxu1 %vm8605_vm13, %v4701_v28  ;;  %3141 = vst [vmem:[#allocation3 + $0xc8] sm:$0x1] %v3140_v55  ;;  %v8117_v44 = vpop.permute.xlu1 %4168  ;;  %v3837_v3 = vrot.slane %v3835_v46, 4 }
 0x28f   : > { %v2959_v54 = vor.u32 %v2957_v15, %v2956_v1  ;;  %v2961_v26 = vrot.slane %v2956_v1, 4  ;;  %3138 = vst.msk [vmem:[#allocation3 + $0xc4] sm:$0xf] %vm8606_vm7, %v2977_v60  ;;  %vm8607_vm4 = vmmov %vm8606_vm7  ;;  %v3841_v23 = vshll.u32 %v3330_v32, 16  ;;  %v4098_v30 = vrot.slane %v8125_v2, 5 }
 0x290   : > { %v8115_v39 = vpop.permute.xlu0 %4478  ;;  %4580 = vrot.lane.b32.xlu0 %v8119_v16, %s5738_s17  ;;  %v3838_v50 = vor.u32 %v3837_v3, %v3833_v12  ;;  %v8181_v1 = vcombine.low %v8121_v33, %v8125_v2  ;;  %v5340_v38 = vrot.slane %v8121_v33, 9  ;;  %v5660_v2 = vld [vmem:[%s5850_s9 + $0x78] sm:$0xff]   ;;  %vm8610_vm6 = vmmov %vm8605_vm13  ;;  %vm8611_vm13 = vcmask 31744  }
 0x291   : > { %v2960_v59 = vsel %vm5864_vm8, %v2952_v43, %v2959_v54  ;;  %v3133_v37 = vsel %vm7011_vm9, %v2961_v26, %v3132_v8  ;;  %3444 = vrot.lane.b32.xlu1 %v7916_v4, %s5730_s13  ;;  %v3824_v4 = vrot.slane %v3822_v0, 4  ;;  %v8161_v63 = vld [vmem:[#allocation3 + $0xb4] sm:$0xf]  ;;  %v3843_v15 = vrot.slane %v3841_v23, 5  ;;  %3284 = vst.msk [vmem:[#allocation5 + $0x70] sm:$0xff] %vm8611_vm13, %v5659_v21  ;;  %vm8612_vm7 = vmmov %vm8611_vm13 }
 0x292   : > { %3131 = vst.msk [vmem:[#allocation3 + $0xb8] sm:$0xf] %vm8607_vm4, %v2960_v59  ;;  %3134 = vst [vmem:[#allocation3 + $0xbc] sm:$0x1] %v3133_v37  ;;  %v8134_v61 = vpop.permute.xlu1 %4242  ;;  %v3839_v7 = vrot.slane %v3838_v50, 4  ;;  %v3846_v14 = vshrl.u32 %v8161_v63, 16  ;;  %v4099_v37 = vsel %vm5950_vm15, %v5340_v38, %v4098_v30 }
 0x293   : > { %v3828_v19 = vor.u32 %v3827_v29, %v3824_v4  ;;  %v4100_v55 = vrot.slane %v4098_v30, 4  ;;  %v4101_v54 = vrot.slane %v3330_v32, 5  ;;  %vm8608_vm8 = vcmask 228512   ;;  %3285 = vst.msk [vmem:[#allocation5 + $0x78] sm:$0xff] %vm8612_vm7, %v5660_v2  ;;  %vm8613_vm4 = vmmov %vm8610_vm6  ;;  %v8292_v38 = vld [vmem:[#allocation3 + $0xcc] sm:$0xf] }
 0x294   : > { %v8132_v58 = vpop.permute.xlu0 %4566  ;;  %3446 = vrot.lane.b32.xlu0 %v8088_v47, %s5730_s13  ;;  %vm8609_vm9 = vmmov %vm8608_vm8 }
 0x295   : > { %4654 = vrot.lane.b32.xlu1 %v8064_v42, %s5737_s16  ;;  %vm8616_vm13 = vmmov %vm8613_vm4 }
 0x296   : > { %v3437_v52 = vpop.permute.xlu1 %3436  ;;  %vm8619_vm7 = vmmov %vm8613_vm4 }
 0x297   : > { %3477 = vst.msk [vmem:[#allocation5 + $0x40] sm:$0xff] %vm3468_vm5, %v3437_v52 }
 0x298   : > { %v3435_v11 = vpop.permute.xlu0 %3434  ;;  %4656 = vrot.lane.b32.xlu0 %v8147_v57, %s5737_s16 }
 0x299   : > { %3476 = vst.msk [vmem:[#allocation5 + $0x38] sm:$0xff] %vm3468_vm5, %v3435_v11  ;;  %3941 = vrot.lane.b32.xlu1 %v8042_v36, %s5727_s10  ;;  %v8163_v41 = vld [vmem:[#allocation3 + $0xb8] sm:$0xf]  ;;  %v3829_v36 = vrot.slane %v3828_v19, 4  ;;  %v3333_v18 = vld [vmem:[#allocation3 + $0xbc] sm:$0x1] }
 0x29a   : > { %v8155_v6 = vpop.permute.xlu1 %4330  ;;  %v3859_v45 = vshrl.u32 %v8163_v41, 16  ;;  %v3855_v5 = vshll.u32 %v8163_v41, 16  ;;  %v3865_v49 = vshll.u32 %v3333_v18, 16  ;;  %v5309_v20 = vcombine.low %v8161_v63, %v8163_v41 }
 0x29b   : > { %v3834_v60 = vsel %vm5979_vm1, %v3829_v36, %v3833_v12  ;;  %v4105_v11 = vrot.slane %v8163_v41, 5  ;;  %v5341_v12 = vrot.slane %v8161_v63, 9  ;;  %v4108_v32 = vrot.slane %v3333_v18, 5 }
 0x29c   : > { %v4241_v25 = vpop.permute.xlu0 %4240  ;;  %4182 = vrot.lane.b32.xlu0 %v8064_v42, %s5731_s14  ;;  %v3849_v42 = vshll.u32 %v8161_v63, 16  ;;  %v3857_v40 = vrot.slane %v3855_v5, 5  ;;  %v3861_v13 = vrot.slane %v3859_v45, 4 }
 0x29d   : > { %3943 = vrot.lane.b32.xlu1 %v8119_v16, %s5727_s10  ;;  %v4107_v3 = vrot.slane %v4105_v11, 4  ;;  %v4106_v41 = vsel %vm5950_vm15, %v5341_v12, %v4105_v11 }
 0x29e   : > { %v8165_v43 = vpop.permute.xlu1 %4476  ;;  %v3851_v26 = vrot.slane %v3849_v42, 5  ;;  %v3862_v10 = vor.u32 %v3861_v13, %v3857_v40 }
 0x2a0   : > { %v4565_v27 = vpop.permute.xlu0 %4564  ;;  %4252 = vrot.lane.b32.xlu0 %v8088_v47, %s5734_s30  ;;  %v3848_v47 = vrot.slane %v3846_v14, 4  ;;  %v3863_v56 = vrot.slane %v3862_v10, 4 }
 0x2a1   : > { %4610 = vst.msk [vmem:[#allocation5 + $0x18] sm:$0xff] %vm4606_vm11, %v4565_v27  ;;  %4184 = vrot.lane.b32.xlu1 %v8147_v57, %s5731_s14  ;;  %v4109_v27 = vsel %vm5950_vm15, %v4107_v3, %v4108_v32 }
 0x2a2   : > { %4686 = vst.msk [vmem:[#allocation5 + $0x18] sm:$0xff] %vm4682_vm0, %v8070_v22  ;;  %v3930_v28 = vpop.permute.xlu1 %3929  ;;  %v3844_v22 = vsel %vm5979_vm1, %v3839_v7, %v3843_v15  ;;  %v3852_v33 = vor.u32 %v3851_v26, %v3848_v47  ;;  %v8284_v30 = vcombine.low %v4106_v41, %v4109_v27  ;;  %v4532_v47 = vshrl.u32 %v8292_v38, 16 }
 0x2a3   : > { %3972 = vst.msk [vmem:[#allocation5 + $0x30] sm:$0xff] %vm3965_vm14, %v3930_v28  ;;  %v8205_v59 = vcombine.low %v3834_v60, %v3844_v22  ;;  %v8296_v60 = vld [vmem:[#allocation3 + $0xd0] sm:$0xf]  ;;  %v4535_v26 = vshll.u32 %v8292_v38, 16 }
 0x2a4   : > { %v4329_v8 = vpop.permute.xlu0 %4328  ;;  %4213 = vst.msk [vmem:[#allocation5 + $0x30] sm:$0xff] %vm8608_vm8, %v8047_v31  ;;  %4344 = vrot.lane.b32.xlu0 %v8119_v16, %s5739_s23  ;;  %v4541_v13 = vshll.u32 %v8296_v60, 16 }
 0x2a5   : > { %4373 = vst.msk [vmem:[#allocation5 + $0x20] sm:$0xff] %vm4368_vm12, %v4329_v8  ;;  %4254 = vrot.lane.b32.xlu1 %v8181_v1, %s5734_s30  ;;  %v4537_v10 = vrot.slane %v4535_v26, 5 }
 0x2a6   : > { %4449 = vst.msk [vmem:[#allocation5 + $0x20] sm:$0xff] %vm4444_vm3, %v8090_v34  ;;  %v3928_v31 = vpop.permute.xlu1 %3927 }
 0x2a7   : > { %4519 = vst.msk [vmem:[#allocation5 + $0x20] sm:$0xff] %vm4514_vm10, %v7929_v62  ;;  %v4102_v62 = vsel %vm5950_vm15, %v4100_v55, %v4101_v54 }
 0x2a8   : > { %4283 = vst.msk [vmem:[#allocation5 + $0x30] sm:$0xff] %vm4276_vm2, %v4241_v25  ;;  %v8203_v34 = vpop.permute.xlu0 %4174  ;;  %4420 = vrot.lane.b32.xlu0 %v8147_v57, %s5736_s15  ;;  %v5356_v0 = vcombine.low %v4099_v37, %v4102_v62  ;;  %v8262_v25 = vld [vmem:[#allocation3 + $0xc0] sm:$0xf] }
 0x2a9   : > { %4611 = vst.msk [vmem:[#allocation5 + $0x20] sm:$0xff] %vm4606_vm11, %v8132_v58  ;;  %v4702_v16 = vld [vmem:[#allocation5 + $0x18] sm:$0xff]  ;;  %4346 = vrot.lane.b32.xlu1 %v8205_v59, %s5739_s23  ;;  %v3853_v58 = vrot.slane %v3852_v33, 4  ;;  %v4294_v23 = vshrl.u32 %v8262_v25, 16  ;;  %v4297_v63 = vshll.u32 %v8262_v25, 16  ;;  %v4534_v33 = vrot.slane %v4532_v47, 4 }
 0x2aa   : > { %4687 = vst.msk [vmem:[#allocation5 + $0x20] sm:$0xff] %vm4682_vm0, %v8092_v51  ;;  %5520 = vmatmul.mubr.msk.bf16.gmra.mrb[4].mxu1 %vm8610_vm6, %v4702_v16  ;;  %vm8615_vm6 = vmmov %vm8613_vm4 }
 0x2ab   : > { %3971 = vst.msk [vmem:[#allocation5 + $0x28] sm:$0xff] %vm3965_vm14, %v3928_v31  ;;  %v4296_v14 = vrot.slane %v4294_v23, 4  ;;  %v4299_v42 = vrot.slane %v4297_v63, 5 }
 0x2ac   : > { %4212 = vst.msk [vmem:[#allocation5 + $0x28] sm:$0xff] %vm8609_vm9, %v8117_v44  ;;  %v8229_v51 = vpop.permute.xlu0 %4644  ;;  %v8231_v44 = vpop.permute.xlu1 %4410  ;;  %4490 = vrot.lane.b32.xlu0 %v8181_v1, %s5735_s12  ;;  %vm8614_vm9 = vmmov %vm8608_vm8 }
 0x2ad   : > { %4282 = vst.msk [vmem:[#allocation5 + $0x28] sm:$0xff] %vm4276_vm2, %v7951_v17  ;;  %v3867_v17 = vrot.slane %v3865_v49, 5  ;;  %4422 = vrot.lane.b32.xlu1 %v5356_v0, %s5736_s15  ;;  %v4300_v22 = vor.u32 %v4299_v42, %v4296_v14  ;;  %v4543_v49 = vrot.slane %v4541_v13, 5 }
 0x2ae   : > { %4374 = vst.msk [vmem:[#allocation5 + $0x28] sm:$0xff] %vm4368_vm12, %v8155_v6  ;;  %v8268_v6 = vld [vmem:[#allocation3 + $0xc4] sm:$0xf] }
 0x2af   : > { %4450 = vst.msk [vmem:[#allocation5 + $0x28] sm:$0xff] %vm4444_vm3, %v8072_v9  ;;  %v3858_v9 = vsel %vm5979_vm1, %v3853_v58, %v3857_v40  ;;  %v3868_v4 = vsel %vm5979_vm1, %v3863_v56, %v3867_v17  ;;  %v4303_v36 = vshll.u32 %v8268_v6, 16  ;;  %v4545_v40 = vshrl.u32 %v8296_v60, 16  ;;  %v3339_v17 = vld [vmem:[#allocation3 + $0xd4] sm:$0x1] }
 0x2b0   : > { %4520 = vst.msk [vmem:[#allocation5 + $0x28] sm:$0xff] %vm4514_vm10, %v8165_v43  ;;  %v8240_v46 = vpop.permute.xlu0 %4408  ;;  %v8242_v24 = vpop.permute.xlu1 %4646  ;;  %4582 = vrot.lane.b32.xlu0 %v8205_v59, %s5738_s17  ;;  %v8259_v29 = vcombine.low %v3858_v9, %v3868_v4  ;;  %v4307_v43 = vshrl.u32 %v8268_v6, 16  ;;  %v4388_v62 = vrot.slane %v8268_v6, 5  ;;  %v5358_v58 = vcombine.low %v8262_v25, %v8268_v6 }
 0x2b1   : > { %v4703_v48 = vld [vmem:[#allocation5 + $0x20] sm:$0xff]  ;;  %4492 = vrot.lane.b32.xlu1 %v5309_v20, %s5735_s12  ;;  %v4305_v45 = vrot.slane %v4303_v36, 5  ;;  %v4547_v21 = vrot.slane %v4545_v40, 4  ;;  %v5360_v56 = vrot.slane %v8262_v25, 9  ;;  %v4538_v4 = vor.u32 %v4537_v10, %v4534_v33 }
 0x2b2   : > { %5523 = vmatprep.mubr.msk.bf16.mxu1 %vm8613_vm4, %v4703_v48  ;;  %v4309_v5 = vrot.slane %v4307_v43, 4  ;;  %v4551_v12 = vshll.u32 %v3339_v17, 16  ;;  %v5364_v43 = vrot.slane %v8292_v38, 9 }
 0x2b3   : > { %v4548_v11 = vor.u32 %v4547_v21, %v4543_v49  ;;  %v4539_v25 = vrot.slane %v4538_v4, 4 }
 0x2b4   : > { %v8255_v52 = vpop.permute.xlu0 %4482  ;;  %v8257_v57 = vpop.permute.xlu1 %4172  ;;  %4584 = vrot.lane.b32.xlu0 %v8259_v29, %s5738_s17  ;;  %v4310_v55 = vor.u32 %v4309_v5, %v4305_v45  ;;  %v4553_v6 = vrot.slane %v4551_v12, 5 }
 0x2b5   : > { %3448 = vrot.lane.b32.xlu1 %v8181_v1, %s5730_s13  ;;  %v3336_v1 = vld [vmem:[#allocation3 + $0xc8] sm:$0x1]  ;;  %v4544_v41 = vsel %vm5979_vm1, %v4539_v25, %v4543_v49 }
 0x2b6   : > { %v4313_v54 = vshll.u32 %v3336_v1, 16  ;;  %v4311_v37 = vrot.slane %v4310_v55, 4  ;;  %v4391_v9 = vrot.slane %v3336_v1, 5 }
 0x2b8   : > { %v8270_v19 = vpop.permute.xlu0 %4570  ;;  %v8272_v50 = vpop.permute.xlu1 %4246  ;;  %3450 = vrot.lane.b32.xlu0 %v5309_v20, %s5730_s13  ;;  %v4315_v16 = vrot.slane %v4313_v54, 5  ;;  %s215_s13 = sand.u32 1, %s5716_s19  }
 0x2b9   : > { %4658 = vrot.lane.b32.xlu1 %v5356_v0, %s5737_s16  ;;  %s5074_s25 = scalar_lea.sflag [#allocation7], %s215_s13 }
 0x2ba   : > { %v4316_v48 = vsel %vm5979_vm1, %v4311_v37, %v4315_v16 }
 0x2bc   : > { %v3439_v7 = vpop.permute.xlu0 %3438  ;;  %v3441_v15 = vpop.permute.xlu1 %3440  ;;  %4660 = vrot.lane.b32.xlu0 %v8284_v30, %s5737_s16 }
 0x2bd   : > { %3478 = vst.msk [vmem:[#allocation5 + $0x48] sm:$0xff] %vm3468_vm5, %v3439_v7  ;;  %3479 = vst.msk [vmem:[#allocation5 + $0x50] sm:$0xff] %vm3468_vm5, %v3441_v15  ;;  %3945 = vrot.lane.b32.xlu1 %v8205_v59, %s5727_s10  ;;  %v4301_v59 = vrot.slane %v4300_v22, 4  ;;  %v4629_v7 = vrot.slane %v3339_v17, 5 }
 0x2c0   : > { %v4245_v8 = vpop.permute.xlu0 %4244  ;;  %v8294_v28 = vpop.permute.xlu1 %4334  ;;  %4186 = vrot.lane.b32.xlu0 %v5356_v0, %s5731_s14 }
 0x2c1   : > { %3947 = vrot.lane.b32.xlu1 %v8259_v29, %s5727_s10 }
 0x2c4   : > { %v4569_v18 = vpop.permute.xlu0 %4568  ;;  %v4481_v31 = vpop.permute.xlu1 %4480  ;;  %4256 = vrot.lane.b32.xlu0 %v5309_v20, %s5734_s30  ;;  %v4390_v20 = vrot.slane %v4388_v62, 4 }
 0x2c5   : > { %4612 = vst.msk [vmem:[#allocation5 + $0x28] sm:$0xff] %vm4606_vm11, %v4569_v18  ;;  %4188 = vrot.lane.b32.xlu1 %v8284_v30, %s5731_s14  ;;  %s5151_s14 = sshll.u32 %s215_s13, 4 }
 0x2c6   : > { %4688 = vst.msk [vmem:[#allocation5 + $0x28] sm:$0xff] %vm4682_vm0, %v8229_v51  ;;  %v4306_v51 = vsel %vm5979_vm1, %v4301_v59, %v4305_v45 }
 0x2c7   : > { %v5359_v32 = vcombine.low %v4306_v51, %v4316_v48 }
 0x2c8   : > { %v4333_v2 = vpop.permute.xlu0 %4332  ;;  %v3934_v0 = vpop.permute.xlu1 %3933  ;;  %4348 = vrot.lane.b32.xlu0 %v8259_v29, %s5739_s23  ;;  %v4389_v29 = vsel %vm5950_vm15, %v5360_v56, %v4388_v62 }
 0x2c9   : > { %4375 = vst.msk [vmem:[#allocation5 + $0x30] sm:$0xff] %vm4368_vm12, %v4333_v2  ;;  %4258 = vrot.lane.b32.xlu1 %v5358_v58, %s5734_s30  ;;  %s217_s30 = scalar_lea.vmem [#allocation6], %s5151_s14 }
 0x2ca   : > { %3974 = vst.msk [vmem:[#allocation5 + $0x40] sm:$0xff] %vm3965_vm14, %v3934_v0 }
 0x2cb   : > { %4451 = vst.msk [vmem:[#allocation5 + $0x30] sm:$0xff] %vm4444_vm3, %v8240_v46 }
 0x2cc   : > { %4215 = vst.msk [vmem:[#allocation5 + $0x40] sm:$0xff] %vm8608_vm8, %v8203_v34  ;;  %v4179_v46 = vpop.permute.xlu0 %4178  ;;  %v3932_v3 = vpop.permute.xlu1 %3931  ;;  %4424 = vrot.lane.b32.xlu0 %v8284_v30, %s5736_s15 }
 0x2cd   : > { %4521 = vst.msk [vmem:[#allocation5 + $0x30] sm:$0xff] %vm4514_vm10, %v8115_v39  ;;  %v4704_v34 = vld [vmem:[#allocation5 + $0x28] sm:$0xff]  ;;  %v4392_v39 = vsel %vm5950_vm15, %v4390_v20, %v4391_v9  ;;  %4350 = vrot.lane.b32.xlu1 %v5359_v32, %s5739_s23 }
 0x2ce   : > { %4285 = vst.msk [vmem:[#allocation5 + $0x40] sm:$0xff] %vm4276_vm2, %v4245_v8  ;;  %5524 = vmatmul.mubr.msk.bf16.gmra.mrb[8].mxu1 %vm8615_vm6, %v4704_v34  ;;  %v5361_v63 = vcombine.low %v4389_v29, %v4392_v39 }
 0x2cf   : > { %4613 = vst.msk [vmem:[#allocation5 + $0x30] sm:$0xff] %vm4606_vm11, %v8270_v19  ;;  %v4626_v19 = vrot.slane %v8296_v60, 5 }
 0x2d0   : > { %4689 = vst.msk [vmem:[#allocation5 + $0x30] sm:$0xff] %vm4682_vm0, %v8242_v24  ;;  %v4549_v24 = vrot.slane %v4548_v11, 4  ;;  %v4649_v23 = vpop.permute.xlu0 %4648  ;;  %4494 = vrot.lane.b32.xlu0 %v5358_v58, %s5735_s12 }
 0x2d1   : > { %3973 = vst.msk [vmem:[#allocation5 + $0x38] sm:$0xff] %vm3965_vm14, %v3932_v3  ;;  %4426 = vrot.lane.b32.xlu1 %v5361_v63, %s5736_s15  ;;  %v4628_v36 = vrot.slane %v4626_v19, 4  ;;  %v4627_v42 = vsel %vm5950_vm15, %v5364_v43, %v4626_v19  ;;  %s5426_s15 = sshll.u32 %s5792_s22, 8  ;;  %s5740_s22 = smov [#allocation6]  }
 0x2d2   : > { %4214 = vst.msk [vmem:[#allocation5 + $0x38] sm:$0xff] %vm8614_vm9, %v8257_v57  ;;  %v4415_v57 = vpop.permute.xlu1 %4414  ;;  %v4554_v27 = vsel %vm5979_vm1, %v4549_v24, %v4553_v6  ;;  %vm8618_vm1 = vmmov %vm8608_vm8  ;;  %s8498_s23 = scalar_lea.hbm %s8545_s5, %s5426_s15  ;;  %s5666_s6 = sshll.u32 %s5740_s22, 4  ;;  %s5667_s6 = int_to_ptr.vmem [resolvable:$false] %s5666_s6 }
 0x2d3   : > { %4284 = vst.msk [vmem:[#allocation5 + $0x38] sm:$0xff] %vm4276_vm2, %v8134_v61  ;;  %v5362_v61 = vcombine.low %v8292_v38, %v8296_v60  ;;  %v5363_v14 = vcombine.low %v4544_v41, %v4554_v27  ;;  %v4630_v53 = vsel %vm5950_vm15, %v4628_v36, %v4629_v7  ;;  %vm8617_vm15 = vmmov %vm8608_vm8  ;;  %s5668_s7 = scalar_lea.vmem %s5667_s6, 512 }
 0x2d4   : > { %4376 = vst.msk [vmem:[#allocation5 + $0x38] sm:$0xff] %vm4368_vm12, %v8294_v28  ;;  %4586 = vrot.lane.b32.xlu0 %v5359_v32, %s5738_s17  ;;  %v5365_v1 = vcombine.low %v4627_v42, %v4630_v53  ;;  %vm8620_vm8 = vmmov %vm8618_vm1 }
 0x2d5   : > { %4452 = vst.msk [vmem:[#allocation5 + $0x38] sm:$0xff] %vm4444_vm3, %v8231_v44  ;;  %v4413_v44 = vpop.permute.xlu0 %4412  ;;  %4496 = vrot.lane.b32.xlu1 %v5362_v61, %s5735_s12  ;;  %vm8621_vm9 = vmmov %vm8613_vm4  ;;  %s5088_s12 = sshll.u32 %s217_s30, 4  ;;  %s8493_s12 = int_to_ptr.vmem [resolvable:$true] %s5088_s12 }
 0x2d6   : > { %4522 = vst.msk [vmem:[#allocation5 + $0x38] sm:$0xff] %vm4514_vm10, %v4481_v31  ;;  %v4651_v15 = vpop.permute.xlu1 %4650  ;;  %vm8622_vm6 = vmmov %vm8618_vm1  ;;  %s5662_s26 = scalar_lea.vmem %s8493_s12, 256  ;;  %p5669_p0 = scmp.lt.s32.totalorder %s8493_s12, %s5667_s6 }
 0x2d7   : > { %v4705_v30 = vld [vmem:[#allocation5 + $0x30] sm:$0xff]  ;;  %p5663_p11 = scmp.ne.s32.totalorder %s8493_s12, %s5662_s26  ;;  %p5670_p1 = scmp.lt.s32.totalorder %s5668_s7, %s5662_s26 }
 0x2d8   : > { %5527 = vmatprep.mubr.msk.bf16.mxu1 %vm8616_vm13, %v4705_v30  ;;  %4662 = vrot.lane.b32.xlu0 %v5361_v63, %s5737_s16  ;;  %vm8623_vm13 = vmmov %vm8613_vm4 }
 0x2d9   : > { %v4575_v45 = vpop.permute.xlu0 %4574  ;;  %4588 = vrot.lane.b32.xlu1 %v5363_v14, %s5738_s17  ;;  %p5664_p12 = pnand %p5663_p11, %p5809_p5  ;;  %p5671_p2 = por %p5670_p1, %p5669_p0 }
 0x2da   : > { %v4177_v5 = vpop.permute.xlu1 %4176 }
 0x2db   : > { %p5665_p13 = pneg %p5664_p12 }
 0x2dd   : > { %v3443_v38 = vpop.permute.xlu0 %3442  ;;  %4664 = vrot.lane.b32.xlu1 %v5365_v1, %s5737_s16  ;;  %p5672_p3 = pnand %p5671_p2, %p5665_p13 }
 0x2de   : > { %v4251_v8 = vpop.permute.xlu1 %4250  ;;  %3480 = vst.msk [vmem:[#allocation5 + $0x58] sm:$0xff] %vm3468_vm5, %v3443_v38 }
 0x2e1   : > { %v4249_v28 = vpop.permute.xlu0 %4248 }
 0x2e2   : > { %v4339_v60 = vpop.permute.xlu1 %4338 }
 0x2e5   : > { %v4573_v22 = vpop.permute.xlu0 %4572 }
 0x2e6   : > { %v4485_v55 = vpop.permute.xlu1 %4484  ;;  %4614 = vst.msk [vmem:[#allocation5 + $0x38] sm:$0xff] %vm4606_vm11, %v4573_v22  ;;  %v8454_v22 = vld [vmem:[%s8544_s4] ss:$0 sm:$0xff] }
 0x2e7   : > { %4690 = vst.msk [vmem:[#allocation5 + $0x38] sm:$0xff] %vm4682_vm0, %v4649_v23 }
 0x2e9   : > { %v4337_v35 = vpop.permute.xlu0 %4336 }
 0x2ea   : > { %v3938_v54 = vpop.permute.xlu1 %3937  ;;  %4377 = vst.msk [vmem:[#allocation5 + $0x40] sm:$0xff] %vm4368_vm12, %v4337_v35 }
 0x2eb   : > { %3976 = vst.msk [vmem:[#allocation5 + $0x50] sm:$0xff] %vm3965_vm14, %v3938_v54 }
 0x2ec   : > { %4453 = vst.msk [vmem:[#allocation5 + $0x40] sm:$0xff] %vm4444_vm3, %v4413_v44 }
 0x2ed   : > { %4217 = vst.msk [vmem:[#allocation5 + $0x50] sm:$0xff] %vm8617_vm15, %v4179_v46  ;;  %v4653_v47 = vpop.permute.xlu0 %4652  ;;  %vm8624_vm15 = vmmov %vm8618_vm1 }
 0x2ee   : > { %4523 = vst.msk [vmem:[#allocation5 + $0x40] sm:$0xff] %vm4514_vm10, %v8255_v52  ;;  %v3936_v26 = vpop.permute.xlu1 %3935  ;;  %v4706_v40 = vld [vmem:[#allocation5 + $0x38] sm:$0xff] }
 0x2ef   : > { %4287 = vst.msk [vmem:[#allocation5 + $0x50] sm:$0xff] %vm4276_vm2, %v4249_v28  ;;  %5528 = vmatmul.mubr.msk.bf16.gmra.mrb[12].mxu1 %vm8619_vm7, %v4706_v40  ;;  %vm8626_vm7 = vmmov %vm8622_vm6 }
 0x2f0   : > { %4615 = vst.msk [vmem:[#allocation5 + $0x40] sm:$0xff] %vm4606_vm11, %v4575_v45 }
 0x2f1   : > { %4691 = vst.msk [vmem:[#allocation5 + $0x40] sm:$0xff] %vm4682_vm0, %v4651_v15  ;;  %v4577_v52 = vpop.permute.xlu0 %4576 }
 0x2f2   : > { %3975 = vst.msk [vmem:[#allocation5 + $0x48] sm:$0xff] %vm3965_vm14, %v3936_v26  ;;  %v4181_v13 = vpop.permute.xlu1 %4180 }
 0x2f3   : > { %4216 = vst.msk [vmem:[#allocation5 + $0x48] sm:$0xff] %vm8618_vm1, %v4177_v5  ;;  %vm8625_vm1 = vmmov %vm8613_vm4 }
 0x2f4   : > { %4286 = vst.msk [vmem:[#allocation5 + $0x48] sm:$0xff] %vm4276_vm2, %v8272_v50 }
 0x2f5   : > { %4378 = vst.msk [vmem:[#allocation5 + $0x48] sm:$0xff] %vm4368_vm12, %v4339_v60  ;;  %v4341_v18 = vpop.permute.xlu0 %4340 }
 0x2f6   : > { %4454 = vst.msk [vmem:[#allocation5 + $0x48] sm:$0xff] %vm4444_vm3, %v4415_v57  ;;  %v3940_v31 = vpop.permute.xlu1 %3939 }
 0x2f7   : > { %4524 = vst.msk [vmem:[#allocation5 + $0x48] sm:$0xff] %vm4514_vm10, %v4485_v55 }
 0x2f8   : > { %4616 = vst.msk [vmem:[#allocation5 + $0x48] sm:$0xff] %vm4606_vm11, %v4577_v52  ;;  %v4707_v59 = vld [vmem:[#allocation5 + $0x40] sm:$0xff] }
 0x2f9   : > { %4692 = vst.msk [vmem:[#allocation5 + $0x48] sm:$0xff] %vm4682_vm0, %v4653_v47  ;;  %5531 = vmatprep.mubr.msk.bf16.mxu1 %vm8613_vm4, %v4707_v59  ;;  %v4417_v50 = vpop.permute.xlu0 %4416  ;;  %vm8627_vm4 = vmmov %vm8625_vm1 }
 0x2fa   : > { %4379 = vst.msk [vmem:[#allocation5 + $0x50] sm:$0xff] %vm4368_vm12, %v4341_v18  ;;  %v4343_v37 = vpop.permute.xlu1 %4342 }
 0x2fb   : > { %3977 = vst.msk [vmem:[#allocation5 + $0x58] sm:$0xff] %vm3965_vm14, %v3940_v31 }
 0x2fc   : > { %4218 = vst.msk [vmem:[#allocation5 + $0x58] sm:$0xff] %vm8620_vm8, %v4181_v13  ;;  %vm8629_vm8 = vmmov %vm8625_vm1 }
 0x2fd   : > { %4288 = vst.msk [vmem:[#allocation5 + $0x58] sm:$0xff] %vm4276_vm2, %v4251_v8  ;;  %v4487_v62 = vpop.permute.xlu0 %4486 }
 0x2fe   : > { %4455 = vst.msk [vmem:[#allocation5 + $0x50] sm:$0xff] %vm4444_vm3, %v4417_v50  ;;  %v4419_v33 = vpop.permute.xlu1 %4418 }
 0x2ff   : > { %4380 = vst.msk [vmem:[#allocation5 + $0x58] sm:$0xff] %vm4368_vm12, %v4343_v37 }
 0x300   : > { %v4708_v16 = vld [vmem:[#allocation5 + $0x48] sm:$0xff]  ;;  %4525 = vst.msk [vmem:[#allocation5 + $0x50] sm:$0xff] %vm4514_vm10, %v4487_v62 }
 0x301   : > { %5532 = vmatmul.mubr.msk.bf16.gmra.mrb[16].mxu1 %vm8621_vm9, %v4708_v16  ;;  %4456 = vst.msk [vmem:[#allocation5 + $0x58] sm:$0xff] %vm4444_vm3, %v4419_v33  ;;  %v4579_v10 = vpop.permute.xlu0 %4578 }
 0x302   : > { %v4489_v49 = vpop.permute.xlu1 %4488  ;;  %4617 = vst.msk [vmem:[#allocation5 + $0x50] sm:$0xff] %vm4606_vm11, %v4579_v10 }
 0x303   : > { %4526 = vst.msk [vmem:[#allocation5 + $0x58] sm:$0xff] %vm4514_vm10, %v4489_v49 }
 0x305   : > { %v4581_v21 = vpop.permute.xlu0 %4580 }
 0x306   : > { %v3445_v2 = vpop.permute.xlu1 %3444  ;;  %4618 = vst.msk [vmem:[#allocation5 + $0x58] sm:$0xff] %vm4606_vm11, %v4581_v21 }
 0x307   : > { %3481 = vst.msk [vmem:[#allocation5 + $0x60] sm:$0xff] %vm3468_vm5, %v3445_v2 }
 0x309   : > { %v3447_v0 = vpop.permute.xlu0 %3446 }
 0x30a   : > { %v4655_v58 = vpop.permute.xlu1 %4654  ;;  %3482 = vst.msk [vmem:[#allocation5 + $0x68] sm:$0xff] %vm3468_vm5, %v3447_v0 }
 0x30b   : > { %4693 = vst.msk [vmem:[#allocation5 + $0x50] sm:$0xff] %vm4682_vm0, %v4655_v58 }
 0x30d   : > { %v4657_v56 = vpop.permute.xlu0 %4656 }
 0x30e   : > { %v3942_v17 = vpop.permute.xlu1 %3941  ;;  %4694 = vst.msk [vmem:[#allocation5 + $0x58] sm:$0xff] %vm4682_vm0, %v4657_v56 }
 0x30f   : > { %3978 = vst.msk [vmem:[#allocation5 + $0x60] sm:$0xff] %vm3965_vm14, %v3942_v17 }
 0x311   : > { %v4183_v51 = vpop.permute.xlu0 %4182 }
 0x312   : > { %v3944_v48 = vpop.permute.xlu1 %3943  ;;  %v4709_v20 = vld [vmem:[#allocation5 + $0x50] sm:$0xff]  ;;  %4219 = vst.msk [vmem:[#allocation5 + $0x60] sm:$0xff] %vm8622_vm6, %v4183_v51 }
 0x313   : > { %3979 = vst.msk [vmem:[#allocation5 + $0x68] sm:$0xff] %vm3965_vm14, %v3944_v48  ;;  %5535 = vmatprep.mubr.msk.bf16.mxu1 %vm8623_vm13, %v4709_v20 }
 0x315   : > { %v4253_v9 = vpop.permute.xlu0 %4252  ;;  %v4710_v11 = vld [vmem:[#allocation5 + $0x58] sm:$0xff] }
 0x316   : > { %v4185_v4 = vpop.permute.xlu1 %4184  ;;  %4289 = vst.msk [vmem:[#allocation5 + $0x60] sm:$0xff] %vm4276_vm2, %v4253_v9  ;;  %5536 = vmatmul.mubr.msk.bf16.gmra.mrb[20].mxu1 %vm8625_vm1, %v4710_v11 }
 0x317   : > { %4220 = vst.msk [vmem:[#allocation5 + $0x68] sm:$0xff] %vm8624_vm15, %v4185_v4 }
 0x319   : > { %v4345_v12 = vpop.permute.xlu0 %4344 }
 0x31a   : > { %v4255_v46 = vpop.permute.xlu1 %4254  ;;  %4381 = vst.msk [vmem:[#allocation5 + $0x60] sm:$0xff] %vm4368_vm12, %v4345_v12 }
 0x31b   : > { %4290 = vst.msk [vmem:[#allocation5 + $0x68] sm:$0xff] %vm4276_vm2, %v4255_v46 }
 0x31d   : > { %v4421_v3 = vpop.permute.xlu0 %4420 }
 0x31e   : > { %v4347_v32 = vpop.permute.xlu1 %4346  ;;  %4457 = vst.msk [vmem:[#allocation5 + $0x60] sm:$0xff] %vm4444_vm3, %v4421_v3 }
 0x31f   : > { %4382 = vst.msk [vmem:[#allocation5 + $0x68] sm:$0xff] %vm4368_vm12, %v4347_v32 }
 0x321   : > { %v4491_v34 = vpop.permute.xlu0 %4490 }
 0x322   : > { %v4423_v29 = vpop.permute.xlu1 %4422  ;;  %4527 = vst.msk [vmem:[#allocation5 + $0x60] sm:$0xff] %vm4514_vm10, %v4491_v34 }
 0x323   : > { %4458 = vst.msk [vmem:[#allocation5 + $0x68] sm:$0xff] %vm4444_vm3, %v4423_v29 }
 0x325   : > { %v4583_v39 = vpop.permute.xlu0 %4582 }
 0x326   : > { %v4493_v25 = vpop.permute.xlu1 %4492  ;;  %4619 = vst.msk [vmem:[#allocation5 + $0x60] sm:$0xff] %vm4606_vm11, %v4583_v39 }
 0x327   : > { %4528 = vst.msk [vmem:[#allocation5 + $0x68] sm:$0xff] %vm4514_vm10, %v4493_v25 }
 0x329   : > { %v4585_v24 = vpop.permute.xlu0 %4584 }
 0x32a   : > { %v3449_v6 = vpop.permute.xlu1 %3448  ;;  %4620 = vst.msk [vmem:[#allocation5 + $0x68] sm:$0xff] %vm4606_vm11, %v4585_v24 }
 0x32b   : > { %3483 = vst.msk [vmem:[#allocation5 + $0x70] sm:$0xff] %vm3468_vm5, %v3449_v6 }
 0x32d   : > { %v3451_v19 = vpop.permute.xlu0 %3450 }
 0x32e   : > { %v4659_v23 = vpop.permute.xlu1 %4658  ;;  %3484 = vst.msk [vmem:[#allocation5 + $0x78] sm:$0xff] %vm3468_vm5, %v3451_v19  ;;  %vm8628_vm5 = vmmov %vm8622_vm6 }
 0x32f   : > { %4695 = vst.msk [vmem:[#allocation5 + $0x60] sm:$0xff] %vm4682_vm0, %v4659_v23 }
 0x331   : > { %v4661_v57 = vpop.permute.xlu0 %4660 }
 0x332   : > { %v3946_v63 = vpop.permute.xlu1 %3945  ;;  %4696 = vst.msk [vmem:[#allocation5 + $0x68] sm:$0xff] %vm4682_vm0, %v4661_v57 }
 0x333   : > { %3980 = vst.msk [vmem:[#allocation5 + $0x70] sm:$0xff] %vm3965_vm14, %v3946_v63 }
 0x335   : > { %v4187_v61 = vpop.permute.xlu0 %4186 }
 0x336   : > { %v3948_v41 = vpop.permute.xlu1 %3947  ;;  %v4711_v27 = vld [vmem:[#allocation5 + $0x60] sm:$0xff]  ;;  %4221 = vst.msk [vmem:[#allocation5 + $0x70] sm:$0xff] %vm8626_vm7, %v4187_v61 }
 0x337   : > { %3981 = vst.msk [vmem:[#allocation5 + $0x78] sm:$0xff] %vm3965_vm14, %v3948_v41  ;;  %5539 = vmatprep.mubr.msk.bf16.mxu1 %vm8627_vm4, %v4711_v27  ;;  %vm8630_vm14 = vmmov %vm8625_vm1 }
 0x339   : > { %v4257_v43 = vpop.permute.xlu0 %4256  ;;  %v4712_v7 = vld [vmem:[#allocation5 + $0x68] sm:$0xff] }
 0x33a   : > { %v4189_v36 = vpop.permute.xlu1 %4188  ;;  %4291 = vst.msk [vmem:[#allocation5 + $0x70] sm:$0xff] %vm4276_vm2, %v4257_v43  ;;  %5540 = vmatmul.mubr.msk.bf16.gmra.mrb[24].mxu1 %vm8629_vm8, %v4712_v7 }
 0x33b   : > { %4222 = vst.msk [vmem:[#allocation5 + $0x78] sm:$0xff] %vm8628_vm5, %v4189_v36 }
 0x33d   : > { %v4349_v44 = vpop.permute.xlu0 %4348 }
 0x33e   : > { %v4259_v15 = vpop.permute.xlu1 %4258  ;;  %4383 = vst.msk [vmem:[#allocation5 + $0x70] sm:$0xff] %vm4368_vm12, %v4349_v44 }
 0x33f   : > { %4292 = vst.msk [vmem:[#allocation5 + $0x78] sm:$0xff] %vm4276_vm2, %v4259_v15  ;;  %vm8631_vm2 = vmmov %vm8625_vm1 }
 0x341   : > { %v4425_v30 = vpop.permute.xlu0 %4424 }
 0x342   : > { %v4351_v14 = vpop.permute.xlu1 %4350  ;;  %4459 = vst.msk [vmem:[#allocation5 + $0x70] sm:$0xff] %vm4444_vm3, %v4425_v30 }
 0x343   : > { %4384 = vst.msk [vmem:[#allocation5 + $0x78] sm:$0xff] %vm4368_vm12, %v4351_v14 }
 0x345   : > { %v4495_v42 = vpop.permute.xlu0 %4494 }
 0x346   : > { %v4427_v53 = vpop.permute.xlu1 %4426  ;;  %4529 = vst.msk [vmem:[#allocation5 + $0x70] sm:$0xff] %vm4514_vm10, %v4495_v42 }
 0x347   : > { %4460 = vst.msk [vmem:[#allocation5 + $0x78] sm:$0xff] %vm4444_vm3, %v4427_v53 }
 0x349   : > { %v4587_v45 = vpop.permute.xlu0 %4586 }
 0x34a   : > { %v4497_v5 = vpop.permute.xlu1 %4496  ;;  %4621 = vst.msk [vmem:[#allocation5 + $0x70] sm:$0xff] %vm4606_vm11, %v4587_v45 }
 0x34b   : > { %4530 = vst.msk [vmem:[#allocation5 + $0x78] sm:$0xff] %vm4514_vm10, %v4497_v5 }
 0x34d   : > { %v4663_v1 = vpop.permute.xlu0 %4662 }
 0x34e   : > { %v4589_v38 = vpop.permute.xlu1 %4588  ;;  %4697 = vst.msk [vmem:[#allocation5 + $0x70] sm:$0xff] %vm4682_vm0, %v4663_v1 }
 0x34f   : > { %4622 = vst.msk [vmem:[#allocation5 + $0x78] sm:$0xff] %vm4606_vm11, %v4589_v38 }
 0x352   : > { %v4665_v8 = vpop.permute.xlu1 %4664 }
 0x353   : > { %4698 = vst.msk [vmem:[#allocation5 + $0x78] sm:$0xff] %vm4682_vm0, %v4665_v8 }
 0x355   : > { %v4713_v28 = vld [vmem:[#allocation5 + $0x70] sm:$0xff] }
 0x356   : > { %5543 = vmatprep.mubr.msk.bf16.mxu1 %vm8630_vm14, %v4713_v28 }
 0x359   : > { %v5517_v55 = vpop.f32.mrb[0].mxu1 }
 0x35a   : > { %v4714_v60 = vld [vmem:[#allocation5 + $0x78] sm:$0xff]  ;;  %v4848_v35 = vpop.f32.mrb[1].mxu1  ;;  %v4857_v13 = vadd.f32 %v5517_v55, %v8454_v22 }
 0x35b   : > { %5544 = vmatmul.mubr.msk.bf16.gmra.mrb[28].mxu1 %vm8631_vm2, %v4714_v60  ;;  %v4849_v54 = vadd.f32 %v8454_v22, %v4848_v35  ;;  %v5518_v47 = vpop.f32.mrb[2].mxu1 }
 0x35c   : > { %v4851_v26 = vpop.f32.mrb[3].mxu1  ;;  %v4977_v31 = vmax.f32 %v4857_v13, 0.0  ;;  %v4860_v59 = vadd.f32 %v5518_v47, %v8454_v22 }
 0x35d   : > { %v4975_v40 = vmax.f32 %v4849_v54, 0.0  ;;  %v4852_v52 = vadd.f32 %v8454_v22, %v4851_v26 }
 0x35e   : > { %v4978_v50 = vmax.f32 %v4860_v59, 0.0 }
 0x35f   : > { %5007 = vxpose.xlu0.b32.start [1/16] (narrow) %v4975_v40, 8  ;;  %v4976_v18 = vmax.f32 %v4852_v52, 0.0 }
 0x363   : > { %5008 = vxpose.xlu0.b32.cont [2/16] (narrow) %v4976_v18, 8 }
 0x367   : > { %5009 = vxpose.xlu0.b32.cont [3/16] (narrow) %v4977_v31, 8 }
 0x36b   : > { %5010 = vxpose.xlu0.b32.cont [4/16] (narrow) %v4978_v50, 8 }
 0x37d   : > { %v5521_v37 = vpop.f32.mrb[4].mxu1 }
 0x37e   : > { %v4864_v16 = vpop.f32.mrb[5].mxu1  ;;  %v4873_v2 = vadd.f32 %v5521_v37, %v8454_v22 }
 0x37f   : > { %v4865_v62 = vadd.f32 %v8454_v22, %v4864_v16  ;;  %v5522_v33 = vpop.f32.mrb[6].mxu1 }
 0x380   : > { %v4867_v10 = vpop.f32.mrb[7].mxu1  ;;  %v4981_v58 = vmax.f32 %v4873_v2, 0.0  ;;  %v4876_v56 = vadd.f32 %v5522_v33, %v8454_v22 }
 0x381   : > { %v4979_v49 = vmax.f32 %v4865_v62, 0.0  ;;  %v4868_v21 = vadd.f32 %v8454_v22, %v4867_v10 }
 0x382   : > { %v4982_v17 = vmax.f32 %v4876_v56, 0.0 }
 0x383   : > { %5011 = vxpose.xlu0.b32.cont [5/16] (narrow) %v4979_v49, 8  ;;  %v4980_v0 = vmax.f32 %v4868_v21, 0.0 }
 0x387   : > { %5012 = vxpose.xlu0.b32.cont [6/16] (narrow) %v4980_v0, 8 }
 0x38b   : > { %5013 = vxpose.xlu0.b32.cont [7/16] (narrow) %v4981_v58, 8 }
 0x38f   : > { %5014 = vxpose.xlu0.b32.cont [8/16] (narrow) %v4982_v17, 8 }
 0x3a1   : > { %v5525_v51 = vpop.f32.mrb[8].mxu1 }
 0x3a2   : > { %v4880_v48 = vpop.f32.mrb[9].mxu1  ;;  %v4889_v46 = vadd.f32 %v5525_v51, %v8454_v22 }
 0x3a3   : > { %v4881_v20 = vadd.f32 %v8454_v22, %v4880_v48  ;;  %v5526_v9 = vpop.f32.mrb[10].mxu1 }
 0x3a4   : > { %v4883_v4 = vpop.f32.mrb[11].mxu1  ;;  %v4985_v32 = vmax.f32 %v4889_v46, 0.0  ;;  %v4892_v34 = vadd.f32 %v5526_v9, %v8454_v22 }
 0x3a5   : > { %v4983_v11 = vmax.f32 %v4881_v20, 0.0  ;;  %v4884_v12 = vadd.f32 %v8454_v22, %v4883_v4 }
 0x3a6   : > { %v4986_v29 = vmax.f32 %v4892_v34, 0.0 }
 0x3a7   : > { %5015 = vxpose.xlu0.b32.cont [9/16] (narrow) %v4983_v11, 8  ;;  %v4984_v3 = vmax.f32 %v4884_v12, 0.0 }
 0x3ab   : > { %5016 = vxpose.xlu0.b32.cont [10/16] (narrow) %v4984_v3, 8 }
 0x3af   : > { %5017 = vxpose.xlu0.b32.cont [11/16] (narrow) %v4985_v32, 8 }
 0x3b3   : > { %5018 = vxpose.xlu0.b32.cont [12/16] (narrow) %v4986_v29, 8 }
 0x3c2   : > { %v5529_v39 = vpop.f32.mrb[12].mxu1 }
 0x3c3   : > { %v4896_v25 = vpop.f32.mrb[13].mxu1  ;;  %v4905_v63 = vadd.f32 %v5529_v39, %v8454_v22 }
 0x3c4   : > { %v4897_v24 = vadd.f32 %v8454_v22, %v4896_v25  ;;  %v5530_v6 = vpop.f32.mrb[14].mxu1 }
 0x3c5   : > { %v4899_v19 = vpop.f32.mrb[15].mxu1  ;;  %v4989_v41 = vmax.f32 %v4905_v63, 0.0  ;;  %v4908_v27 = vadd.f32 %v5530_v6, %v8454_v22 }
 0x3c6   : > { %v4987_v23 = vmax.f32 %v4897_v24, 0.0  ;;  %v4900_v57 = vadd.f32 %v8454_v22, %v4899_v19 }
 0x3c7   : > { %v4990_v7 = vmax.f32 %v4908_v27, 0.0 }
 0x3c8   : > { %5019 = vxpose.xlu0.b32.cont [13/16] (narrow) %v4987_v23, 8  ;;  %v4988_v61 = vmax.f32 %v4900_v57, 0.0 }
 0x3cc   : > { %5020 = vxpose.xlu0.b32.cont [14/16] (narrow) %v4988_v61, 8 }
 0x3d0   : > { %5021 = vxpose.xlu0.b32.cont [15/16] (narrow) %v4989_v41, 8 }
 0x3d4   : > { %v5533_v43 = vpop.f32.mrb[16].mxu1  ;;  %5022 = vxpose.xlu0.b32.end [16/16] (narrow) %v4990_v7, 8 }
 0x3d5   : > { %v4912_v36 = vpop.f32.mrb[17].mxu1  ;;  %v4921_v53 = vadd.f32 %v5533_v43, %v8454_v22 }
 0x3d6   : > { %v4913_v44 = vadd.f32 %v8454_v22, %v4912_v36  ;;  %v5534_v15 = vpop.f32.mrb[18].mxu1 }
 0x3d7   : > { %v4915_v30 = vpop.f32.mrb[19].mxu1  ;;  %v4993_v5 = vmax.f32 %v4921_v53, 0.0  ;;  %v4924_v1 = vadd.f32 %v5534_v15, %v8454_v22 }
 0x3d8   : > { %v4991_v14 = vmax.f32 %v4913_v44, 0.0  ;;  %v4916_v42 = vadd.f32 %v8454_v22, %v4915_v30 }
 0x3d9   : > { %v4994_v38 = vmax.f32 %v4924_v1, 0.0 }
 0x3da   : > { %5039 = vxpose.xlu1.b32.start [1/16] (narrow) %v4991_v14, 8  ;;  %v4992_v45 = vmax.f32 %v4916_v42, 0.0 }
 0x3de   : > { %5040 = vxpose.xlu1.b32.cont [2/16] (narrow) %v4992_v45, 8 }
 0x3e2   : > { %5041 = vxpose.xlu1.b32.cont [3/16] (narrow) %v4993_v5, 8 }
 0x3e6   : > { %5042 = vxpose.xlu1.b32.cont [4/16] (narrow) %v4994_v38, 8 }
 0x3e9   : > { %v5537_v8 = vpop.f32.mrb[20].mxu1 }
 0x3ea   : > { %v4928_v28 = vpop.f32.mrb[21].mxu1  ;;  %v4937_v26 = vadd.f32 %v5537_v8, %v8454_v22 }
 0x3eb   : > { %v4929_v60 = vadd.f32 %v8454_v22, %v4928_v28  ;;  %v5538_v55 = vpop.f32.mrb[22].mxu1 }
 0x3ec   : > { %v4931_v35 = vpop.f32.mrb[23].mxu1  ;;  %v4997_v52 = vmax.f32 %v4937_v26, 0.0  ;;  %v4940_v13 = vadd.f32 %v5538_v55, %v8454_v22 }
 0x3ed   : > { %v4995_v54 = vmax.f32 %v4929_v60, 0.0  ;;  %v4932_v47 = vadd.f32 %v8454_v22, %v4931_v35 }
 0x3ee   : > { %v4998_v18 = vmax.f32 %v4940_v13, 0.0 }
 0x3ef   : > { %5043 = vxpose.xlu1.b32.cont [5/16] (narrow) %v4995_v54, 8  ;;  %v4996_v40 = vmax.f32 %v4932_v47, 0.0 }
 0x3f3   : > { %5044 = vxpose.xlu1.b32.cont [6/16] (narrow) %v4996_v40, 8 }
 0x3f7   : > { %5045 = vxpose.xlu1.b32.cont [7/16] (narrow) %v4997_v52, 8 }
 0x3fb   : > { %5046 = vxpose.xlu1.b32.cont [8/16] (narrow) %v4998_v18, 8 }
 0x40d   : > { %v5541_v31 = vpop.f32.mrb[24].mxu1 }
 0x40e   : > { %v4944_v59 = vpop.f32.mrb[25].mxu1  ;;  %v4953_v10 = vadd.f32 %v5541_v31, %v8454_v22 }
 0x40f   : > { %v4945_v50 = vadd.f32 %v8454_v22, %v4944_v59  ;;  %v5542_v37 = vpop.f32.mrb[26].mxu1 }
 0x410   : > { %v4947_v16 = vpop.f32.mrb[27].mxu1  ;;  %v5001_v2 = vmax.f32 %v4953_v10, 0.0  ;;  %v4956_v0 = vadd.f32 %v5542_v37, %v8454_v22 }
 0x411   : > { %v4999_v62 = vmax.f32 %v4945_v50, 0.0  ;;  %v4948_v33 = vadd.f32 %v8454_v22, %v4947_v16 }
 0x412   : > { %v5002_v58 = vmax.f32 %v4956_v0, 0.0 }
 0x413   : > { %5047 = vxpose.xlu1.b32.cont [9/16] (narrow) %v4999_v62, 8  ;;  %v5000_v49 = vmax.f32 %v4948_v33, 0.0 }
 0x417   : > { %5048 = vxpose.xlu1.b32.cont [10/16] (narrow) %v5000_v49, 8 }
 0x418   : > { %v5023_v21 = vpop.trf.xlu0 }
 0x419   : > { %5071 = vst [vmem:[%s217_s30] sm:$0xff] %v5023_v21 }
 0x41b   : > { %5049 = vxpose.xlu1.b32.cont [11/16] (narrow) %v5001_v2, 8 }
 0x41f   : > { %5050 = vxpose.xlu1.b32.cont [12/16] (narrow) %v5002_v58, 8 }
 0x42e   : > { %v5545_v56 = vpop.f32.mrb[28].mxu1 }
 0x42f   : > { %v4960_v17 = vpop.f32.mrb[29].mxu1  ;;  %v4969_v11 = vadd.f32 %v5545_v56, %v8454_v22 }
 0x430   : > { %v4961_v51 = vadd.f32 %v8454_v22, %v4960_v17  ;;  %v5546_v48 = vpop.f32.mrb[30].mxu1 }
 0x431   : > { %v4963_v20 = vpop.f32.mrb[31].mxu1  ;;  %v5005_v46 = vmax.f32 %v4969_v11, 0.0  ;;  %v4972_v3 = vadd.f32 %v5546_v48, %v8454_v22 }
 0x432   : > { %v5003_v9 = vmax.f32 %v4961_v51, 0.0  ;;  %v4964_v4 = vadd.f32 %v8454_v22, %v4963_v20 }
 0x433   : > { %v5006_v32 = vmax.f32 %v4972_v3, 0.0 }
 0x434   : > { %5051 = vxpose.xlu1.b32.cont [13/16] (narrow) %v5003_v9, 8  ;;  %v5004_v12 = vmax.f32 %v4964_v4, 0.0 }
 0x438   : > { %5052 = vxpose.xlu1.b32.cont [14/16] (narrow) %v5004_v12, 8 }
 0x43c   : > { %5053 = vxpose.xlu1.b32.cont [15/16] (narrow) %v5005_v46, 8 }
 0x440   : > { %5054 = vxpose.xlu1.b32.end [16/16] (narrow) %v5006_v32, 8 }
 0x484   : > { %v5055_v34 = vpop.trf.xlu1 }
 0x485   : > { %5072 = vst [vmem:[%s217_s30 + $0x8] sm:$0xff] %v5055_v34 }
 0x486   : > { %5675 = shalt.err (!%p5672_p3)
}
 0x487   : > { %s5676_s8 = scalar_lea.hbm %s8498_s23, 256  ;;  %s5680_s10 = scalar_lea.hbm %s8545_s5, 512 }
 0x488   : > { %p5677_p4 = scmp.ne.s32.totalorder %s8498_s23, %s5676_s8  ;;  %p5681_p9 = scmp.lt.u32.totalorder %s8498_s23, %s8545_s5 }
 0x489   : > { %p5682_p10 = scmp.lt.u32.totalorder %s5680_s10, %s5676_s8  ;;  %p5684_p12 = scmp.lt.u32.totalorder %s5676_s8, %s8498_s23 }
 0x48a   : > { %p5678_p7 = pnand %p5677_p4, %p5809_p5 }
 0x48b   : > { %p5683_p11 = por %p5682_p10, %p5681_p9 }
 0x48c   : > { %p5679_p8 = pneg %p5678_p7 }
 0x48d   : > { %p5685_p13 = por %p5684_p12, %p5683_p11 }
 0x48f   : > { %p5686_p0 = pnand %p5685_p13, %p5679_p8 }
 0x491   : > { %5689 = shalt.err (!%p5686_p0)
}
 0x492   : > { %5549 = dma.vmem_to_hbm [thread:$0]  (%p5809_p5), %s8493_s12, 256, %s8498_s23, %s5074_s25  }
 0x493 PF: > { %p5555_p1 = scmp.ge.s32.totalorder %s5724_s21, 2  ;;  %s5100_s30 = sand.u32 1, %s5712_s18  }
 0x494   : > { %s5101_s15 = scalar_lea.sflag [#allocation7], %s5100_s30 }
 0x495   : > { %p5552_p2 = pnand %p5555_p1, %p5813_p6 }
 0x497   : > { %5707 = dma.done.wait (!%p5552_p2), %s5101_s15, 256  }
 0x498   : > { %5709 = vsyncadd (!%p5552_p2), %s5101_s15, 4294967040  ;;  %p15_p3 = scmp.ge.s32.totalorder %s5796_s24, 4   ;;  %s8632_s18 = smov %s5716_s19 }
 0x499   : > { %s8633_s19 = smov %s5720_s20  ;;  %s8634_s20 = smov %s5807_s27 }
 0x49a   : > { %s8635_s21 = smov %s5796_s24  ;;  %17 = sbr.rel (!%p15_p3) target bundleno = 3 (0x3), region = 79 }
 0x4a1   :  { %5106 = vsyncpa [#allocation7], 1 }
 0x4a2   :  { %5108 = vsyncpa [#allocation7 + $0x1], 1 }

</bundles_post_ra>
